<compile_context>
chip_gen: v7x
topology: tpu7x:2x2x1
jax: 0.10.0
libtpu: 0.0.40
codegen_flags: <defaults>
</compile_context>

<pallas_src>
import functools
import math

import jax
import jax.numpy as jnp
import numpy as np
from jax import lax
from jax.experimental import pallas as pl
from jax.experimental.pallas import tpu as pltpu


# ----------------------------------------------------------------------------
# Fused kernel: nearest upsample + zero-pad + im2col + GEMM(+bias) + ReLU.
# One grid step processes `nb` images.
# ----------------------------------------------------------------------------
def _fused_kernel(x_ref, s_ref, w_ref, o_ref, flat_ref, a_ref, *,
                  nb, cin_p, ws, m, guard, ksize, p):
    # x_ref   : (nb, cin_p, h*w)  padded channels; last channel is all-ones
    # s_ref   : (h*w, m)          0/1 selection matrix (upsample + flatten)
    # w_ref   : (nf, k*k*cin_p)   weight, K = (kh,kw,c); bias in centre/ones col
    # o_ref   : (nb, nf, m)       output (lane-dense, m = Hs*Ws)
    # flat_ref: (cin_p, guard+m+guard)  flat upsampled rows + zero guards
    # a_ref   : (k*k*cin_p, nb*m) im2col matrix
    flat_len = flat_ref.shape[1]

    # Zero ONLY the guard columns (interior is fully overwritten per image).
    # Not gated on program_id: with "parallel" semantics each core owns its
    # own scratch and must initialize it.
    flat_ref[:, 0:guard] = jnp.zeros((cin_p, guard), jnp.float32)
    flat_ref[:, guard + m:flat_len] = jnp.zeros(
        (cin_p, flat_len - guard - m), jnp.float32)

    # Hoisted W-boundary lane masks (depend only on the kw offset dx).
    col = lax.broadcasted_iota(jnp.int32, (1, m), 1) % ws
    wmask = {}
    for dx in range(-p, p + 1):
        if dx < 0:
            wmask[dx] = col >= -dx
        elif dx > 0:
            wmask[dx] = col < ws - dx

    s_mat = s_ref[...]                                         # (h*w, m)

    for b in range(nb):
        # ---- 1) nearest upsample + row-major flatten: one selection matmul -
        up = jnp.dot(x_ref[b], s_mat,
                     preferred_element_type=jnp.float32)       # (cin_p, m)
        flat_ref[:, guard:guard + m] = up

        # ---- 2) im2col via static shifted slices of the guarded flat rows --
        for kh in range(ksize):
            for kw in range(ksize):
                dy, dx = kh - p, kw - p
                start = guard + dy * ws + dx
                slab = flat_ref[:, start:start + m]            # (cin_p, m)
                # H-boundary taps land in the zero guards automatically;
                # only W-boundary columns need masking.
                if dx != 0:
                    slab = jnp.where(wmask[dx], slab, 0.0)
                t = kh * ksize + kw
                a_ref[t * cin_p:(t + 1) * cin_p, b * m:(b + 1) * m] = slab

    # ---- 3) single GEMM (bias folded in) + ReLU, lane-dense stores ----------
    acc = jnp.dot(w_ref[...], a_ref[...],
                  preferred_element_type=jnp.float32)          # (nf, nb*m)
    res = jnp.maximum(acc, 0.0)
    for b in range(nb):
        o_ref[b] = res[:, b * m:(b + 1) * m].astype(o_ref.dtype)


# ----------------------------------------------------------------------------
# Wrapper reproducing InterpUp_Module.forward (NCHW in / NCHW out).
# ----------------------------------------------------------------------------
def _tensorcores_per_chip() -> int:
    """Best-effort TensorCores-per-chip (v7x has 2; v5e/v6e have 1)."""
    try:
        kind = jax.devices()[0].device_kind.lower()
    except Exception:
        return 1
    return 2 if ("v7" in kind or "7x" in kind) else 1


@functools.partial(jax.jit, static_argnames=("scale", "ksize", "nb"))
def _interp_up_impl(x, weight, bias, *, scale, ksize, nb):
    n, cin, h, w = x.shape
    nf = weight.shape[0]
    hs, ws = h * scale, w * scale
    hw, m = h * w, hs * ws
    p = ksize // 2

    # Channel padding: multiple of 8 with at least one spare channel; the last
    # padded channel is set to 1.0 so the bias rides the GEMM for free.
    cin_p = ((cin + 1 + 7) // 8) * 8
    kk = ksize * ksize * cin_p

    # Lane-aligned guard zone covering p rows + p cols of zero padding.
    guard = max(128, ((p * ws + p + 127) // 128) * 128)
    flat_len = guard + m + guard
    # Static safety guards (no runtime OOB check exists for VMEM refs).
    assert guard >= p * ws + p
    assert flat_len >= guard + m + p * ws + p

    # 0/1 selection matrix (trace-time constant, h*w x m):
    #   S[r*w + c, y*ws + x] = (y // scale == r) & (x // scale == c)
    rows = np.arange(hw)
    cols = np.arange(m)
    s_np = ((cols[None, :] // ws // scale == rows[:, None] // w) &
            (cols[None, :] % ws // scale == rows[:, None] % w))
    s_mat = jnp.asarray(s_np, dtype=jnp.float32)               # (hw, m)

    # x: (n, cin, h, w) -> (n, cin_p, h*w); padded channels 0 except the last
    # one, which is all-ones (bias carrier).
    x3 = x.reshape(n, cin, hw).astype(jnp.float32)
    pad = jnp.zeros((n, cin_p - cin - 1, hw), jnp.float32)
    ones = jnp.ones((n, 1, hw), jnp.float32)
    x3 = jnp.concatenate([x3, pad, ones], axis=1)

    # Weight: (nf, cin, k, k) -> (nf, k, k, cin_p) -> (nf, k*k*cin_p), with the
    # bias written into the (centre tap, ones-channel) column.
    w_t = jnp.transpose(weight, (0, 2, 3, 1)).astype(jnp.float32)
    w_t = jnp.pad(w_t, ((0, 0), (0, 0), (0, 0), (0, cin_p - cin)))
    w2 = w_t.reshape(nf, kk)
    bias_col = (p * ksize + p) * cin_p + (cin_p - 1)
    w2 = w2.at[:, bias_col].set(bias.astype(jnp.float32))

    kern = functools.partial(_fused_kernel, nb=nb, cin_p=cin_p, ws=ws, m=m,
                             guard=guard, ksize=ksize, p=p)

    out = pl.pallas_call(
        kern,
        out_shape=jax.ShapeDtypeStruct((n, nf, m), x.dtype),
        grid_spec=pltpu.PrefetchScalarGridSpec(
            num_scalar_prefetch=0,
            grid=(n // nb,),
            in_specs=[
                pl.BlockSpec((nb, cin_p, hw), lambda i: (i, 0, 0)),
                pl.BlockSpec((hw, m), lambda i: (0, 0)),
                pl.BlockSpec((nf, kk), lambda i: (0, 0)),
            ],
            out_specs=pl.BlockSpec((nb, nf, m), lambda i: (i, 0, 0)),
            scratch_shapes=[
                pltpu.VMEM((cin_p, flat_len), jnp.float32),    # flat up rows
                pltpu.VMEM((kk, nb * m), jnp.float32),         # im2col matrix
            ],
        ),
        compiler_params=pltpu.CompilerParams(
            dimension_semantics=("parallel",),   # v7x: one image per core
        ),
    )(x3, s_mat, w2)

    # (N, nf, Hs*Ws) -> (N, nf, Hs, Ws): contiguous reshape, no transpose.
    return out.reshape(n, nf, hs, ws)


def interp_up_forward(x, weight, bias, *, scale, ksize):
    """x: (N, Cin, H, W); weight: (nf, Cin, k, k); bias: (nf,)."""
    n = x.shape[0]
    if _tensorcores_per_chip() > 1:
        nb = 1                       # v7x: grid=(N,), one image per TensorCore
    else:
        nb = min(n, 8)               # v5e/v6e: fold the batch into one step
        while n % nb:
            nb -= 1
    return _interp_up_impl(x, weight, bias, scale=scale, ksize=ksize, nb=nb)


# ----------------------------------------------------------------------------
# Pure-JAX reference (PyTorch semantics) for correctness check.
# ----------------------------------------------------------------------------
def reference_forward(x, weight, bias, *, scale, ksize):
    p = ksize // 2
    x_up = jnp.repeat(jnp.repeat(x, scale, axis=2), scale, axis=3)
    y = lax.conv_general_dilated(
        x_up, weight, window_strides=(1, 1), padding=[(p, p), (p, p)],
        dimension_numbers=("NCHW", "OIHW", "NCHW"))
    y = y + bias[None, :, None, None]
    return jnp.maximum(y, 0.0)


if __name__ == "__main__":
    scale, n_feat, nf, ksize = 2, 4, 8, 3
    N, H, W = 2, 16, 16

    key = jax.random.PRNGKey(0)
    kx, kw_, kb = jax.random.split(key, 3)
    x = jax.random.normal(kx, (N, n_feat, H, W), dtype=jnp.float32)

    # Deterministic Conv2d parameter init (uniform +-1/sqrt(fan_in)).
    fan_in = n_feat * ksize * ksize
    bound = 1.0 / math.sqrt(fan_in)
    weight = jax.random.uniform(kw_, (nf, n_feat, ksize, ksize),
                                minval=-bound, maxval=bound, dtype=jnp.float32)
    bias = jax.random.uniform(kb, (nf,), minval=-bound, maxval=bound,
                              dtype=jnp.float32)

    out = interp_up_forward(x, weight, bias, scale=scale, ksize=ksize)
    out = jax.block_until_ready(out)

    ref = reference_forward(x, weight, bias, scale=scale, ksize=ksize)
    ref = jax.block_until_ready(ref)

    assert out.shape == (N, nf, H * scale, W * scale), out.shape
    np.testing.assert_allclose(np.asarray(out), np.asarray(ref),
                               rtol=1e-3, atol=1e-3)
    print("KERNEL_OK")
</pallas_src>

<mosaic_0001>
module attributes {stable_mosaic.version = 11 : i64} {
  func.func @_fused_kernel(%arg0: i32, %arg1: memref<2x8x256xf32, #tpu.memory_space<vmem>>, %arg2: memref<256x1024xf32, #tpu.memory_space<vmem>>, %arg3: memref<8x72xf32, #tpu.memory_space<vmem>>, %arg4: memref<2x8x1024xf32, #tpu.memory_space<vmem>>, %arg5: memref<8x1280xf32, #tpu.memory_space<vmem>>, %arg6: memref<72x2048xf32, #tpu.memory_space<vmem>>) attributes {dimension_semantics = [#tpu.dimension_semantics<parallel>], iteration_bounds = array<i64: 1>, scalar_prefetch = 0 : i64, scratch_operands = 2 : i64, tpu.core_type = #tpu.core_type<tc>, window_params = [{transform_indices = @transform_0, window_bounds = array<i64: 2, 8, 256>}, {pipeline_mode = #tpu.pipeline_mode<synchronous>, transform_indices = @transform_1, window_bounds = array<i64: 256, 1024>}, {pipeline_mode = #tpu.pipeline_mode<synchronous>, transform_indices = @transform_2, window_bounds = array<i64: 8, 72>}, {transform_indices = @transform_3, window_bounds = array<i64: 2, 8, 1024>}]} {
    %cst = arith.constant 0.000000e+00 : f32
    %0 = vector.broadcast %cst : f32 to vector<8x128xf32>
    %c0 = arith.constant 0 : index
    %c0_0 = arith.constant 0 : index
    %1 = vector.load %arg5[%c0, %c0_0] : memref<8x1280xf32, #tpu.memory_space<vmem>>, vector<8x128xf32>
    tpu.vector_store %arg5[%c0, %c0_0], %0 {strides = array<i32>} : memref<8x1280xf32, #tpu.memory_space<vmem>>, vector<8x128xf32>,
    %cst_1 = arith.constant 0.000000e+00 : f32
    %2 = vector.broadcast %cst_1 : f32 to vector<8x128xf32>
    %c0_2 = arith.constant 0 : index
    %c1152 = arith.constant 1152 : index
    %3 = vector.load %arg5[%c0_2, %c1152] : memref<8x1280xf32, #tpu.memory_space<vmem>>, vector<8x128xf32>
    tpu.vector_store %arg5[%c0_2, %c1152], %2 {strides = array<i32>} : memref<8x1280xf32, #tpu.memory_space<vmem>>, vector<8x128xf32>,
    %4 = tpu.iota {dimensions = array<i32: 1>} : vector<1x1024xi32>
    %c32_i32 = arith.constant 32 : i32
    %c0_i32 = arith.constant 0 : i32
    %5 = arith.cmpi eq, %c32_i32, %c0_i32 : i32
    %c1_i32 = arith.constant 1 : i32
    %6 = arith.select %5, %c1_i32, %c32_i32 : i32
    %7 = vector.broadcast %6 : i32 to vector<1x1024xi32>
    %8 = arith.remsi %4, %7 : vector<1x1024xi32>
    %c0_i32_3 = arith.constant 0 : i32
    %9 = vector.broadcast %c0_i32_3 : i32 to vector<1x1024xi32>
    %10 = arith.cmpi ne, %8, %9 : vector<1x1024xi32>
    %c0_i32_4 = arith.constant 0 : i32
    %11 = vector.broadcast %c0_i32_4 : i32 to vector<1x1024xi32>
    %12 = arith.cmpi slt, %8, %11 : vector<1x1024xi32>
    %c0_i32_5 = arith.constant 0 : i32
    %13 = arith.cmpi slt, %6, %c0_i32_5 : i32
    %14 = vector.broadcast %13 : i1 to vector<1x1024xi1>
    %15 = vector.broadcast %14 : vector<1x1024xi1> to vector<1x1024xi1>
    %16 = arith.xori %12, %15 : vector<1x1024xi1>
    %17 = arith.andi %16, %10 : vector<1x1024xi1>
    %18 = vector.broadcast %6 : i32 to vector<1x1024xi32>
    %19 = arith.addi %8, %18 : vector<1x1024xi32>
    %20 = arith.select %17, %19, %8 : vector<1x1024xi1>, vector<1x1024xi32>
    %c1_i32_6 = arith.constant 1 : i32
    %21 = vector.broadcast %c1_i32_6 : i32 to vector<1x1024xi32>
    %22 = arith.cmpi sge, %20, %21 : vector<1x1024xi32>
    %c31_i32 = arith.constant 31 : i32
    %23 = vector.broadcast %c31_i32 : i32 to vector<1x1024xi32>
    %24 = arith.cmpi slt, %20, %23 : vector<1x1024xi32>
    %c0_7 = arith.constant 0 : index
    %c0_8 = arith.constant 0 : index
    %25 = vector.load %arg2[%c0_7, %c0_8] : memref<256x1024xf32, #tpu.memory_space<vmem>>, vector<256x1024xf32>
    %c0_9 = arith.constant 0 : index
    %c0_10 = arith.constant 0 : index
    %c0_11 = arith.constant 0 : index
    %26 = vector.load %arg1[%c0_9, %c0_10, %c0_11] : memref<2x8x256xf32, #tpu.memory_space<vmem>>, vector<1x8x256xf32>
    %27 = vector.shape_cast %26 : vector<1x8x256xf32> to vector<8x256xf32>
    %cst_12 = arith.constant dense<0.000000e+00> : vector<8x1024xf32>
    %28 = tpu.matmul %27, %25, %cst_12 {dimension_numbers = #tpu.dot_dimension_numbers<[1], [0], [0], [1], [0, 0, 1, 1], [], []>} : vector<8x256xf32>, vector<256x1024xf32>, vector<8x1024xf32> -> vector<8x1024xf32>
    %c0_13 = arith.constant 0 : index
    %c128 = arith.constant 128 : index
    %29 = vector.load %arg5[%c0_13, %c128] : memref<8x1280xf32, #tpu.memory_space<vmem>>, vector<8x1024xf32>
    tpu.vector_store %arg5[%c0_13, %c128], %28 {strides = array<i32>} : memref<8x1280xf32, #tpu.memory_space<vmem>>, vector<8x1024xf32>,
    %c0_14 = arith.constant 0 : index
    %c95 = arith.constant 95 : index
    %30 = vector.load %arg5[%c0_14, %c95] : memref<8x1280xf32, #tpu.memory_space<vmem>>, vector<8x1024xf32>
    %cst_15 = arith.constant 0.000000e+00 : f32
    %31 = vector.shape_cast %22 : vector<1x1024xi1> to vector<1x1024xi1>
    %32 = vector.broadcast %31 : vector<1x1024xi1> to vector<8x1024xi1>
    %33 = vector.broadcast %cst_15 : f32 to vector<8x1024xf32>
    %34 = arith.select %32, %30, %33 : vector<8x1024xi1>, vector<8x1024xf32>
    %c0_16 = arith.constant 0 : index
    %c0_17 = arith.constant 0 : index
    %35 = vector.load %arg6[%c0_16, %c0_17] : memref<72x2048xf32, #tpu.memory_space<vmem>>, vector<8x1024xf32>
    tpu.vector_store %arg6[%c0_16, %c0_17], %34 {strides = array<i32>} : memref<72x2048xf32, #tpu.memory_space<vmem>>, vector<8x1024xf32>,
    %c0_18 = arith.constant 0 : index
    %c96 = arith.constant 96 : index
    %36 = vector.load %arg5[%c0_18, %c96] : memref<8x1280xf32, #tpu.memory_space<vmem>>, vector<8x1024xf32>
    %c8 = arith.constant 8 : index
    %c0_19 = arith.constant 0 : index
    %37 = vector.load %arg6[%c8, %c0_19] : memref<72x2048xf32, #tpu.memory_space<vmem>>, vector<8x1024xf32>
    tpu.vector_store %arg6[%c8, %c0_19], %36 {strides = array<i32>} : memref<72x2048xf32, #tpu.memory_space<vmem>>, vector<8x1024xf32>,
    %c0_20 = arith.constant 0 : index
    %c97 = arith.constant 97 : index
    %38 = vector.load %arg5[%c0_20, %c97] : memref<8x1280xf32, #tpu.memory_space<vmem>>, vector<8x1024xf32>
    %cst_21 = arith.constant 0.000000e+00 : f32
    %39 = vector.shape_cast %24 : vector<1x1024xi1> to vector<1x1024xi1>
    %40 = vector.broadcast %39 : vector<1x1024xi1> to vector<8x1024xi1>
    %41 = vector.broadcast %cst_21 : f32 to vector<8x1024xf32>
    %42 = arith.select %40, %38, %41 : vector<8x1024xi1>, vector<8x1024xf32>
    %c16 = arith.constant 16 : index
    %c0_22 = arith.constant 0 : index
    %43 = vector.load %arg6[%c16, %c0_22] : memref<72x2048xf32, #tpu.memory_space<vmem>>, vector<8x1024xf32>
    tpu.vector_store %arg6[%c16, %c0_22], %42 {strides = array<i32>} : memref<72x2048xf32, #tpu.memory_space<vmem>>, vector<8x1024xf32>,
    %c0_23 = arith.constant 0 : index
    %c127 = arith.constant 127 : index
    %44 = vector.load %arg5[%c0_23, %c127] : memref<8x1280xf32, #tpu.memory_space<vmem>>, vector<8x1024xf32>
    %cst_24 = arith.constant 0.000000e+00 : f32
    %45 = vector.shape_cast %22 : vector<1x1024xi1> to vector<1x1024xi1>
    %46 = vector.broadcast %45 : vector<1x1024xi1> to vector<8x1024xi1>
    %47 = vector.broadcast %cst_24 : f32 to vector<8x1024xf32>
    %48 = arith.select %46, %44, %47 : vector<8x1024xi1>, vector<8x1024xf32>
    %c24 = arith.constant 24 : index
    %c0_25 = arith.constant 0 : index
    %49 = vector.load %arg6[%c24, %c0_25] : memref<72x2048xf32, #tpu.memory_space<vmem>>, vector<8x1024xf32>
    tpu.vector_store %arg6[%c24, %c0_25], %48 {strides = array<i32>} : memref<72x2048xf32, #tpu.memory_space<vmem>>, vector<8x1024xf32>,
    %c0_26 = arith.constant 0 : index
    %c128_27 = arith.constant 128 : index
    %50 = vector.load %arg5[%c0_26, %c128_27] : memref<8x1280xf32, #tpu.memory_space<vmem>>, vector<8x1024xf32>
    %c32 = arith.constant 32 : index
    %c0_28 = arith.constant 0 : index
    %51 = vector.load %arg6[%c32, %c0_28] : memref<72x2048xf32, #tpu.memory_space<vmem>>, vector<8x1024xf32>
    tpu.vector_store %arg6[%c32, %c0_28], %50 {strides = array<i32>} : memref<72x2048xf32, #tpu.memory_space<vmem>>, vector<8x1024xf32>,
    %c0_29 = arith.constant 0 : index
    %c129 = arith.constant 129 : index
    %52 = vector.load %arg5[%c0_29, %c129] : memref<8x1280xf32, #tpu.memory_space<vmem>>, vector<8x1024xf32>
    %cst_30 = arith.constant 0.000000e+00 : f32
    %53 = vector.shape_cast %24 : vector<1x1024xi1> to vector<1x1024xi1>
    %54 = vector.broadcast %53 : vector<1x1024xi1> to vector<8x1024xi1>
    %55 = vector.broadcast %cst_30 : f32 to vector<8x1024xf32>
    %56 = arith.select %54, %52, %55 : vector<8x1024xi1>, vector<8x1024xf32>
    %c40 = arith.constant 40 : index
    %c0_31 = arith.constant 0 : index
    %57 = vector.load %arg6[%c40, %c0_31] : memref<72x2048xf32, #tpu.memory_space<vmem>>, vector<8x1024xf32>
    tpu.vector_store %arg6[%c40, %c0_31], %56 {strides = array<i32>} : memref<72x2048xf32, #tpu.memory_space<vmem>>, vector<8x1024xf32>,
    %c0_32 = arith.constant 0 : index
    %c159 = arith.constant 159 : index
    %58 = vector.load %arg5[%c0_32, %c159] : memref<8x1280xf32, #tpu.memory_space<vmem>>, vector<8x1024xf32>
    %cst_33 = arith.constant 0.000000e+00 : f32
    %59 = vector.shape_cast %22 : vector<1x1024xi1> to vector<1x1024xi1>
    %60 = vector.broadcast %59 : vector<1x1024xi1> to vector<8x1024xi1>
    %61 = vector.broadcast %cst_33 : f32 to vector<8x1024xf32>
    %62 = arith.select %60, %58, %61 : vector<8x1024xi1>, vector<8x1024xf32>
    %c48 = arith.constant 48 : index
    %c0_34 = arith.constant 0 : index
    %63 = vector.load %arg6[%c48, %c0_34] : memref<72x2048xf32, #tpu.memory_space<vmem>>, vector<8x1024xf32>
    tpu.vector_store %arg6[%c48, %c0_34], %62 {strides = array<i32>} : memref<72x2048xf32, #tpu.memory_space<vmem>>, vector<8x1024xf32>,
    %c0_35 = arith.constant 0 : index
    %c160 = arith.constant 160 : index
    %64 = vector.load %arg5[%c0_35, %c160] : memref<8x1280xf32, #tpu.memory_space<vmem>>, vector<8x1024xf32>
    %c56 = arith.constant 56 : index
    %c0_36 = arith.constant 0 : index
    %65 = vector.load %arg6[%c56, %c0_36] : memref<72x2048xf32, #tpu.memory_space<vmem>>, vector<8x1024xf32>
    tpu.vector_store %arg6[%c56, %c0_36], %64 {strides = array<i32>} : memref<72x2048xf32, #tpu.memory_space<vmem>>, vector<8x1024xf32>,
    %c0_37 = arith.constant 0 : index
    %c161 = arith.constant 161 : index
    %66 = vector.load %arg5[%c0_37, %c161] : memref<8x1280xf32, #tpu.memory_space<vmem>>, vector<8x1024xf32>
    %cst_38 = arith.constant 0.000000e+00 : f32
    %67 = vector.shape_cast %24 : vector<1x1024xi1> to vector<1x1024xi1>
    %68 = vector.broadcast %67 : vector<1x1024xi1> to vector<8x1024xi1>
    %69 = vector.broadcast %cst_38 : f32 to vector<8x1024xf32>
    %70 = arith.select %68, %66, %69 : vector<8x1024xi1>, vector<8x1024xf32>
    %c64 = arith.constant 64 : index
    %c0_39 = arith.constant 0 : index
    %71 = vector.load %arg6[%c64, %c0_39] : memref<72x2048xf32, #tpu.memory_space<vmem>>, vector<8x1024xf32>
    tpu.vector_store %arg6[%c64, %c0_39], %70 {strides = array<i32>} : memref<72x2048xf32, #tpu.memory_space<vmem>>, vector<8x1024xf32>,
    %c1 = arith.constant 1 : index
    %c0_40 = arith.constant 0 : index
    %c0_41 = arith.constant 0 : index
    %72 = vector.load %arg1[%c1, %c0_40, %c0_41] : memref<2x8x256xf32, #tpu.memory_space<vmem>>, vector<1x8x256xf32>
    %73 = vector.shape_cast %72 : vector<1x8x256xf32> to vector<8x256xf32>
    %cst_42 = arith.constant dense<0.000000e+00> : vector<8x1024xf32>
    %74 = tpu.matmul %73, %25, %cst_42 {dimension_numbers = #tpu.dot_dimension_numbers<[1], [0], [0], [1], [0, 0, 1, 1], [], []>} : vector<8x256xf32>, vector<256x1024xf32>, vector<8x1024xf32> -> vector<8x1024xf32>
    %c0_43 = arith.constant 0 : index
    %c128_44 = arith.constant 128 : index
    %75 = vector.load %arg5[%c0_43, %c128_44] : memref<8x1280xf32, #tpu.memory_space<vmem>>, vector<8x1024xf32>
    tpu.vector_store %arg5[%c0_43, %c128_44], %74 {strides = array<i32>} : memref<8x1280xf32, #tpu.memory_space<vmem>>, vector<8x1024xf32>,
    %c0_45 = arith.constant 0 : index
    %c95_46 = arith.constant 95 : index
    %76 = vector.load %arg5[%c0_45, %c95_46] : memref<8x1280xf32, #tpu.memory_space<vmem>>, vector<8x1024xf32>
    %cst_47 = arith.constant 0.000000e+00 : f32
    %77 = vector.shape_cast %22 : vector<1x1024xi1> to vector<1x1024xi1>
    %78 = vector.broadcast %77 : vector<1x1024xi1> to vector<8x1024xi1>
    %79 = vector.broadcast %cst_47 : f32 to vector<8x1024xf32>
    %80 = arith.select %78, %76, %79 : vector<8x1024xi1>, vector<8x1024xf32>
    %c0_48 = arith.constant 0 : index
    %c1024 = arith.constant 1024 : index
    %81 = vector.load %arg6[%c0_48, %c1024] : memref<72x2048xf32, #tpu.memory_space<vmem>>, vector<8x1024xf32>
    tpu.vector_store %arg6[%c0_48, %c1024], %80 {strides = array<i32>} : memref<72x2048xf32, #tpu.memory_space<vmem>>, vector<8x1024xf32>,
    %c0_49 = arith.constant 0 : index
    %c96_50 = arith.constant 96 : index
    %82 = vector.load %arg5[%c0_49, %c96_50] : memref<8x1280xf32, #tpu.memory_space<vmem>>, vector<8x1024xf32>
    %c8_51 = arith.constant 8 : index
    %c1024_52 = arith.constant 1024 : index
    %83 = vector.load %arg6[%c8_51, %c1024_52] : memref<72x2048xf32, #tpu.memory_space<vmem>>, vector<8x1024xf32>
    tpu.vector_store %arg6[%c8_51, %c1024_52], %82 {strides = array<i32>} : memref<72x2048xf32, #tpu.memory_space<vmem>>, vector<8x1024xf32>,
    %c0_53 = arith.constant 0 : index
    %c97_54 = arith.constant 97 : index
    %84 = vector.load %arg5[%c0_53, %c97_54] : memref<8x1280xf32, #tpu.memory_space<vmem>>, vector<8x1024xf32>
    %cst_55 = arith.constant 0.000000e+00 : f32
    %85 = vector.shape_cast %24 : vector<1x1024xi1> to vector<1x1024xi1>
    %86 = vector.broadcast %85 : vector<1x1024xi1> to vector<8x1024xi1>
    %87 = vector.broadcast %cst_55 : f32 to vector<8x1024xf32>
    %88 = arith.select %86, %84, %87 : vector<8x1024xi1>, vector<8x1024xf32>
    %c16_56 = arith.constant 16 : index
    %c1024_57 = arith.constant 1024 : index
    %89 = vector.load %arg6[%c16_56, %c1024_57] : memref<72x2048xf32, #tpu.memory_space<vmem>>, vector<8x1024xf32>
    tpu.vector_store %arg6[%c16_56, %c1024_57], %88 {strides = array<i32>} : memref<72x2048xf32, #tpu.memory_space<vmem>>, vector<8x1024xf32>,
    %c0_58 = arith.constant 0 : index
    %c127_59 = arith.constant 127 : index
    %90 = vector.load %arg5[%c0_58, %c127_59] : memref<8x1280xf32, #tpu.memory_space<vmem>>, vector<8x1024xf32>
    %cst_60 = arith.constant 0.000000e+00 : f32
    %91 = vector.shape_cast %22 : vector<1x1024xi1> to vector<1x1024xi1>
    %92 = vector.broadcast %91 : vector<1x1024xi1> to vector<8x1024xi1>
    %93 = vector.broadcast %cst_60 : f32 to vector<8x1024xf32>
    %94 = arith.select %92, %90, %93 : vector<8x1024xi1>, vector<8x1024xf32>
    %c24_61 = arith.constant 24 : index
    %c1024_62 = arith.constant 1024 : index
    %95 = vector.load %arg6[%c24_61, %c1024_62] : memref<72x2048xf32, #tpu.memory_space<vmem>>, vector<8x1024xf32>
    tpu.vector_store %arg6[%c24_61, %c1024_62], %94 {strides = array<i32>} : memref<72x2048xf32, #tpu.memory_space<vmem>>, vector<8x1024xf32>,
    %c0_63 = arith.constant 0 : index
    %c128_64 = arith.constant 128 : index
    %96 = vector.load %arg5[%c0_63, %c128_64] : memref<8x1280xf32, #tpu.memory_space<vmem>>, vector<8x1024xf32>
    %c32_65 = arith.constant 32 : index
    %c1024_66 = arith.constant 1024 : index
    %97 = vector.load %arg6[%c32_65, %c1024_66] : memref<72x2048xf32, #tpu.memory_space<vmem>>, vector<8x1024xf32>
    tpu.vector_store %arg6[%c32_65, %c1024_66], %96 {strides = array<i32>} : memref<72x2048xf32, #tpu.memory_space<vmem>>, vector<8x1024xf32>,
    %c0_67 = arith.constant 0 : index
    %c129_68 = arith.constant 129 : index
    %98 = vector.load %arg5[%c0_67, %c129_68] : memref<8x1280xf32, #tpu.memory_space<vmem>>, vector<8x1024xf32>
    %cst_69 = arith.constant 0.000000e+00 : f32
    %99 = vector.shape_cast %24 : vector<1x1024xi1> to vector<1x1024xi1>
    %100 = vector.broadcast %99 : vector<1x1024xi1> to vector<8x1024xi1>
    %101 = vector.broadcast %cst_69 : f32 to vector<8x1024xf32>
    %102 = arith.select %100, %98, %101 : vector<8x1024xi1>, vector<8x1024xf32>
    %c40_70 = arith.constant 40 : index
    %c1024_71 = arith.constant 1024 : index
    %103 = vector.load %arg6[%c40_70, %c1024_71] : memref<72x2048xf32, #tpu.memory_space<vmem>>, vector<8x1024xf32>
    tpu.vector_store %arg6[%c40_70, %c1024_71], %102 {strides = array<i32>} : memref<72x2048xf32, #tpu.memory_space<vmem>>, vector<8x1024xf32>,
    %c0_72 = arith.constant 0 : index
    %c159_73 = arith.constant 159 : index
    %104 = vector.load %arg5[%c0_72, %c159_73] : memref<8x1280xf32, #tpu.memory_space<vmem>>, vector<8x1024xf32>
    %cst_74 = arith.constant 0.000000e+00 : f32
    %105 = vector.shape_cast %22 : vector<1x1024xi1> to vector<1x1024xi1>
    %106 = vector.broadcast %105 : vector<1x1024xi1> to vector<8x1024xi1>
    %107 = vector.broadcast %cst_74 : f32 to vector<8x1024xf32>
    %108 = arith.select %106, %104, %107 : vector<8x1024xi1>, vector<8x1024xf32>
    %c48_75 = arith.constant 48 : index
    %c1024_76 = arith.constant 1024 : index
    %109 = vector.load %arg6[%c48_75, %c1024_76] : memref<72x2048xf32, #tpu.memory_space<vmem>>, vector<8x1024xf32>
    tpu.vector_store %arg6[%c48_75, %c1024_76], %108 {strides = array<i32>} : memref<72x2048xf32, #tpu.memory_space<vmem>>, vector<8x1024xf32>,
    %c0_77 = arith.constant 0 : index
    %c160_78 = arith.constant 160 : index
    %110 = vector.load %arg5[%c0_77, %c160_78] : memref<8x1280xf32, #tpu.memory_space<vmem>>, vector<8x1024xf32>
    %c56_79 = arith.constant 56 : index
    %c1024_80 = arith.constant 1024 : index
    %111 = vector.load %arg6[%c56_79, %c1024_80] : memref<72x2048xf32, #tpu.memory_space<vmem>>, vector<8x1024xf32>
    tpu.vector_store %arg6[%c56_79, %c1024_80], %110 {strides = array<i32>} : memref<72x2048xf32, #tpu.memory_space<vmem>>, vector<8x1024xf32>,
    %c0_81 = arith.constant 0 : index
    %c161_82 = arith.constant 161 : index
    %112 = vector.load %arg5[%c0_81, %c161_82] : memref<8x1280xf32, #tpu.memory_space<vmem>>, vector<8x1024xf32>
    %cst_83 = arith.constant 0.000000e+00 : f32
    %113 = vector.shape_cast %24 : vector<1x1024xi1> to vector<1x1024xi1>
    %114 = vector.broadcast %113 : vector<1x1024xi1> to vector<8x1024xi1>
    %115 = vector.broadcast %cst_83 : f32 to vector<8x1024xf32>
    %116 = arith.select %114, %112, %115 : vector<8x1024xi1>, vector<8x1024xf32>
    %c64_84 = arith.constant 64 : index
    %c1024_85 = arith.constant 1024 : index
    %117 = vector.load %arg6[%c64_84, %c1024_85] : memref<72x2048xf32, #tpu.memory_space<vmem>>, vector<8x1024xf32>
    tpu.vector_store %arg6[%c64_84, %c1024_85], %116 {strides = array<i32>} : memref<72x2048xf32, #tpu.memory_space<vmem>>, vector<8x1024xf32>,
    %c0_86 = arith.constant 0 : index
    %c0_87 = arith.constant 0 : index
    %118 = vector.load %arg3[%c0_86, %c0_87] : memref<8x72xf32, #tpu.memory_space<vmem>>, vector<8x72xf32>
    %c0_88 = arith.constant 0 : index
    %c0_89 = arith.constant 0 : index
    %119 = vector.load %arg6[%c0_88, %c0_89] : memref<72x2048xf32, #tpu.memory_space<vmem>>, vector<72x2048xf32>
    %cst_90 = arith.constant dense<0.000000e+00> : vector<8x2048xf32>
    %120 = tpu.matmul %118, %119, %cst_90 {dimension_numbers = #tpu.dot_dimension_numbers<[1], [0], [0], [1], [0, 0, 1, 1], [], []>} : vector<8x72xf32>, vector<72x2048xf32>, vector<8x2048xf32> -> vector<8x2048xf32>
    %cst_91 = arith.constant 0.000000e+00 : f32
    %121 = vector.broadcast %cst_91 : f32 to vector<8x2048xf32>
    %122 = arith.maximumf %120, %121 : vector<8x2048xf32>
    %123 = vector.extract_strided_slice %122 {offsets = [0, 0], sizes = [8, 1024], strides = [1, 1]} : vector<8x2048xf32> to vector<8x1024xf32>
    %c0_92 = arith.constant 0 : index
    %c0_93 = arith.constant 0 : index
    %c0_94 = arith.constant 0 : index
    %124 = vector.load %arg4[%c0_92, %c0_93, %c0_94] : memref<2x8x1024xf32, #tpu.memory_space<vmem>>, vector<1x8x1024xf32>
    %125 = vector.shape_cast %124 : vector<1x8x1024xf32> to vector<8x1024xf32>
    %126 = vector.shape_cast %123 : vector<8x1024xf32> to vector<1x8x1024xf32>
    tpu.vector_store %arg4[%c0_92, %c0_93, %c0_94], %126 {strides = array<i32>} : memref<2x8x1024xf32, #tpu.memory_space<vmem>>, vector<1x8x1024xf32>,
    %127 = vector.extract_strided_slice %122 {offsets = [0, 1024], sizes = [8, 1024], strides = [1, 1]} : vector<8x2048xf32> to vector<8x1024xf32>
    %c1_95 = arith.constant 1 : index
    %c0_96 = arith.constant 0 : index
    %c0_97 = arith.constant 0 : index
    %128 = vector.load %arg4[%c1_95, %c0_96, %c0_97] : memref<2x8x1024xf32, #tpu.memory_space<vmem>>, vector<1x8x1024xf32>
    %129 = vector.shape_cast %128 : vector<1x8x1024xf32> to vector<8x1024xf32>
    %130 = vector.shape_cast %127 : vector<8x1024xf32> to vector<1x8x1024xf32>
    tpu.vector_store %arg4[%c1_95, %c0_96, %c0_97], %130 {strides = array<i32>} : memref<2x8x1024xf32, #tpu.memory_space<vmem>>, vector<1x8x1024xf32>,
    return
  }
  func.func @transform_0(%arg0: i32) -> (i32, i32, i32) {
    %c0_i32 = arith.constant 0 : i32
    %c0_i32_0 = arith.constant 0 : i32
    %c0_i32_1 = arith.constant 0 : i32
    return %arg0, %c0_i32, %c0_i32_0 : i32, i32, i32
  }
  func.func @transform_1(%arg0: i32) -> (i32, i32) {
    %c0_i32 = arith.constant 0 : i32
    %c0_i32_0 = arith.constant 0 : i32
    %c0_i32_1 = arith.constant 0 : i32
    return %c0_i32, %c0_i32_0 : i32, i32
  }
  func.func @transform_2(%arg0: i32) -> (i32, i32) {
    %c0_i32 = arith.constant 0 : i32
    %c0_i32_0 = arith.constant 0 : i32
    %c0_i32_1 = arith.constant 0 : i32
    return %c0_i32, %c0_i32_0 : i32, i32
  }
  func.func @transform_3(%arg0: i32) -> (i32, i32, i32) {
    %c0_i32 = arith.constant 0 : i32
    %c0_i32_0 = arith.constant 0 : i32
    %c0_i32_1 = arith.constant 0 : i32
    return %arg0, %c0_i32, %c0_i32_0 : i32, i32, i32
  }
}

</mosaic_0001>

<bundles_post_ra>
// kernel: _interp_up_impl.1
= control target key start
LH: loop header
LB: loop body
LE: loop exit
PB: predicated region body
PF: predicated region fallthrough
CT: control target
= control target key end

     0   :  { %8 = vsyncpa [#allocation5], 0  ;;  %s4049_s12 = smov [#allocation4]   ;;  %s5847_s0 = inlined_call_operand.vmem [shape: f32[2,8,256], index: 0, kind: input, shape index: {}]   ;;  %s5848_s1 = inlined_call_operand.hbm [shape: f32[256,1024], index: 1, kind: input, shape index: {}]   ;;  %s5849_s2 = inlined_call_operand.vmem [shape: f32[8,72], index: 2, kind: input, shape index: {}]   ;;  %s5850_s3 = inlined_call_operand.vmem [shape: f32[2,8,1024], index: 3, kind: output, shape index: {}]  }
   0x1   :  { %s16_s13 = sshll.u32 %s4049_s12, 4  ;;  %s4025_s16 = scalar_lea.hbm %s5848_s1, 32768  ;;  %s17_s13 = int_to_ptr.vmem [resolvable:$true] %s16_s13 }
   0x2   :  { %p4026_p0 = scmp.ne.s32.totalorder %s5848_s1, %s4025_s16  ;;  %p4029_p1 = scmp.lt.u32.totalorder %s4025_s16, %s5848_s1 }
   0x4   :  { %p4031_p2 = pnand %p4029_p1, %p4026_p0 }
   0x6   :  { %4034 = shalt.err (!%p4031_p2)
}
   0x7   :  { %s4035_s21 = scalar_lea.vmem %s17_s13, 32768  ;;  %p4040_p4 = scmp.lt.s32.totalorder %s17_s13, %s17_s13 }
   0x8   :  { %p4036_p3 = scmp.ne.s32.totalorder %s17_s13, %s4035_s21  ;;  %p4041_p5 = scmp.lt.s32.totalorder %s4035_s21, %s4035_s21 }
   0xa   :  { %p4042_p6 = por %p4041_p5, %p4040_p4 }
   0xc   :  { %p4043_p7 = pnand %p4042_p6, %p4036_p3 }
   0xe   :  { %4046 = shalt.err (!%p4043_p7)
}
   0xf   :  { %s4050_s22 = smov 1024   ;;  %s4051_s23 = smov 64  }
  0x10   :  { %22 = dma.hbm_to_vmem [thread:$0]  %s5848_s1, 32768, %s17_s13, [#allocation5], %s4050_s22, %s4050_s22, %s4051_s23  }
  0x11   :  { %4047 = dma.done.wait [#allocation5], 32768  }
  0x12   :  { %4048 = vsyncadd [#allocation5], 4294934528  ;;  %v152_v0 = vld [vmem:[#allocation4 + $0x8] sm:$0xff]  ;;  %v154_v2 = vld [vmem:[#allocation4 + $0x18] sm:$0xff]  ;;  %s4053_s4 = smov 95   ;;  %s4055_s7 = smov 33  }
  0x13   :  { %v160_v1 = vld [vmem:[#allocation4 + $0x48] sm:$0xff]  ;;  %v162_v4 = vld [vmem:[#allocation4 + $0x58] sm:$0xff]  ;;  %v151_v5 = vld [vmem:[#allocation4] sm:$0xff]  ;;  %s4056_s8 = smov 31   ;;  %s4057_s9 = smov 1   ;;  %vm5930_vm0 = vcmask 261120  }
  0x14   :  { %v4094_v3 = vpack.c.bf16 %v160_v1, %v152_v0  ;;  %v159_v6 = vld [vmem:[#allocation4 + $0x40] sm:$0xff]  ;;  %v4096_v7 = vpack.c.bf16 %v162_v4, %v154_v2  ;;  %v153_v9 = vld [vmem:[#allocation4 + $0x10] sm:$0xff]  ;;  %v168_v11 = vld [vmem:[#allocation4 + $0x88] sm:$0xff]  ;;  %s4058_s10 = smov 97   ;;  %s4059_s11 = smov 127   ;;  %vm5929_vm1 = vcmask 269312  }
  0x15   :  { %v4098_v8 = vpack.c.bf16 %v159_v6, %v151_v5  ;;  %v161_v10 = vld [vmem:[#allocation4 + $0x50] sm:$0xff]  ;;  %v176_v13 = vld [vmem:[#allocation4 + $0xc8] sm:$0xff]  ;;  %v170_v14 = vld [vmem:[#allocation4 + $0x98] sm:$0xff]  ;;  %s4060_s12 = smov 96   ;;  %vm5931_vm3 = vmmov 1   ;;  %vm5928_vm9 = vcmask 252928  }
  0x16   :  { %2994 = vmatprep.subr.bf16.mxu0 %v4094_v3  ;;  %v4101_v12 = vpack.c.bf16 %v161_v10, %v153_v9  ;;  %v178_v15 = vld [vmem:[#allocation4 + $0xd8] sm:$0xff]  ;;  %3058 = vmatprep.subr.bf16.mxu1 %v4096_v7  ;;  %v4105_v16 = vpack.c.bf16 %v176_v13, %v168_v11  ;;  %v167_v18 = vld [vmem:[#allocation4 + $0x80] sm:$0xff]  ;;  %v169_v20 = vld [vmem:[#allocation4 + $0x90] sm:$0xff]  ;;  %vm5934_vm10 = vcmask 7168  }
  0x17   :  { %2996 = vmatpush1.bf16.msra.mxu0 %v4098_v8  ;;  %v4107_v17 = vpack.c.bf16 %v178_v15, %v170_v14  ;;  %v175_v19 = vld [vmem:[#allocation4 + $0xc0] sm:$0xff]  ;;  %v177_v22 = vld [vmem:[#allocation4 + $0xd0] sm:$0xff]  ;;  %v184_v23 = vld [vmem:[#allocation4 + $0x108] sm:$0xff] }
  0x18   :  { %3060 = vmatpush1.bf16.msra.mxu1 %v4101_v12  ;;  %v4110_v21 = vpack.c.bf16 %v175_v19, %v167_v18  ;;  %v192_v24 = vld [vmem:[#allocation4 + $0x148] sm:$0xff]  ;;  %2998 = vmatprep.subr.bf16.mxu0 %v4105_v16  ;;  %v4114_v25 = vpack.c.bf16 %v177_v22, %v169_v20  ;;  %v186_v27 = vld [vmem:[#allocation4 + $0x118] sm:$0xff]  ;;  %v183_v29 = vld [vmem:[#allocation4 + $0x100] sm:$0xff] }
  0x19   :  { %3062 = vmatprep.subr.bf16.mxu1 %v4107_v17  ;;  %v4116_v26 = vpack.c.bf16 %v192_v24, %v184_v23  ;;  %v194_v28 = vld [vmem:[#allocation4 + $0x158] sm:$0xff]  ;;  %v191_v31 = vld [vmem:[#allocation4 + $0x140] sm:$0xff]  ;;  %v185_v32 = vld [vmem:[#allocation4 + $0x110] sm:$0xff] }
  0x1a   :  { %v4118_v30 = vpack.c.bf16 %v194_v28, %v186_v27  ;;  %v193_v33 = vld [vmem:[#allocation4 + $0x150] sm:$0xff]  ;;  %v4121_v34 = vpack.c.bf16 %v191_v31, %v183_v29  ;;  %v200_v35 = vld [vmem:[#allocation4 + $0x188] sm:$0xff]  ;;  %v202_v37 = vld [vmem:[#allocation4 + $0x198] sm:$0xff] }
  0x1b   :  { %3000 = vmatpush1.bf16.msra.mxu0 %v4110_v21  ;;  %v208_v36 = vld [vmem:[#allocation4 + $0x1c8] sm:$0xff]  ;;  %v4125_v38 = vpack.c.bf16 %v193_v33, %v185_v32  ;;  %v210_v40 = vld [vmem:[#allocation4 + $0x1d8] sm:$0xff]  ;;  %v199_v41 = vld [vmem:[#allocation4 + $0x180] sm:$0xff] }
  0x1c   :  { %3064 = vmatpush1.bf16.msra.mxu1 %v4114_v25  ;;  %3002 = vmatprep.subr.bf16.mxu0 %v4116_v26  ;;  %v4127_v39 = vpack.c.bf16 %v208_v36, %v200_v35  ;;  %v207_v42 = vld [vmem:[#allocation4 + $0x1c0] sm:$0xff]  ;;  %v4130_v43 = vpack.c.bf16 %v210_v40, %v202_v37  ;;  %v201_v44 = vld [vmem:[#allocation4 + $0x190] sm:$0xff]  ;;  %v216_v46 = vld [vmem:[#allocation4 + $0x208] sm:$0xff] }
  0x1d   :  { %3066 = vmatprep.subr.bf16.mxu1 %v4118_v30  ;;  %v209_v45 = vld [vmem:[#allocation4 + $0x1d0] sm:$0xff]  ;;  %v224_v47 = vld [vmem:[#allocation4 + $0x248] sm:$0xff]  ;;  %v218_v48 = vld [vmem:[#allocation4 + $0x218] sm:$0xff]  ;;  %v4133_v50 = vpack.c.bf16 %v207_v42, %v199_v41 }
  0x1e   :  { %v226_v49 = vld [vmem:[#allocation4 + $0x258] sm:$0xff]  ;;  %v4137_v51 = vpack.c.bf16 %v209_v45, %v201_v44  ;;  %v4139_v52 = vpack.c.bf16 %v224_v47, %v216_v46  ;;  %v215_v53 = vld [vmem:[#allocation4 + $0x200] sm:$0xff]  ;;  %v217_v55 = vld [vmem:[#allocation4 + $0x210] sm:$0xff] }
  0x1f   :  { %3004 = vmatpush1.bf16.msra.mxu0 %v4121_v34  ;;  %v223_v54 = vld [vmem:[#allocation4 + $0x240] sm:$0xff]  ;;  %v4142_v56 = vpack.c.bf16 %v226_v49, %v218_v48  ;;  %v225_v57 = vld [vmem:[#allocation4 + $0x250] sm:$0xff]  ;;  %v232_v58 = vld [vmem:[#allocation4 + $0x288] sm:$0xff] }
  0x20   :  { %3068 = vmatpush1.bf16.msra.mxu1 %v4125_v38  ;;  %3006 = vmatprep.subr.bf16.mxu0 %v4127_v39  ;;  %v240_v59 = vld [vmem:[#allocation4 + $0x2c8] sm:$0xff]  ;;  %v234_v60 = vld [vmem:[#allocation4 + $0x298] sm:$0xff]  ;;  %v4145_v62 = vpack.c.bf16 %v223_v54, %v215_v53  ;;  %v4149_v63 = vpack.c.bf16 %v225_v57, %v217_v55  ;;  %v231_v1 = vld [vmem:[#allocation4 + $0x280] sm:$0xff] }
  0x21   :  { %3070 = vmatprep.subr.bf16.mxu1 %v4130_v43  ;;  %v242_v61 = vld [vmem:[#allocation4 + $0x2d8] sm:$0xff]  ;;  %v4151_v0 = vpack.c.bf16 %v240_v59, %v232_v58  ;;  %v239_v2 = vld [vmem:[#allocation4 + $0x2c0] sm:$0xff]  ;;  %v233_v4 = vld [vmem:[#allocation4 + $0x290] sm:$0xff] }
  0x22   :  { %v4154_v5 = vpack.c.bf16 %v242_v61, %v234_v60  ;;  %v241_v6 = vld [vmem:[#allocation4 + $0x2d0] sm:$0xff]  ;;  %v248_v9 = vld [vmem:[#allocation4 + $0x308] sm:$0xff]  ;;  %v250_v11 = vld [vmem:[#allocation4 + $0x318] sm:$0xff]  ;;  %v4157_v14 = vpack.c.bf16 %v239_v2, %v231_v1 }
  0x23   :  { %3008 = vmatpush1.bf16.msra.mxu0 %v4133_v50  ;;  %v256_v10 = vld [vmem:[#allocation4 + $0x348] sm:$0xff]  ;;  %v258_v13 = vld [vmem:[#allocation4 + $0x358] sm:$0xff]  ;;  %v4161_v15 = vpack.c.bf16 %v241_v6, %v233_v4  ;;  %v247_v19 = vld [vmem:[#allocation4 + $0x300] sm:$0xff] }
  0x24   :  { %3072 = vmatpush1.bf16.msra.mxu1 %v4137_v51  ;;  %3010 = vmatprep.subr.bf16.mxu0 %v4139_v52  ;;  %v4163_v18 = vpack.c.bf16 %v256_v10, %v248_v9  ;;  %v255_v20 = vld [vmem:[#allocation4 + $0x340] sm:$0xff]  ;;  %v249_v22 = vld [vmem:[#allocation4 + $0x310] sm:$0xff]  ;;  %v4166_v23 = vpack.c.bf16 %v258_v13, %v250_v11  ;;  %v264_v27 = vld [vmem:[#allocation4 + $0x388] sm:$0xff] }
  0x25   :  { %3074 = vmatprep.subr.bf16.mxu1 %v4142_v56  ;;  %v257_v24 = vld [vmem:[#allocation4 + $0x350] sm:$0xff]  ;;  %v272_v28 = vld [vmem:[#allocation4 + $0x3c8] sm:$0xff]  ;;  %v266_v29 = vld [vmem:[#allocation4 + $0x398] sm:$0xff]  ;;  %v4169_v32 = vpack.c.bf16 %v255_v20, %v247_v19 }
  0x26   :  { %v274_v31 = vld [vmem:[#allocation4 + $0x3d8] sm:$0xff]  ;;  %v4173_v33 = vpack.c.bf16 %v257_v24, %v249_v22  ;;  %v4175_v35 = vpack.c.bf16 %v272_v28, %v264_v27  ;;  %v263_v36 = vld [vmem:[#allocation4 + $0x380] sm:$0xff]  ;;  %v265_v40 = vld [vmem:[#allocation4 + $0x390] sm:$0xff] }
  0x27   :  { %3012 = vmatpush1.bf16.msra.mxu0 %v4145_v62  ;;  %v271_v37 = vld [vmem:[#allocation4 + $0x3c0] sm:$0xff]  ;;  %v4178_v41 = vpack.c.bf16 %v274_v31, %v266_v29  ;;  %v273_v42 = vld [vmem:[#allocation4 + $0x3d0] sm:$0xff]  ;;  %v280_v44 = vld [vmem:[#allocation4 + $0x408] sm:$0xff] }
  0x28   :  { %3076 = vmatpush1.bf16.msra.mxu1 %v4149_v63  ;;  %3014 = vmatprep.subr.bf16.mxu0 %v4151_v0  ;;  %v288_v45 = vld [vmem:[#allocation4 + $0x448] sm:$0xff]  ;;  %v282_v46 = vld [vmem:[#allocation4 + $0x418] sm:$0xff]  ;;  %v4181_v48 = vpack.c.bf16 %v271_v37, %v263_v36  ;;  %v4185_v49 = vpack.c.bf16 %v273_v42, %v265_v40  ;;  %v279_v54 = vld [vmem:[#allocation4 + $0x400] sm:$0xff] }
  0x29   :  { %3078 = vmatprep.subr.bf16.mxu1 %v4154_v5  ;;  %v290_v47 = vld [vmem:[#allocation4 + $0x458] sm:$0xff]  ;;  %v4187_v53 = vpack.c.bf16 %v288_v45, %v280_v44  ;;  %v287_v55 = vld [vmem:[#allocation4 + $0x440] sm:$0xff]  ;;  %v281_v57 = vld [vmem:[#allocation4 + $0x410] sm:$0xff] }
  0x2a   :  { %v4190_v58 = vpack.c.bf16 %v290_v47, %v282_v46  ;;  %v289_v59 = vld [vmem:[#allocation4 + $0x450] sm:$0xff]  ;;  %v296_v60 = vld [vmem:[#allocation4 + $0x488] sm:$0xff]  ;;  %v298_v1 = vld [vmem:[#allocation4 + $0x498] sm:$0xff]  ;;  %v4193_v4 = vpack.c.bf16 %v287_v55, %v279_v54 }
  0x2b   :  { %3016 = vmatpush1.bf16.msra.mxu0 %v4157_v14  ;;  %v304_v61 = vld [vmem:[#allocation4 + $0x4c8] sm:$0xff]  ;;  %v306_v2 = vld [vmem:[#allocation4 + $0x4d8] sm:$0xff]  ;;  %v4197_v6 = vpack.c.bf16 %v289_v59, %v281_v57  ;;  %v295_v10 = vld [vmem:[#allocation4 + $0x480] sm:$0xff] }
  0x2c   :  { %3080 = vmatpush1.bf16.msra.mxu1 %v4161_v15  ;;  %3018 = vmatprep.subr.bf16.mxu0 %v4163_v18  ;;  %v4199_v9 = vpack.c.bf16 %v304_v61, %v296_v60  ;;  %v303_v11 = vld [vmem:[#allocation4 + $0x4c0] sm:$0xff]  ;;  %v297_v13 = vld [vmem:[#allocation4 + $0x490] sm:$0xff]  ;;  %v4202_v19 = vpack.c.bf16 %v306_v2, %v298_v1  ;;  %v312_v22 = vld [vmem:[#allocation4 + $0x508] sm:$0xff] }
  0x2d   :  { %3082 = vmatprep.subr.bf16.mxu1 %v4166_v23  ;;  %v305_v20 = vld [vmem:[#allocation4 + $0x4d0] sm:$0xff]  ;;  %v320_v24 = vld [vmem:[#allocation4 + $0x548] sm:$0xff]  ;;  %v314_v27 = vld [vmem:[#allocation4 + $0x518] sm:$0xff]  ;;  %v4205_v29 = vpack.c.bf16 %v303_v11, %v295_v10 }
  0x2e   :  { %v322_v28 = vld [vmem:[#allocation4 + $0x558] sm:$0xff]  ;;  %v4209_v31 = vpack.c.bf16 %v305_v20, %v297_v13  ;;  %v4211_v36 = vpack.c.bf16 %v320_v24, %v312_v22  ;;  %v311_v37 = vld [vmem:[#allocation4 + $0x500] sm:$0xff]  ;;  %v313_v42 = vld [vmem:[#allocation4 + $0x510] sm:$0xff] }
  0x2f   :  { %3020 = vmatpush1.bf16.msra.mxu0 %v4169_v32  ;;  %v319_v40 = vld [vmem:[#allocation4 + $0x540] sm:$0xff]  ;;  %v4214_v44 = vpack.c.bf16 %v322_v28, %v314_v27  ;;  %v321_v45 = vld [vmem:[#allocation4 + $0x550] sm:$0xff]  ;;  %v328_v46 = vld [vmem:[#allocation4 + $0x588] sm:$0xff] }
  0x30   :  { %3084 = vmatpush1.bf16.msra.mxu1 %v4173_v33  ;;  %3022 = vmatprep.subr.bf16.mxu0 %v4175_v35  ;;  %v336_v47 = vld [vmem:[#allocation4 + $0x5c8] sm:$0xff]  ;;  %v330_v54 = vld [vmem:[#allocation4 + $0x598] sm:$0xff]  ;;  %v4217_v57 = vpack.c.bf16 %v319_v40, %v311_v37  ;;  %v327_v59 = vld [vmem:[#allocation4 + $0x580] sm:$0xff]  ;;  %v4221_v60 = vpack.c.bf16 %v321_v45, %v313_v42 }
  0x31   :  { %3086 = vmatprep.subr.bf16.mxu1 %v4178_v41  ;;  %6009 = vst [vmem:[#allocation7_spill] sm:$0xff] %v4214_v44  ;;  %v338_v55 = vld [vmem:[#allocation4 + $0x5d8] sm:$0xff]  ;;  %v4223_v61 = vpack.c.bf16 %v336_v47, %v328_v46  ;;  %v335_v1 = vld [vmem:[#allocation4 + $0x5c0] sm:$0xff]  ;;  %v329_v2 = vld [vmem:[#allocation4 + $0x590] sm:$0xff] }
  0x32   :  { %6010 = vst [vmem:[#allocation8_spill] sm:$0xff] %v4217_v57  ;;  %6011 = vst [vmem:[#allocation9_spill] sm:$0xff] %v4221_v60  ;;  %v337_v10 = vld [vmem:[#allocation4 + $0x5d0] sm:$0xff]  ;;  %v4226_v11 = vpack.c.bf16 %v338_v55, %v330_v54  ;;  %v344_v13 = vld [vmem:[#allocation4 + $0x608] sm:$0xff]  ;;  %v4236_v28 = vpack.c.bf16 %v335_v1, %v327_v59 }
  0x33   :  { %3024 = vmatpush1.bf16.msra.mxu0 %v4181_v48  ;;  %6012 = vst [vmem:[#allocation10_spill] sm:$0xff] %v4223_v61  ;;  %v352_v20 = vld [vmem:[#allocation4 + $0x648] sm:$0xff]  ;;  %v346_v24 = vld [vmem:[#allocation4 + $0x618] sm:$0xff]  ;;  %v4240_v37 = vpack.c.bf16 %v337_v10, %v329_v2  ;;  %v343_v42 = vld [vmem:[#allocation4 + $0x600] sm:$0xff] }
  0x34   :  { %3088 = vmatpush1.bf16.msra.mxu1 %v4185_v49  ;;  %3026 = vmatprep.subr.bf16.mxu0 %v4187_v53  ;;  %6013 = vst [vmem:[#allocation11_spill] sm:$0xff] %v4226_v11  ;;  %v4231_v22 = vld [vmem:[%s5847_s0 + $0x8] sm:$0xff]  ;;  %v354_v27 = vld [vmem:[#allocation4 + $0x658] sm:$0xff]  ;;  %6014 = vst [vmem:[#allocation12_spill] sm:$0xff] %v4236_v28  ;;  %v4242_v40 = vpack.c.bf16 %v352_v20, %v344_v13 }
  0x35   :  { %3090 = vmatprep.subr.bf16.mxu1 %v4190_v58  ;;  %473 = vmatprep.mubr.f32.mxu0 %v4231_v22  ;;  %6015 = vst [vmem:[#allocation13_spill] sm:$0xff] %v4240_v37  ;;  %v351_v45 = vld [vmem:[#allocation4 + $0x640] sm:$0xff]  ;;  %v345_v46 = vld [vmem:[#allocation4 + $0x610] sm:$0xff]  ;;  %v4245_v47 = vpack.c.bf16 %v354_v27, %v346_v24  ;;  %v360_v55 = vld [vmem:[#allocation4 + $0x688] sm:$0xff] }
  0x36   :  { %544 = vmatprep.mubr.f32.mxu1 %v4231_v22  ;;  %6016 = vst [vmem:[#allocation14_spill] sm:$0xff] %v4242_v40  ;;  %v353_v54 = vld [vmem:[#allocation4 + $0x650] sm:$0xff]  ;;  %v362_v59 = vld [vmem:[#allocation4 + $0x698] sm:$0xff]  ;;  %v359_v13 = vld [vmem:[#allocation4 + $0x680] sm:$0xff] }
  0x37   :  { %3028 = vmatpush1.bf16.msra.mxu0 %v4193_v4  ;;  %6017 = vst [vmem:[#allocation15_spill] sm:$0xff] %v4245_v47  ;;  %v370_v1 = vld [vmem:[#allocation4 + $0x6d8] sm:$0xff]  ;;  %v4252_v2 = vpack.c.bf16 %v353_v54, %v345_v46  ;;  %v367_v20 = vld [vmem:[#allocation4 + $0x6c0] sm:$0xff]  ;;  %v361_v24 = vld [vmem:[#allocation4 + $0x690] sm:$0xff] }
  0x38   :  { %3092 = vmatpush1.bf16.msra.mxu1 %v4197_v6  ;;  %3030 = vmatprep.subr.bf16.mxu0 %v4199_v9  ;;  %v4257_v27 = vpack.c.bf16 %v370_v1, %v362_v59  ;;  %v375_v54 = vld [vmem:[#allocation4 + $0x700] sm:$0xff]  ;;  %v377_v59 = vld [vmem:[#allocation4 + $0x710] sm:$0xff] }
  0x39   :  { %3094 = vmatprep.subr.bf16.mxu1 %v4202_v19  ;;  %6019 = vst [vmem:[#allocation17_spill] sm:$0xff] %v4252_v2 }
  0x3a   :  { %6021 = vst [vmem:[#allocation19_spill] sm:$0xff] %v4257_v27 }
  0x3b   :  { %3032 = vmatpush1.bf16.msra.mxu0 %v4205_v29 }
  0x3c   :  { %3096 = vmatpush1.bf16.msra.mxu1 %v4209_v31  ;;  %3034 = vmatprep.subr.bf16.mxu0 %v4211_v36 }
  0x3d   :  { %3098 = vmatprep.subr.bf16.mxu1 %v4214_v44  ;;  %v196_v44 = vld [vmem:[#allocation4 + $0x168] sm:$0xff] }
  0x3f   :  { %3036 = vmatpush1.bf16.msra.mxu0 %v4217_v57  ;;  %v368_v57 = vld [vmem:[#allocation4 + $0x6c8] sm:$0xff] }
  0x40   :  { %3100 = vmatpush1.bf16.msra.mxu1 %v4221_v60  ;;  %3038 = vmatprep.subr.bf16.mxu0 %v4223_v61  ;;  %v4248_v60 = vpack.c.bf16 %v351_v45, %v343_v42  ;;  %v4254_v10 = vpack.c.bf16 %v368_v57, %v360_v55  ;;  %v376_v61 = vld [vmem:[#allocation4 + $0x708] sm:$0xff]  ;;  %v378_v42 = vld [vmem:[#allocation4 + $0x718] sm:$0xff]  ;;  %v383_v55 = vld [vmem:[#allocation4 + $0x740] sm:$0xff] }
  0x41   :  { %3102 = vmatprep.subr.bf16.mxu1 %v4226_v11  ;;  %v369_v11 = vld [vmem:[#allocation4 + $0x6d0] sm:$0xff]  ;;  %v386_v45 = vld [vmem:[#allocation4 + $0x758] sm:$0xff] }
  0x42   :  { %6018 = vst [vmem:[#allocation16_spill] sm:$0xff] %v4248_v60  ;;  %6020 = vst [vmem:[#allocation18_spill] sm:$0xff] %v4254_v10  ;;  %v4264_v57 = vpack.c.bf16 %v369_v11, %v361_v24  ;;  %v4269_v1 = vpack.c.bf16 %v386_v45, %v378_v42  ;;  %v399_v24 = vld [vmem:[#allocation4 + $0x7c0] sm:$0xff]  ;;  %v393_v42 = vld [vmem:[#allocation4 + $0x790] sm:$0xff] }
  0x43   :  { %3040 = vmatpush1.bf16.msra.mxu0 %v4236_v28  ;;  %v384_v28 = vld [vmem:[#allocation4 + $0x748] sm:$0xff] }
  0x44   :  { %3104 = vmatpush1.bf16.msra.mxu1 %v4240_v37  ;;  %3042 = vmatprep.subr.bf16.mxu0 %v4242_v40  ;;  %v4260_v37 = vpack.c.bf16 %v367_v20, %v359_v13  ;;  %6023 = vst [vmem:[#allocation21_spill] sm:$0xff] %v4264_v57  ;;  %v4266_v46 = vpack.c.bf16 %v384_v28, %v376_v61  ;;  %6025 = vst [vmem:[#allocation23_spill] sm:$0xff] %v4269_v1  ;;  %v392_v40 = vld [vmem:[#allocation4 + $0x788] sm:$0xff]  ;;  %v394_v13 = vld [vmem:[#allocation4 + $0x798] sm:$0xff] }
  0x45   :  { %3106 = vmatprep.subr.bf16.mxu1 %v4245_v47  ;;  %v385_v47 = vld [vmem:[#allocation4 + $0x750] sm:$0xff]  ;;  %v402_v20 = vld [vmem:[#allocation4 + $0x7d8] sm:$0xff]  ;;  %v391_v28 = vld [vmem:[#allocation4 + $0x780] sm:$0xff] }
  0x46   :  { %6022 = vst [vmem:[#allocation20_spill] sm:$0xff] %v4260_v37  ;;  %6024 = vst [vmem:[#allocation22_spill] sm:$0xff] %v4266_v46  ;;  %v4276_v61 = vpack.c.bf16 %v385_v47, %v377_v59  ;;  %v4281_v45 = vpack.c.bf16 %v402_v20, %v394_v13  ;;  %v155_v47 = vld [vmem:[#allocation4 + $0x20] sm:$0xff]  ;;  %v157_v13 = vld [vmem:[#allocation4 + $0x30] sm:$0xff] }
  0x47   :  { %3044 = vmatpush1.bf16.msra.mxu0 %v4248_v60  ;;  %v400_v60 = vld [vmem:[#allocation4 + $0x7c8] sm:$0xff]  ;;  %v163_v59 = vld [vmem:[#allocation4 + $0x60] sm:$0xff] }
  0x48   :  { %3108 = vmatpush1.bf16.msra.mxu1 %v4252_v2  ;;  %3046 = vmatprep.subr.bf16.mxu0 %v4254_v10  ;;  %v4272_v2 = vpack.c.bf16 %v383_v55, %v375_v54  ;;  %6027 = vst [vmem:[#allocation25_spill] sm:$0xff] %v4276_v61  ;;  %v4278_v11 = vpack.c.bf16 %v400_v60, %v392_v40  ;;  %6029 = vst [vmem:[#allocation27_spill] sm:$0xff] %v4281_v45  ;;  %v156_v10 = vld [vmem:[#allocation4 + $0x28] sm:$0xff]  ;;  %v158_v54 = vld [vmem:[#allocation4 + $0x38] sm:$0xff] }
  0x49   :  { %3110 = vmatprep.subr.bf16.mxu1 %v4257_v27  ;;  %v401_v27 = vld [vmem:[#allocation4 + $0x7d0] sm:$0xff]  ;;  %v166_v55 = vld [vmem:[#allocation4 + $0x78] sm:$0xff] }
  0x4a   :  { %6026 = vst [vmem:[#allocation24_spill] sm:$0xff] %v4272_v2  ;;  %6028 = vst [vmem:[#allocation26_spill] sm:$0xff] %v4278_v11  ;;  %v4288_v60 = vpack.c.bf16 %v401_v27, %v393_v42  ;;  %v4293_v20 = vpack.c.bf16 %v166_v55, %v158_v54  ;;  %v4299_v27 = vld [vmem:[%s5847_s0] sm:$0xff] }
  0x4b   :  { %3048 = vmatpush1.bf16.msra.mxu0 %v4260_v37  ;;  %v164_v37 = vld [vmem:[#allocation4 + $0x68] sm:$0xff]  ;;  %v171_v54 = vld [vmem:[#allocation4 + $0xa0] sm:$0xff] }
  0x4c   :  { %3112 = vmatpush1.bf16.msra.mxu1 %v4264_v57  ;;  %3050 = vmatprep.subr.bf16.mxu0 %v4266_v46  ;;  %v4284_v57 = vpack.c.bf16 %v399_v24, %v391_v28  ;;  %6031 = vst [vmem:[#allocation29_spill] sm:$0xff] %v4288_v60  ;;  %v4290_v40 = vpack.c.bf16 %v164_v37, %v156_v10  ;;  %6033 = vst [vmem:[#allocation31_spill] sm:$0xff] %v4293_v20  ;;  %v172_v46 = vld [vmem:[#allocation4 + $0xa8] sm:$0xff]  ;;  %v174_v28 = vld [vmem:[#allocation4 + $0xb8] sm:$0xff] }
  0x4d   :  { %3114 = vmatprep.subr.bf16.mxu1 %v4269_v1  ;;  %v165_v1 = vld [vmem:[#allocation4 + $0x70] sm:$0xff]  ;;  %v182_v24 = vld [vmem:[#allocation4 + $0xf8] sm:$0xff]  ;;  %v4301_v37 = vpack.c.bf16 %v163_v59, %v155_v47  ;;  %v179_v55 = vld [vmem:[#allocation4 + $0xe0] sm:$0xff] }
  0x4e   :  { %6030 = vst [vmem:[#allocation28_spill] sm:$0xff] %v4284_v57  ;;  %6032 = vst [vmem:[#allocation30_spill] sm:$0xff] %v4290_v40  ;;  %v4305_v10 = vpack.c.bf16 %v165_v1, %v157_v13  ;;  %v190_v47 = vld [vmem:[#allocation4 + $0x138] sm:$0xff]  ;;  %v187_v13 = vld [vmem:[#allocation4 + $0x120] sm:$0xff] }
  0x4f   :  { %3052 = vmatpush1.bf16.msra.mxu0 %v4272_v2  ;;  %v180_v2 = vld [vmem:[#allocation4 + $0xe8] sm:$0xff]  ;;  %6034 = vst [vmem:[#allocation32_spill] sm:$0xff] %v4301_v37  ;;  %v198_v59 = vld [vmem:[#allocation4 + $0x178] sm:$0xff] }
  0x50   :  { %3116 = vmatpush1.bf16.msra.mxu1 %v4276_v61  ;;  %3054 = vmatprep.subr.bf16.mxu0 %v4278_v11  ;;  %v4307_v42 = vpack.c.bf16 %v180_v2, %v172_v46  ;;  %v181_v11 = vld [vmem:[#allocation4 + $0xf0] sm:$0xff]  ;;  %v188_v61 = vld [vmem:[#allocation4 + $0x128] sm:$0xff]  ;;  %v4315_v2 = vpack.c.bf16 %v179_v55, %v171_v54  ;;  %v206_v54 = vld [vmem:[#allocation4 + $0x1b8] sm:$0xff] }
  0x51   :  { %3118 = vmatprep.subr.bf16.mxu1 %v4281_v45  ;;  %v173_v45 = vld [vmem:[#allocation4 + $0xb0] sm:$0xff]  ;;  %v4321_v1 = vpack.c.bf16 %v196_v44, %v188_v61  ;;  %v214_v55 = vld [vmem:[#allocation4 + $0x1f8] sm:$0xff] }
  0x52   :  { %6035 = vst [vmem:[#allocation33_spill] sm:$0xff] %v4307_v42  ;;  %6037 = vst [vmem:[#allocation35_spill] sm:$0xff] %v4315_v2  ;;  %v4319_v46 = vpack.c.bf16 %v181_v11, %v173_v45  ;;  %v203_v45 = vld [vmem:[#allocation4 + $0x1a0] sm:$0xff] }
  0x53   :  { %3056 = vmatpush1.bf16.msra.mxu0 %v4284_v57  ;;  %v4310_v57 = vpack.c.bf16 %v182_v24, %v174_v28  ;;  %6039 = vst [vmem:[#allocation37_spill] sm:$0xff] %v4321_v1  ;;  %v195_v28 = vld [vmem:[#allocation4 + $0x160] sm:$0xff]  ;;  %v189_v24 = vld [vmem:[#allocation4 + $0x130] sm:$0xff] }
  0x54   :  { %3120 = vmatpush1.bf16.msra.mxu1 %v4288_v60  ;;  %3122 = vmatprep.subr.bf16.mxu0 %v4290_v40  ;;  %6038 = vst [vmem:[#allocation36_spill] sm:$0xff] %v4319_v46  ;;  %v197_v40 = vld [vmem:[#allocation4 + $0x170] sm:$0xff]  ;;  %v204_v60 = vld [vmem:[#allocation4 + $0x1a8] sm:$0xff]  ;;  %v4329_v44 = vpack.c.bf16 %v195_v28, %v187_v13  ;;  %v222_v13 = vld [vmem:[#allocation4 + $0x238] sm:$0xff] }
  0x55   :  { %3186 = vmatprep.subr.bf16.mxu1 %v4293_v20  ;;  %6036 = vst [vmem:[#allocation34_spill] sm:$0xff] %v4310_v57  ;;  %v4324_v20 = vpack.c.bf16 %v198_v59, %v190_v47  ;;  %v4333_v61 = vpack.c.bf16 %v197_v40, %v189_v24  ;;  %v211_v47 = vld [vmem:[#allocation4 + $0x1e0] sm:$0xff]  ;;  %v205_v59 = vld [vmem:[#allocation4 + $0x1b0] sm:$0xff]  ;;  %v230_v28 = vld [vmem:[#allocation4 + $0x278] sm:$0xff] }
  0x56   :  { %474 = vmatmul.mubr.f32.vlgmr.msra.gmra.mrb[0].mxu0 %v4299_v27  ;;  %6041 = vst [vmem:[#allocation39_spill] sm:$0xff] %v4329_v44  ;;  %v227_v24 = vld [vmem:[#allocation4 + $0x260] sm:$0xff] }
  0x57   :  { %545 = vmatmul.mubr.f32.vlgmr.msra.gmra.mrb[0].mxu1 %v4299_v27  ;;  %3124 = vmatpush1.bf16.msra.mxu0 %v4301_v37  ;;  %6040 = vst [vmem:[#allocation38_spill] sm:$0xff] %v4324_v20  ;;  %v212_v37 = vld [vmem:[#allocation4 + $0x1e8] sm:$0xff]  ;;  %6042 = vst [vmem:[#allocation40_spill] sm:$0xff] %v4333_v61 }
  0x58   :  { %3188 = vmatpush1.bf16.msra.mxu1 %v4305_v10  ;;  %3126 = vmatprep.subr.bf16.mxu0 %v4307_v42  ;;  %v4335_v11 = vpack.c.bf16 %v212_v37, %v204_v60  ;;  %v220_v42 = vld [vmem:[#allocation4 + $0x228] sm:$0xff]  ;;  %v219_v37 = vld [vmem:[#allocation4 + $0x220] sm:$0xff] }
  0x59   :  { %3190 = vmatprep.subr.bf16.mxu1 %v4310_v57  ;;  %615 = vmatprep.mubr.f32.mxu0 %v4231_v22  ;;  %v4338_v57 = vpack.c.bf16 %v214_v55, %v206_v54  ;;  %v221_v54 = vld [vmem:[#allocation4 + $0x230] sm:$0xff]  ;;  %v4350_v55 = vpack.c.bf16 %v230_v28, %v222_v13 }
  0x5a   :  { %686 = vmatprep.mubr.f32.mxu1 %v4231_v22  ;;  %6043 = vst [vmem:[#allocation41_spill] sm:$0xff] %v4335_v11  ;;  %v213_v22 = vld [vmem:[#allocation4 + $0x1f0] sm:$0xff] }
  0x5b   :  { %3128 = vmatpush1.bf16.msra.mxu0 %v4315_v2  ;;  %6044 = vst [vmem:[#allocation42_spill] sm:$0xff] %v4338_v57  ;;  %v228_v2 = vld [vmem:[#allocation4 + $0x268] sm:$0xff]  ;;  %v4345_v60 = vpack.c.bf16 %v213_v22, %v205_v59  ;;  %6048 = vst [vmem:[#allocation46_spill] sm:$0xff] %v4350_v55  ;;  %v235_v59 = vld [vmem:[#allocation4 + $0x2a0] sm:$0xff] }
  0x5c   :  { %3192 = vmatpush1.bf16.msra.mxu1 %v4319_v46  ;;  %3130 = vmatprep.subr.bf16.mxu0 %v4321_v1  ;;  %v4341_v46 = vpack.c.bf16 %v211_v47, %v203_v45  ;;  %v4347_v40 = vpack.c.bf16 %v228_v2, %v220_v42  ;;  %v236_v1 = vld [vmem:[#allocation4 + $0x2a8] sm:$0xff]  ;;  %v238_v45 = vld [vmem:[#allocation4 + $0x2b8] sm:$0xff]  ;;  %v243_v22 = vld [vmem:[#allocation4 + $0x2e0] sm:$0xff] }
  0x5d   :  { %3194 = vmatprep.subr.bf16.mxu1 %v4324_v20  ;;  %6046 = vst [vmem:[#allocation44_spill] sm:$0xff] %v4345_v60  ;;  %v229_v20 = vld [vmem:[#allocation4 + $0x270] sm:$0xff]  ;;  %v246_v47 = vld [vmem:[#allocation4 + $0x2f8] sm:$0xff] }
  0x5e   :  { %6045 = vst [vmem:[#allocation43_spill] sm:$0xff] %v4341_v46  ;;  %6047 = vst [vmem:[#allocation45_spill] sm:$0xff] %v4347_v40  ;;  %v4357_v42 = vpack.c.bf16 %v229_v20, %v221_v54  ;;  %v237_v13 = vld [vmem:[#allocation4 + $0x2b0] sm:$0xff]  ;;  %v4362_v28 = vpack.c.bf16 %v246_v47, %v238_v45  ;;  %v259_v54 = vld [vmem:[#allocation4 + $0x360] sm:$0xff] }
  0x5f   :  { %3132 = vmatpush1.bf16.msra.mxu0 %v4329_v44  ;;  %v244_v44 = vld [vmem:[#allocation4 + $0x2e8] sm:$0xff]  ;;  %v253_v45 = vld [vmem:[#allocation4 + $0x330] sm:$0xff] }
  0x60   :  { %3196 = vmatpush1.bf16.msra.mxu1 %v4333_v61  ;;  %3134 = vmatprep.subr.bf16.mxu0 %v4335_v11  ;;  %v4353_v61 = vpack.c.bf16 %v227_v24, %v219_v37  ;;  %6050 = vst [vmem:[#allocation48_spill] sm:$0xff] %v4357_v42  ;;  %v4359_v2 = vpack.c.bf16 %v244_v44, %v236_v1  ;;  %6052 = vst [vmem:[#allocation50_spill] sm:$0xff] %v4362_v28  ;;  %v252_v11 = vld [vmem:[#allocation4 + $0x328] sm:$0xff]  ;;  %v254_v37 = vld [vmem:[#allocation4 + $0x338] sm:$0xff] }
  0x61   :  { %3198 = vmatprep.subr.bf16.mxu1 %v4338_v57  ;;  %v245_v57 = vld [vmem:[#allocation4 + $0x2f0] sm:$0xff]  ;;  %v262_v24 = vld [vmem:[#allocation4 + $0x378] sm:$0xff]  ;;  %v251_v44 = vld [vmem:[#allocation4 + $0x320] sm:$0xff] }
  0x62   :  { %6049 = vst [vmem:[#allocation47_spill] sm:$0xff] %v4353_v61  ;;  %6051 = vst [vmem:[#allocation49_spill] sm:$0xff] %v4359_v2  ;;  %v4369_v20 = vpack.c.bf16 %v245_v57, %v237_v13  ;;  %v4374_v47 = vpack.c.bf16 %v262_v24, %v254_v37  ;;  %v275_v13 = vld [vmem:[#allocation4 + $0x3e0] sm:$0xff]  ;;  %v269_v37 = vld [vmem:[#allocation4 + $0x3b0] sm:$0xff] }
  0x63   :  { %3136 = vmatpush1.bf16.msra.mxu0 %v4341_v46  ;;  %v260_v46 = vld [vmem:[#allocation4 + $0x368] sm:$0xff] }
  0x64   :  { %3200 = vmatpush1.bf16.msra.mxu1 %v4345_v60  ;;  %3138 = vmatprep.subr.bf16.mxu0 %v4347_v40  ;;  %v4365_v60 = vpack.c.bf16 %v243_v22, %v235_v59  ;;  %6054 = vst [vmem:[#allocation52_spill] sm:$0xff] %v4369_v20  ;;  %v4371_v1 = vpack.c.bf16 %v260_v46, %v252_v11  ;;  %6056 = vst [vmem:[#allocation54_spill] sm:$0xff] %v4374_v47  ;;  %v268_v40 = vld [vmem:[#allocation4 + $0x3a8] sm:$0xff]  ;;  %v270_v59 = vld [vmem:[#allocation4 + $0x3b8] sm:$0xff] }
  0x65   :  { %3202 = vmatprep.subr.bf16.mxu1 %v4350_v55  ;;  %v261_v55 = vld [vmem:[#allocation4 + $0x370] sm:$0xff]  ;;  %v278_v22 = vld [vmem:[#allocation4 + $0x3f8] sm:$0xff]  ;;  %v267_v11 = vld [vmem:[#allocation4 + $0x3a0] sm:$0xff] }
  0x66   :  { %6053 = vst [vmem:[#allocation51_spill] sm:$0xff] %v4365_v60  ;;  %6055 = vst [vmem:[#allocation53_spill] sm:$0xff] %v4371_v1  ;;  %v4381_v57 = vpack.c.bf16 %v261_v55, %v253_v45  ;;  %v4386_v24 = vpack.c.bf16 %v278_v22, %v270_v59  ;;  %v283_v55 = vld [vmem:[#allocation4 + $0x420] sm:$0xff]  ;;  %v285_v59 = vld [vmem:[#allocation4 + $0x430] sm:$0xff] }
  0x67   :  { %3140 = vmatpush1.bf16.msra.mxu0 %v4353_v61  ;;  %v276_v61 = vld [vmem:[#allocation4 + $0x3e8] sm:$0xff]  ;;  %v291_v45 = vld [vmem:[#allocation4 + $0x460] sm:$0xff] }
  0x68   :  { %3204 = vmatpush1.bf16.msra.mxu1 %v4357_v42  ;;  %3142 = vmatprep.subr.bf16.mxu0 %v4359_v2  ;;  %v4377_v42 = vpack.c.bf16 %v259_v54, %v251_v44  ;;  %6058 = vst [vmem:[#allocation56_spill] sm:$0xff] %v4381_v57  ;;  %v4383_v46 = vpack.c.bf16 %v276_v61, %v268_v40  ;;  %6060 = vst [vmem:[#allocation58_spill] sm:$0xff] %v4386_v24  ;;  %v284_v2 = vld [vmem:[#allocation4 + $0x428] sm:$0xff]  ;;  %v286_v44 = vld [vmem:[#allocation4 + $0x438] sm:$0xff] }
  0x69   :  { %3206 = vmatprep.subr.bf16.mxu1 %v4362_v28  ;;  %v277_v28 = vld [vmem:[#allocation4 + $0x3f0] sm:$0xff]  ;;  %v294_v54 = vld [vmem:[#allocation4 + $0x478] sm:$0xff] }
  0x6a   :  { %6057 = vst [vmem:[#allocation55_spill] sm:$0xff] %v4377_v42  ;;  %6059 = vst [vmem:[#allocation57_spill] sm:$0xff] %v4383_v46  ;;  %v4393_v61 = vpack.c.bf16 %v277_v28, %v269_v37  ;;  %v4398_v22 = vpack.c.bf16 %v294_v54, %v286_v44  ;;  %v299_v28 = vld [vmem:[#allocation4 + $0x4a0] sm:$0xff]  ;;  %v301_v44 = vld [vmem:[#allocation4 + $0x4b0] sm:$0xff] }
  0x6b   :  { %3144 = vmatpush1.bf16.msra.mxu0 %v4365_v60  ;;  %v292_v60 = vld [vmem:[#allocation4 + $0x468] sm:$0xff]  ;;  %v307_v37 = vld [vmem:[#allocation4 + $0x4e0] sm:$0xff] }
  0x6c   :  { %3208 = vmatpush1.bf16.msra.mxu1 %v4369_v20  ;;  %3146 = vmatprep.subr.bf16.mxu0 %v4371_v1  ;;  %v4389_v20 = vpack.c.bf16 %v275_v13, %v267_v11  ;;  %6062 = vst [vmem:[#allocation60_spill] sm:$0xff] %v4393_v61  ;;  %v4395_v40 = vpack.c.bf16 %v292_v60, %v284_v2  ;;  %6064 = vst [vmem:[#allocation62_spill] sm:$0xff] %v4398_v22  ;;  %v300_v1 = vld [vmem:[#allocation4 + $0x4a8] sm:$0xff]  ;;  %v302_v11 = vld [vmem:[#allocation4 + $0x4b8] sm:$0xff] }
  0x6d   :  { %3210 = vmatprep.subr.bf16.mxu1 %v4374_v47  ;;  %v293_v47 = vld [vmem:[#allocation4 + $0x470] sm:$0xff]  ;;  %v310_v13 = vld [vmem:[#allocation4 + $0x4f8] sm:$0xff] }
  0x6e   :  { %6061 = vst [vmem:[#allocation59_spill] sm:$0xff] %v4389_v20  ;;  %6063 = vst [vmem:[#allocation61_spill] sm:$0xff] %v4395_v40  ;;  %v4405_v60 = vpack.c.bf16 %v293_v47, %v285_v59  ;;  %v4410_v54 = vpack.c.bf16 %v310_v13, %v302_v11  ;;  %v315_v47 = vld [vmem:[#allocation4 + $0x520] sm:$0xff]  ;;  %v317_v11 = vld [vmem:[#allocation4 + $0x530] sm:$0xff] }
  0x6f   :  { %3148 = vmatpush1.bf16.msra.mxu0 %v4377_v42  ;;  %v308_v42 = vld [vmem:[#allocation4 + $0x4e8] sm:$0xff]  ;;  %v323_v59 = vld [vmem:[#allocation4 + $0x560] sm:$0xff] }
  0x70   :  { %3212 = vmatpush1.bf16.msra.mxu1 %v4381_v57  ;;  %3150 = vmatprep.subr.bf16.mxu0 %v4383_v46  ;;  %v4401_v57 = vpack.c.bf16 %v291_v45, %v283_v55  ;;  %6066 = vst [vmem:[#allocation64_spill] sm:$0xff] %v4405_v60  ;;  %v4407_v2 = vpack.c.bf16 %v308_v42, %v300_v1  ;;  %6068 = vst [vmem:[#allocation66_spill] sm:$0xff] %v4410_v54  ;;  %v316_v46 = vld [vmem:[#allocation4 + $0x528] sm:$0xff]  ;;  %v318_v55 = vld [vmem:[#allocation4 + $0x538] sm:$0xff] }
  0x71   :  { %3214 = vmatprep.subr.bf16.mxu1 %v4386_v24  ;;  %v309_v24 = vld [vmem:[#allocation4 + $0x4f0] sm:$0xff]  ;;  %v326_v45 = vld [vmem:[#allocation4 + $0x578] sm:$0xff] }
  0x72   :  { %6065 = vst [vmem:[#allocation63_spill] sm:$0xff] %v4401_v57  ;;  %6067 = vst [vmem:[#allocation65_spill] sm:$0xff] %v4407_v2  ;;  %v4417_v42 = vpack.c.bf16 %v309_v24, %v301_v44  ;;  %v4422_v13 = vpack.c.bf16 %v326_v45, %v318_v55  ;;  %v331_v24 = vld [vmem:[#allocation4 + $0x5a0] sm:$0xff]  ;;  %v333_v55 = vld [vmem:[#allocation4 + $0x5b0] sm:$0xff] }
  0x73   :  { %3152 = vmatpush1.bf16.msra.mxu0 %v4389_v20  ;;  %v324_v20 = vld [vmem:[#allocation4 + $0x568] sm:$0xff]  ;;  %v339_v44 = vld [vmem:[#allocation4 + $0x5e0] sm:$0xff] }
  0x74   :  { %3216 = vmatpush1.bf16.msra.mxu1 %v4393_v61  ;;  %3154 = vmatprep.subr.bf16.mxu0 %v4395_v40  ;;  %v4413_v61 = vpack.c.bf16 %v307_v37, %v299_v28  ;;  %6070 = vst [vmem:[#allocation68_spill] sm:$0xff] %v4417_v42  ;;  %v4419_v1 = vpack.c.bf16 %v324_v20, %v316_v46  ;;  %6072 = vst [vmem:[#allocation70_spill] sm:$0xff] %v4422_v13  ;;  %v332_v40 = vld [vmem:[#allocation4 + $0x5a8] sm:$0xff]  ;;  %v334_v28 = vld [vmem:[#allocation4 + $0x5b8] sm:$0xff] }
  0x75   :  { %3218 = vmatprep.subr.bf16.mxu1 %v4398_v22  ;;  %v325_v22 = vld [vmem:[#allocation4 + $0x570] sm:$0xff]  ;;  %v342_v37 = vld [vmem:[#allocation4 + $0x5f8] sm:$0xff] }
  0x76   :  { %6069 = vst [vmem:[#allocation67_spill] sm:$0xff] %v4413_v61  ;;  %6071 = vst [vmem:[#allocation69_spill] sm:$0xff] %v4419_v1  ;;  %v4429_v20 = vpack.c.bf16 %v325_v22, %v317_v11  ;;  %v4434_v45 = vpack.c.bf16 %v342_v37, %v334_v28  ;;  %v347_v22 = vld [vmem:[#allocation4 + $0x620] sm:$0xff]  ;;  %v349_v28 = vld [vmem:[#allocation4 + $0x630] sm:$0xff] }
  0x77   :  { %3156 = vmatpush1.bf16.msra.mxu0 %v4401_v57  ;;  %v340_v57 = vld [vmem:[#allocation4 + $0x5e8] sm:$0xff]  ;;  %v355_v11 = vld [vmem:[#allocation4 + $0x660] sm:$0xff] }
  0x78   :  { %3220 = vmatpush1.bf16.msra.mxu1 %v4405_v60  ;;  %3158 = vmatprep.subr.bf16.mxu0 %v4407_v2  ;;  %v4425_v60 = vpack.c.bf16 %v323_v59, %v315_v47  ;;  %6074 = vst [vmem:[#allocation72_spill] sm:$0xff] %v4429_v20  ;;  %v4431_v46 = vpack.c.bf16 %v340_v57, %v332_v40  ;;  %6076 = vst [vmem:[#allocation74_spill] sm:$0xff] %v4434_v45  ;;  %v348_v2 = vld [vmem:[#allocation4 + $0x628] sm:$0xff]  ;;  %v350_v47 = vld [vmem:[#allocation4 + $0x638] sm:$0xff] }
  0x79   :  { %3222 = vmatprep.subr.bf16.mxu1 %v4410_v54  ;;  %v341_v54 = vld [vmem:[#allocation4 + $0x5f0] sm:$0xff]  ;;  %v358_v59 = vld [vmem:[#allocation4 + $0x678] sm:$0xff] }
  0x7a   :  { %6073 = vst [vmem:[#allocation71_spill] sm:$0xff] %v4425_v60  ;;  %6075 = vst [vmem:[#allocation73_spill] sm:$0xff] %v4431_v46  ;;  %v4441_v57 = vpack.c.bf16 %v341_v54, %v333_v55  ;;  %v4446_v37 = vpack.c.bf16 %v358_v59, %v350_v47  ;;  %v363_v54 = vld [vmem:[#allocation4 + $0x6a0] sm:$0xff]  ;;  %v365_v47 = vld [vmem:[#allocation4 + $0x6b0] sm:$0xff] }
  0x7b   :  { %3160 = vmatpush1.bf16.msra.mxu0 %v4413_v61  ;;  %v356_v61 = vld [vmem:[#allocation4 + $0x668] sm:$0xff]  ;;  %v371_v55 = vld [vmem:[#allocation4 + $0x6e0] sm:$0xff] }
  0x7c   :  { %3224 = vmatpush1.bf16.msra.mxu1 %v4417_v42  ;;  %3162 = vmatprep.subr.bf16.mxu0 %v4419_v1  ;;  %v4437_v42 = vpack.c.bf16 %v339_v44, %v331_v24  ;;  %6078 = vst [vmem:[#allocation76_spill] sm:$0xff] %v4441_v57  ;;  %v4443_v40 = vpack.c.bf16 %v356_v61, %v348_v2  ;;  %6080 = vst [vmem:[#allocation78_spill] sm:$0xff] %v4446_v37  ;;  %v364_v1 = vld [vmem:[#allocation4 + $0x6a8] sm:$0xff]  ;;  %v366_v24 = vld [vmem:[#allocation4 + $0x6b8] sm:$0xff] }
  0x7d   :  { %3226 = vmatprep.subr.bf16.mxu1 %v4422_v13  ;;  %v357_v13 = vld [vmem:[#allocation4 + $0x670] sm:$0xff]  ;;  %v374_v44 = vld [vmem:[#allocation4 + $0x6f8] sm:$0xff] }
  0x7e   :  { %6077 = vst [vmem:[#allocation75_spill] sm:$0xff] %v4437_v42  ;;  %6079 = vst [vmem:[#allocation77_spill] sm:$0xff] %v4443_v40  ;;  %v4453_v61 = vpack.c.bf16 %v357_v13, %v349_v28  ;;  %v4458_v59 = vpack.c.bf16 %v374_v44, %v366_v24  ;;  %v379_v13 = vld [vmem:[#allocation4 + $0x720] sm:$0xff]  ;;  %v381_v24 = vld [vmem:[#allocation4 + $0x730] sm:$0xff] }
  0x7f   :  { %3164 = vmatpush1.bf16.msra.mxu0 %v4425_v60  ;;  %v372_v60 = vld [vmem:[#allocation4 + $0x6e8] sm:$0xff]  ;;  %v387_v28 = vld [vmem:[#allocation4 + $0x760] sm:$0xff] }
  0x80   :  { %3228 = vmatpush1.bf16.msra.mxu1 %v4429_v20  ;;  %3166 = vmatprep.subr.bf16.mxu0 %v4431_v46  ;;  %v4449_v20 = vpack.c.bf16 %v355_v11, %v347_v22  ;;  %6082 = vst [vmem:[#allocation80_spill] sm:$0xff] %v4453_v61  ;;  %v4455_v2 = vpack.c.bf16 %v372_v60, %v364_v1  ;;  %6083 = vst [vmem:[#allocation81_spill] sm:$0xff] %v4458_v59  ;;  %v380_v46 = vld [vmem:[#allocation4 + $0x728] sm:$0xff]  ;;  %v382_v22 = vld [vmem:[#allocation4 + $0x738] sm:$0xff] }
  0x81   :  { %3230 = vmatprep.subr.bf16.mxu1 %v4434_v45  ;;  %v373_v45 = vld [vmem:[#allocation4 + $0x6f0] sm:$0xff]  ;;  %v390_v11 = vld [vmem:[#allocation4 + $0x778] sm:$0xff] }
  0x82   :  { %6081 = vst [vmem:[#allocation79_spill] sm:$0xff] %v4449_v20  ;;  %v4465_v60 = vpack.c.bf16 %v373_v45, %v365_v47  ;;  %v4470_v44 = vpack.c.bf16 %v390_v11, %v382_v22  ;;  %v395_v45 = vld [vmem:[#allocation4 + $0x7a0] sm:$0xff]  ;;  %v397_v11 = vld [vmem:[#allocation4 + $0x7b0] sm:$0xff] }
  0x83   :  { %3168 = vmatpush1.bf16.msra.mxu0 %v4437_v42  ;;  %v388_v42 = vld [vmem:[#allocation4 + $0x768] sm:$0xff]  ;;  %v403_v47 = vld [vmem:[#allocation4 + $0x7e0] sm:$0xff] }
  0x84   :  { %3232 = vmatpush1.bf16.msra.mxu1 %v4441_v57  ;;  %3170 = vmatprep.subr.bf16.mxu0 %v4443_v40  ;;  %v4461_v57 = vpack.c.bf16 %v371_v55, %v363_v54  ;;  %v4467_v1 = vpack.c.bf16 %v388_v42, %v380_v46  ;;  %v396_v40 = vld [vmem:[#allocation4 + $0x7a8] sm:$0xff]  ;;  %v398_v54 = vld [vmem:[#allocation4 + $0x7b8] sm:$0xff] }
  0x85   :  { %3234 = vmatprep.subr.bf16.mxu1 %v4446_v37  ;;  %v389_v37 = vld [vmem:[#allocation4 + $0x770] sm:$0xff]  ;;  %v406_v55 = vld [vmem:[#allocation4 + $0x7f8] sm:$0xff] }
  0x86   :  { %v4477_v42 = vpack.c.bf16 %v389_v37, %v381_v24  ;;  %v4482_v22 = vpack.c.bf16 %v406_v55, %v398_v54  ;;  %v6128_v24 = vld [vmem:[#allocation51_spill] sm:$0xff]  ;;  %v6129_v54 = vld [vmem:[#allocation52_spill] sm:$0xff]  ;;  %v6130_v55 = vld [vmem:[#allocation53_spill] sm:$0xff] }
  0x87   :  { %3172 = vmatpush1.bf16.msra.mxu0 %v4449_v20  ;;  %v404_v20 = vld [vmem:[#allocation4 + $0x7e8] sm:$0xff] }
  0x88   :  { %3236 = vmatpush1.bf16.msra.mxu1 %v4453_v61  ;;  %3174 = vmatprep.subr.bf16.mxu0 %v4455_v2  ;;  %v4473_v61 = vpack.c.bf16 %v387_v28, %v379_v13  ;;  %v4479_v46 = vpack.c.bf16 %v404_v20, %v396_v40  ;;  %v4485_v13 = vpack.c.bf16 %v403_v47, %v395_v45  ;;  %v4500_v20 = vld [vmem:[%s5847_s0 + $0x18] sm:$0xff]  ;;  %v6125_v40 = vld [vmem:[#allocation48_spill] sm:$0xff]  ;;  %v6132_v47 = vld [vmem:[#allocation55_spill] sm:$0xff] }
  0x89   :  { %3238 = vmatprep.subr.bf16.mxu1 %v4458_v59  ;;  %v405_v59 = vld [vmem:[#allocation4 + $0x7f0] sm:$0xff]  ;;  %v6127_v28 = vld [vmem:[#allocation50_spill] sm:$0xff] }
  0x8a   :  { %v4489_v37 = vpack.c.bf16 %v405_v59, %v397_v11  ;;  %v6126_v59 = vld [vmem:[#allocation49_spill] sm:$0xff]  ;;  %v6131_v45 = vld [vmem:[#allocation54_spill] sm:$0xff]  ;;  %v6133_v11 = vld [vmem:[#allocation56_spill] sm:$0xff] }
  0x8b   :  { %3176 = vmatpush1.bf16.msra.mxu0 %v4461_v57 }
  0x8c   :  { %3240 = vmatpush1.bf16.msra.mxu1 %v4465_v60  ;;  %3178 = vmatprep.subr.bf16.mxu0 %v4467_v1 }
  0x8d   :  { %3242 = vmatprep.subr.bf16.mxu1 %v4470_v44 }
  0x8f   :  { %3180 = vmatpush1.bf16.msra.mxu0 %v4473_v61 }
  0x90   :  { %3244 = vmatpush1.bf16.msra.mxu1 %v4477_v42  ;;  %3182 = vmatprep.subr.bf16.mxu0 %v4479_v46 }
  0x91   :  { %3246 = vmatprep.subr.bf16.mxu1 %v4482_v22 }
  0x93   :  { %3184 = vmatpush1.bf16.msra.mxu0 %v4485_v13 }
  0x94   :  { %3248 = vmatpush1.bf16.msra.mxu1 %v4489_v37  ;;  %3250 = vmatprep.subr.bf16.mxu0 %v4094_v3  ;;  %v5946_v3 = vmov 0.0  }
  0x95   :  { %3314 = vmatprep.subr.bf16.mxu1 %v4096_v7  ;;  %1250 = vrot.lane.b32.xlu1 %v5946_v3, %s4053_s4  ;;  %v6084_v7 = vld [vmem:[#allocation7_spill] sm:$0xff] }
  0x96   :  { %616 = vmatmul.mubr.f32.vlgmr.msra.gmra.mrb[2].mxu0 %v4299_v27 }
  0x97   :  { %687 = vmatmul.mubr.f32.vlgmr.msra.gmra.mrb[2].mxu1 %v4299_v27  ;;  %3252 = vmatpush1.bf16.msra.mxu0 %v4098_v8  ;;  %v6085_v8 = vld [vmem:[#allocation8_spill] sm:$0xff]  ;;  %v6123_v27 = vld [vmem:[#allocation46_spill] sm:$0xff] }
  0x98   :  { %3316 = vmatpush1.bf16.msra.mxu1 %v4101_v12  ;;  %3254 = vmatprep.subr.bf16.mxu0 %v4105_v16  ;;  %v6086_v12 = vld [vmem:[#allocation9_spill] sm:$0xff]  ;;  %v6087_v16 = vld [vmem:[#allocation10_spill] sm:$0xff] }
  0x99   :  { %3318 = vmatprep.subr.bf16.mxu1 %v4107_v17  ;;  %1352 = vmatprep.mubr.f32.mxu0 %v4500_v20  ;;  %v6088_v17 = vld [vmem:[#allocation11_spill] sm:$0xff] }
  0x9a   :  { %1423 = vmatprep.mubr.f32.mxu1 %v4500_v20 }
  0x9b   :  { %3256 = vmatpush1.bf16.msra.mxu0 %v4110_v21  ;;  %v6089_v21 = vld [vmem:[#allocation12_spill] sm:$0xff] }
  0x9c   :  { %3320 = vmatpush1.bf16.msra.mxu1 %v4114_v25  ;;  %3258 = vmatprep.subr.bf16.mxu0 %v4116_v26  ;;  %v6090_v25 = vld [vmem:[#allocation13_spill] sm:$0xff]  ;;  %v6091_v26 = vld [vmem:[#allocation14_spill] sm:$0xff] }
  0x9d   :  { %3322 = vmatprep.subr.bf16.mxu1 %v4118_v30  ;;  %v6092_v30 = vld [vmem:[#allocation15_spill] sm:$0xff] }
  0x9f   :  { %3260 = vmatpush1.bf16.msra.mxu0 %v4121_v34  ;;  %v6093_v34 = vld [vmem:[#allocation16_spill] sm:$0xff] }
  0xa0   :  { %3324 = vmatpush1.bf16.msra.mxu1 %v4125_v38  ;;  %3262 = vmatprep.subr.bf16.mxu0 %v4127_v39  ;;  %v6094_v38 = vld [vmem:[#allocation17_spill] sm:$0xff]  ;;  %v6095_v39 = vld [vmem:[#allocation18_spill] sm:$0xff] }
  0xa1   :  { %3326 = vmatprep.subr.bf16.mxu1 %v4130_v43  ;;  %v6096_v43 = vld [vmem:[#allocation19_spill] sm:$0xff] }
  0xa3   :  { %3264 = vmatpush1.bf16.msra.mxu0 %v4133_v50  ;;  %v6097_v50 = vld [vmem:[#allocation20_spill] sm:$0xff] }
  0xa4   :  { %3328 = vmatpush1.bf16.msra.mxu1 %v4137_v51  ;;  %3266 = vmatprep.subr.bf16.mxu0 %v4139_v52  ;;  %v6098_v51 = vld [vmem:[#allocation21_spill] sm:$0xff]  ;;  %v6099_v52 = vld [vmem:[#allocation22_spill] sm:$0xff] }
  0xa5   :  { %3330 = vmatprep.subr.bf16.mxu1 %v4142_v56  ;;  %v6100_v56 = vld [vmem:[#allocation23_spill] sm:$0xff] }
  0xa7   :  { %3268 = vmatpush1.bf16.msra.mxu0 %v4145_v62  ;;  %v6101_v62 = vld [vmem:[#allocation24_spill] sm:$0xff] }
  0xa8   :  { %3332 = vmatpush1.bf16.msra.mxu1 %v4149_v63  ;;  %3270 = vmatprep.subr.bf16.mxu0 %v4151_v0  ;;  %v6102_v63 = vld [vmem:[#allocation25_spill] sm:$0xff]  ;;  %v6103_v0 = vld [vmem:[#allocation26_spill] sm:$0xff] }
  0xa9   :  { %3334 = vmatprep.subr.bf16.mxu1 %v4154_v5  ;;  %v6104_v5 = vld [vmem:[#allocation27_spill] sm:$0xff] }
  0xab   :  { %3272 = vmatpush1.bf16.msra.mxu0 %v4157_v14  ;;  %v6105_v14 = vld [vmem:[#allocation28_spill] sm:$0xff] }
  0xac   :  { %3336 = vmatpush1.bf16.msra.mxu1 %v4161_v15  ;;  %3274 = vmatprep.subr.bf16.mxu0 %v4163_v18  ;;  %v4571_v15 = vld [vmem:[%s5847_s0 + $0x10] sm:$0xff]  ;;  %s4054_s0 = smov 32  }
  0xad   :  { %3338 = vmatprep.subr.bf16.mxu1 %v4166_v23  ;;  %v6106_v18 = vld [vmem:[#allocation29_spill] sm:$0xff]  ;;  %v6107_v23 = vld [vmem:[#allocation30_spill] sm:$0xff] }
  0xaf   :  { %3276 = vmatpush1.bf16.msra.mxu0 %v4169_v32  ;;  %v6108_v32 = vld [vmem:[#allocation31_spill] sm:$0xff] }
  0xb0   :  { %3340 = vmatpush1.bf16.msra.mxu1 %v4173_v33  ;;  %3278 = vmatprep.subr.bf16.mxu0 %v4175_v35  ;;  %v6109_v33 = vld [vmem:[#allocation32_spill] sm:$0xff]  ;;  %v6110_v35 = vld [vmem:[#allocation33_spill] sm:$0xff] }
  0xb1   :  { %3342 = vmatprep.subr.bf16.mxu1 %v4178_v41  ;;  %v6111_v41 = vld [vmem:[#allocation34_spill] sm:$0xff] }
  0xb3   :  { %3280 = vmatpush1.bf16.msra.mxu0 %v4181_v48  ;;  %v6112_v48 = vld [vmem:[#allocation35_spill] sm:$0xff] }
  0xb4   :  { %3344 = vmatpush1.bf16.msra.mxu1 %v4185_v49  ;;  %3282 = vmatprep.subr.bf16.mxu0 %v4187_v53  ;;  %v6113_v49 = vld [vmem:[#allocation36_spill] sm:$0xff]  ;;  %v6114_v53 = vld [vmem:[#allocation37_spill] sm:$0xff] }
  0xb5   :  { %3346 = vmatprep.subr.bf16.mxu1 %v4190_v58  ;;  %v6115_v58 = vld [vmem:[#allocation38_spill] sm:$0xff] }
  0xb7   :  { %3284 = vmatpush1.bf16.msra.mxu0 %v4193_v4  ;;  %v6116_v4 = vld [vmem:[#allocation39_spill] sm:$0xff] }
  0xb8   :  { %3348 = vmatpush1.bf16.msra.mxu1 %v4197_v6  ;;  %3286 = vmatprep.subr.bf16.mxu0 %v4199_v9  ;;  %v6117_v6 = vld [vmem:[#allocation40_spill] sm:$0xff]  ;;  %v6118_v9 = vld [vmem:[#allocation41_spill] sm:$0xff] }
  0xb9   :  { %3350 = vmatprep.subr.bf16.mxu1 %v4202_v19  ;;  %v6119_v19 = vld [vmem:[#allocation42_spill] sm:$0xff] }
  0xbb   :  { %3288 = vmatpush1.bf16.msra.mxu0 %v4205_v29  ;;  %v6120_v29 = vld [vmem:[#allocation43_spill] sm:$0xff] }
  0xbc   :  { %3352 = vmatpush1.bf16.msra.mxu1 %v4209_v31  ;;  %3290 = vmatprep.subr.bf16.mxu0 %v4211_v36  ;;  %v6121_v31 = vld [vmem:[#allocation44_spill] sm:$0xff]  ;;  %v6122_v36 = vld [vmem:[#allocation45_spill] sm:$0xff] }
  0xbd   :  { %3354 = vmatprep.subr.bf16.mxu1 %v6084_v7  ;;  %v6135_v7 = vld [vmem:[#allocation58_spill] sm:$0xff] }
  0xbf   :  { %3292 = vmatpush1.bf16.msra.mxu0 %v6085_v8  ;;  %v6136_v8 = vld [vmem:[#allocation59_spill] sm:$0xff] }
  0xc0   :  { %3356 = vmatpush1.bf16.msra.mxu1 %v6086_v12  ;;  %3294 = vmatprep.subr.bf16.mxu0 %v6087_v16  ;;  %v6137_v12 = vld [vmem:[#allocation60_spill] sm:$0xff]  ;;  %v6138_v16 = vld [vmem:[#allocation61_spill] sm:$0xff] }
  0xc1   :  { %3358 = vmatprep.subr.bf16.mxu1 %v6088_v17  ;;  %v6139_v17 = vld [vmem:[#allocation62_spill] sm:$0xff] }
  0xc3   :  { %3296 = vmatpush1.bf16.msra.mxu0 %v6089_v21  ;;  %v6140_v21 = vld [vmem:[#allocation63_spill] sm:$0xff] }
  0xc4   :  { %3360 = vmatpush1.bf16.msra.mxu1 %v6090_v25  ;;  %3298 = vmatprep.subr.bf16.mxu0 %v6091_v26  ;;  %v6141_v25 = vld [vmem:[#allocation64_spill] sm:$0xff]  ;;  %v6142_v26 = vld [vmem:[#allocation65_spill] sm:$0xff] }
  0xc5   :  { %3362 = vmatprep.subr.bf16.mxu1 %v6092_v30  ;;  %v6143_v30 = vld [vmem:[#allocation66_spill] sm:$0xff] }
  0xc7   :  { %3300 = vmatpush1.bf16.msra.mxu0 %v6093_v34  ;;  %v6144_v34 = vld [vmem:[#allocation67_spill] sm:$0xff] }
  0xc8   :  { %3364 = vmatpush1.bf16.msra.mxu1 %v6094_v38  ;;  %3302 = vmatprep.subr.bf16.mxu0 %v6095_v39  ;;  %v6145_v38 = vld [vmem:[#allocation68_spill] sm:$0xff]  ;;  %v6146_v39 = vld [vmem:[#allocation69_spill] sm:$0xff] }
  0xc9   :  { %3366 = vmatprep.subr.bf16.mxu1 %v6096_v43  ;;  %v6147_v43 = vld [vmem:[#allocation70_spill] sm:$0xff] }
  0xcb   :  { %3304 = vmatpush1.bf16.msra.mxu0 %v6097_v50  ;;  %v6148_v50 = vld [vmem:[#allocation71_spill] sm:$0xff] }
  0xcc   :  { %3368 = vmatpush1.bf16.msra.mxu1 %v6098_v51  ;;  %3306 = vmatprep.subr.bf16.mxu0 %v6099_v52  ;;  %v6149_v51 = vld [vmem:[#allocation72_spill] sm:$0xff]  ;;  %v6150_v52 = vld [vmem:[#allocation73_spill] sm:$0xff] }
  0xcd   :  { %3370 = vmatprep.subr.bf16.mxu1 %v6100_v56  ;;  %v6151_v56 = vld [vmem:[#allocation74_spill] sm:$0xff] }
  0xcf   :  { %3308 = vmatpush1.bf16.msra.mxu0 %v6101_v62  ;;  %v6152_v62 = vld [vmem:[#allocation75_spill] sm:$0xff] }
  0xd0   :  { %3372 = vmatpush1.bf16.msra.mxu1 %v6102_v63  ;;  %3310 = vmatprep.subr.bf16.mxu0 %v6103_v0  ;;  %v6153_v63 = vld [vmem:[#allocation76_spill] sm:$0xff]  ;;  %v6154_v0 = vld [vmem:[#allocation77_spill] sm:$0xff] }
  0xd1   :  { %3374 = vmatprep.subr.bf16.mxu1 %v6104_v5  ;;  %v6155_v5 = vld [vmem:[#allocation78_spill] sm:$0xff] }
  0xd3   :  { %3312 = vmatpush1.bf16.msra.mxu0 %v6105_v14  ;;  %v6156_v14 = vld [vmem:[#allocation79_spill] sm:$0xff] }
  0xd4   :  { %3376 = vmatpush1.bf16.msra.mxu1 %v6106_v18  ;;  %3378 = vmatprep.subr.bf16.mxu0 %v6107_v23  ;;  %v6157_v18 = vld [vmem:[#allocation80_spill] sm:$0xff]  ;;  %v6158_v23 = vld [vmem:[#allocation81_spill] sm:$0xff] }
  0xd5   :  { %3442 = vmatprep.subr.bf16.mxu1 %v6108_v32 }
  0xd6   :  { %1353 = vmatmul.mubr.f32.vlgmr.msra.gmra.mrb[4].mxu0 %v4571_v15 }
  0xd7   :  { %1424 = vmatmul.mubr.f32.vlgmr.msra.gmra.mrb[4].mxu1 %v4571_v15  ;;  %3380 = vmatpush1.bf16.msra.mxu0 %v6109_v33 }
  0xd8   :  { %3444 = vmatpush1.bf16.msra.mxu1 %v4305_v10  ;;  %3382 = vmatprep.subr.bf16.mxu0 %v6110_v35  ;;  %v6124_v10 = vld [vmem:[#allocation47_spill] sm:$0xff] }
  0xd9   :  { %3446 = vmatprep.subr.bf16.mxu1 %v6111_v41  ;;  %1494 = vmatprep.mubr.f32.mxu0 %v4500_v20 }
  0xda   :  { %1565 = vmatprep.mubr.f32.mxu1 %v4500_v20  ;;  %v6134_v20 = vld [vmem:[#allocation57_spill] sm:$0xff] }
  0xdb   :  { %3384 = vmatpush1.bf16.msra.mxu0 %v6112_v48  ;;  %v30_v48 = vlaneseq }
  0xdc   :  { %3448 = vmatpush1.bf16.msra.mxu1 %v6113_v49  ;;  %3386 = vmatprep.subr.bf16.mxu0 %v6114_v53 }
  0xdd   :  { %3450 = vmatprep.subr.bf16.mxu1 %v6115_v58  ;;  %v4717_v49 = vand.u32 127, %v30_v48 }
  0xdf   :  { %3388 = vmatpush1.bf16.msra.mxu0 %v6116_v4  ;;  %v4723_v58 = vadd.s32 128, %v4717_v49 }
  0xe0   :  { %3452 = vmatpush1.bf16.msra.mxu1 %v6117_v6  ;;  %3390 = vmatprep.subr.bf16.mxu0 %v6118_v9 }
  0xe1   :  { %3454 = vmatprep.subr.bf16.mxu1 %v6119_v19  ;;  %v50_v6 = vand.u32 31, %v4723_v58  ;;  %v34_v19 = vadd.s32 384, %v4717_v49 }
  0xe3   :  { %3392 = vmatpush1.bf16.msra.mxu0 %v6120_v29  ;;  %v33_v29 = vadd.s32 256, %v4717_v49  ;;  %vm4740_vm2 = vcmp.ge.s32.totalorder %v50_v6, 1 }
  0xe4   :  { %3456 = vmatpush1.bf16.msra.mxu1 %v6121_v31  ;;  %3394 = vmatprep.subr.bf16.mxu0 %v6122_v36  ;;  %vm4761_vm4 = vmpackc.low %vm5931_vm3, %vm4740_vm2 }
  0xe5   :  { %3458 = vmatprep.subr.bf16.mxu1 %v6123_v27 }
  0xe7   :  { %3396 = vmatpush1.bf16.msra.mxu0 %v6124_v10 }
  0xe8   :  { %3460 = vmatpush1.bf16.msra.mxu1 %v6125_v40  ;;  %3398 = vmatprep.subr.bf16.mxu0 %v6126_v59  ;;  %v64_v59 = vand.u32 31, %v34_v19 }
  0xe9   :  { %3462 = vmatprep.subr.bf16.mxu1 %v6127_v28 }
  0xea   :  { %vm4769_vm5 = vcmp.ge.s32.totalorder %v64_v59, 1  ;;  %vm4829_vm11 = vcmp.lt.s32.totalorder %v64_v59, 31 }
  0xeb   :  { %3400 = vmatpush1.bf16.msra.mxu0 %v6128_v24  ;;  %vm4794_vm7 = vmpackc.low %vm5931_vm3, %vm4769_vm5 }
  0xec   :  { %3464 = vmatpush1.bf16.msra.mxu1 %v6129_v54  ;;  %3402 = vmatprep.subr.bf16.mxu0 %v6130_v55  ;;  %v57_v54 = vand.u32 31, %v33_v29  ;;  %vm5927_vm13 = vmpackc.low %vm4769_vm5, %vm4829_vm11 }
  0xed   :  { %3466 = vmatprep.subr.bf16.mxu1 %v6131_v45 }
  0xee   :  { %vm4775_vm6 = vcmp.ge.s32.totalorder %v57_v54, 1  ;;  %vm4833_vm12 = vcmp.lt.s32.totalorder %v57_v54, 31 }
  0xef   :  { %3404 = vmatpush1.bf16.msra.mxu0 %v6132_v47  ;;  %vm4806_vm8 = vmpackc.low %vm5931_vm3, %vm4775_vm6 }
  0xf0   :  { %3468 = vmatpush1.bf16.msra.mxu1 %v6133_v11  ;;  %3406 = vmatprep.subr.bf16.mxu0 %v6134_v20  ;;  %vm5926_vm14 = vmpackc.low %vm4775_vm6, %vm4833_vm12 }
  0xf1   :  { %3470 = vmatprep.subr.bf16.mxu1 %v6135_v7 }
  0xf3   :  { %3408 = vmatpush1.bf16.msra.mxu0 %v6136_v8 }
  0xf4   :  { %3472 = vmatpush1.bf16.msra.mxu1 %v6137_v12  ;;  %3410 = vmatprep.subr.bf16.mxu0 %v6138_v16  ;;  %v6163_v16 = vmov 0 }
  0xf5   :  { %3474 = vmatprep.subr.bf16.mxu1 %v6139_v17  ;;  %v6164_v16 = vsel %vm4769_vm5, 4294967295, %v6163_v16 }
  0xf7   :  { %3412 = vmatpush1.bf16.msra.mxu0 %v6140_v21 }
  0xf8   :  { %3476 = vmatpush1.bf16.msra.mxu1 %v6141_v25  ;;  %3414 = vmatprep.subr.bf16.mxu0 %v6142_v26  ;;  %v6165_v25 = vmov 0 }
  0xf9   :  { %3478 = vmatprep.subr.bf16.mxu1 %v6143_v30  ;;  %v6166_v25 = vsel %vm4775_vm6, 4294967295, %v6165_v25  ;;  %vm6193_vm6 = vcmask 1039360  }
  0xfa   :  { %6167 = vst [vmem:[#allocation7_spill] sm:$0xff] %v6166_v25  ;;  %vm6194_vm5 = vmmov %vm6193_vm6 }
  0xfb   :  { %3416 = vmatpush1.bf16.msra.mxu0 %v6144_v34 }
  0xfc   :  { %3480 = vmatpush1.bf16.msra.mxu1 %v6145_v38  ;;  %3418 = vmatprep.subr.bf16.mxu0 %v6146_v39 }
  0xfd   :  { %3482 = vmatprep.subr.bf16.mxu1 %v6147_v43 }
  0xff   :  { %3420 = vmatpush1.bf16.msra.mxu0 %v6148_v50 }
 0x100   :  { %3484 = vmatpush1.bf16.msra.mxu1 %v6149_v51  ;;  %3422 = vmatprep.subr.bf16.mxu0 %v6150_v52 }
 0x101   :  { %3486 = vmatprep.subr.bf16.mxu1 %v6151_v56 }
 0x103   :  { %3424 = vmatpush1.bf16.msra.mxu0 %v6152_v62 }
 0x104   :  { %3488 = vmatpush1.bf16.msra.mxu1 %v6153_v63  ;;  %3426 = vmatprep.subr.bf16.mxu0 %v6154_v0  ;;  %v6171_v63 = vmov 0 }
 0x105   :  { %3490 = vmatprep.subr.bf16.mxu1 %v6155_v5  ;;  %v6172_v63 = vsel %vm4806_vm8, 4294967295, %v6171_v63 }
 0x107   :  { %3428 = vmatpush1.bf16.msra.mxu0 %v6156_v14  ;;  %v4719_v53 = vpop.permute.xlu1 %1250 }
 0x108   :  { %3492 = vmatpush1.bf16.msra.mxu1 %v6157_v18  ;;  %3430 = vmatprep.subr.bf16.mxu0 %v4455_v2 }
 0x109   :  { %3494 = vmatprep.subr.bf16.mxu1 %v6158_v23 }
 0x10b   :  { %3432 = vmatpush1.bf16.msra.mxu0 %v4461_v57 }
 0x10c   :  { %3496 = vmatpush1.bf16.msra.mxu1 %v4465_v60  ;;  %3434 = vmatprep.subr.bf16.mxu0 %v4467_v1 }
 0x10d   :  { %3498 = vmatprep.subr.bf16.mxu1 %v4470_v44 }
 0x10f   :  { %3436 = vmatpush1.bf16.msra.mxu0 %v4473_v61 }
 0x110   :  { %3500 = vmatpush1.bf16.msra.mxu1 %v4477_v42  ;;  %3438 = vmatprep.subr.bf16.mxu0 %v4479_v46 }
 0x111   :  { %3502 = vmatprep.subr.bf16.mxu1 %v4482_v22 }
 0x113   :  { %3440 = vmatpush1.bf16.msra.mxu0 %v4485_v13 }
 0x114   :  { %3504 = vmatpush1.bf16.msra.mxu1 %v4489_v37 }
 0x116   :  { %1495 = vmatmul.mubr.f32.vlgmr.msra.gmra.mrb[6].mxu0 %v4571_v15 }
 0x117   :  { %1566 = vmatmul.mubr.f32.vlgmr.msra.gmra.mrb[6].mxu1 %v4571_v15  ;;  %2337 = vmatprep.mubr.f32.mxu0 %v5946_v3 }
 0x118   :  { %2408 = vmatprep.mubr.f32.mxu1 %v5946_v3 }
 0x129   :  { %v4646_v57 = vpop.f32.mrb[0].mxu0 }
 0x12a   :  { %v4648_v61 = vpop.f32.mrb[0].mxu1  ;;  %1234 = vrot.lane.b32.xlu1 %v4646_v57, %s4053_s4  ;;  %v4652_v2 = vpop.f32.mrb[1].mxu0 }
 0x12b   :  { %1238 = vrot.lane.b32.xlu0 %v4648_v61, %s4053_s4  ;;  %v3720_v60 = vpack.i.bf16 %v4652_v2, %v4646_v57  ;;  %v4658_v1 = vpop.f32.mrb[1].mxu1  ;;  %v3755_v42 = vpack.i.bf16 %v4648_v61, %v4652_v2 }
 0x12c   :  { %v3725_v44 = vpack.i.bf16 %v4658_v1, %v4648_v61 }
 0x12e   :  { %3721 = vrot.lane.b32.xlu1 %v3720_v60, %s4054_s0 }
 0x12f   :  { %3711 = vrot.lane.b32.xlu0 %v3720_v60, %s4055_s7 }
 0x132   :  { %3726 = vrot.lane.b32.xlu1 %v3725_v44, %s4054_s0 }
 0x133   :  { %3716 = vrot.lane.b32.xlu0 %v3725_v44, %s4055_s7 }
 0x136   :  { %3736 = vrot.lane.b32.xlu1 %v3725_v44, %s4056_s8 }
 0x137   :  { %3731 = vrot.lane.b32.xlu0 %v3720_v60, %s4056_s8 }
 0x13a   :  { %3746 = vrot.lane.b32.xlu1 %v3725_v44, %s4057_s9 }
 0x13b   :  { %3741 = vrot.lane.b32.xlu0 %v3720_v60, %s4057_s9 }
 0x13e   :  { %3756 = vrot.lane.b32.xlu1 %v3755_v42, %s4058_s10 }
 0x13f   :  { %3751 = vrot.lane.b32.xlu0 %v3755_v42, %s4059_s11 }
 0x142   :  { %3761 = vrot.lane.b32.xlu1 %v3755_v42, %s4060_s12 }
 0x146   :  { %1236 = vrot.lane.b32.xlu1 %v4652_v2, %s4053_s4 }
 0x14a   :  { %1240 = vrot.lane.b32.xlu1 %v4658_v1, %s4053_s4 }
 0x169   :  { %v4679_v46 = vpop.f32.mrb[2].mxu0 }
 0x16a   :  { %v4681_v22 = vpop.f32.mrb[3].mxu0  ;;  %v4683_v13 = vpop.f32.mrb[2].mxu1  ;;  %v3770_v37 = vpack.i.bf16 %v4679_v46, %v5946_v3  ;;  %v3785_v15 = vpack.i.bf16 %v4679_v46, %v4658_v1 }
 0x16b   :  { %v4689_v32 = vpop.f32.mrb[3].mxu1  ;;  %v3805_v33 = vpack.i.bf16 %v4681_v22, %v4646_v57  ;;  %v3815_v35 = vpack.i.bf16 %v4683_v13, %v4681_v22 }
 0x16c   :  { %3771 = vrot.lane.b32.xlu1 %v3770_v37, %s4054_s0  ;;  %3766 = vrot.lane.b32.xlu0 %v3770_v37, %s4055_s7  ;;  %v3835_v41 = vpack.i.bf16 %v4689_v32, %v4683_v13 }
 0x170   :  { %3781 = vrot.lane.b32.xlu1 %v3770_v37, %s4057_s9  ;;  %3776 = vrot.lane.b32.xlu0 %v3770_v37, %s4056_s8  ;;  %v6175_v37 = vmov 0 }
 0x171   :  { %v6176_v37 = vsel %vm4829_vm11, 4294967295, %v6175_v37 }
 0x174   :  { %3786 = vrot.lane.b32.xlu1 %v3785_v15, %s4059_s11  ;;  %3791 = vrot.lane.b32.xlu0 %v3785_v15, %s4058_s10 }
 0x178   :  { %1246 = vrot.lane.b32.xlu1 %v4683_v13, %s4053_s4  ;;  %3796 = vrot.lane.b32.xlu0 %v3785_v15, %s4060_s12  ;;  %v6177_v15 = vmov 0 }
 0x179   :  { %v6178_v15 = vsel %vm4833_vm12, 4294967295, %v6177_v15 }
 0x17a   :  { %6179 = vst [vmem:[#allocation11_spill] sm:$0xff] %v6178_v15  ;;  %v6213_v15 = vmov 0.0  }
 0x17c   :  { %1242 = vrot.lane.b32.xlu0 %v4679_v46, %s4053_s4  ;;  %3806 = vrot.lane.b32.xlu1 %v3805_v33, %s4058_s10 }
 0x180   :  { %3816 = vrot.lane.b32.xlu1 %v3815_v35, %s4055_s7  ;;  %3801 = vrot.lane.b32.xlu0 %v3805_v33, %s4059_s11 }
 0x184   :  { %3821 = vrot.lane.b32.xlu1 %v3815_v35, %s4054_s0  ;;  %3811 = vrot.lane.b32.xlu0 %v3805_v33, %s4060_s12 }
 0x188   :  { %3826 = vrot.lane.b32.xlu0 %v3815_v35, %s4056_s8 }
 0x18c   :  { %3831 = vrot.lane.b32.xlu0 %v3815_v35, %s4057_s9 }
 0x190   :  { %3836 = vrot.lane.b32.xlu0 %v3835_v41, %s4059_s11 }
 0x194   :  { %3841 = vrot.lane.b32.xlu0 %v3835_v41, %s4058_s10 }
 0x198   :  { %3846 = vrot.lane.b32.xlu0 %v3835_v41, %s4060_s12 }
 0x19c   :  { %v4725_v4 = vpop.permute.xlu1 %1234  ;;  %1244 = vrot.lane.b32.xlu0 %v4681_v22, %s4053_s4 }
 0x19d   :  { %v4730_v9 = vpop.permute.xlu0 %1238 }
 0x1a0   :  { %v4734_v31 = vpop.permute.xlu1 %3721  ;;  %1248 = vrot.lane.b32.xlu0 %v4689_v32, %s4053_s4 }
 0x1a1   :  { %v3724_v27 = vunpack.i.h.bf16 %v4734_v31  ;;  %v3723_v10 = vunpack.i.l.bf16 %v4734_v31  ;;  %v4746_v40 = vpop.permute.xlu0 %3711 }
 0x1a2   :  { %v3714_v28 = vunpack.i.h.bf16 %v4746_v40  ;;  %v3713_v24 = vunpack.i.l.bf16 %v4746_v40  ;;  %v6186_v40 = vmov 0 }
 0x1a3   :  { %v824_v55 = vsel %vm5930_vm0, %v3723_v10, %v3724_v27 }
 0x1a4   :  { %v755_v45 = vsel %vm5929_vm1, %v3713_v24, %v3714_v28  ;;  %v4756_v47 = vpop.permute.xlu1 %3726 }
 0x1a5   :  { %v3505_v20 = vpack.c.bf16 %v824_v55, %v755_v45  ;;  %v3729_v7 = vunpack.i.h.bf16 %v4756_v47  ;;  %v3728_v8 = vunpack.i.l.bf16 %v4756_v47  ;;  %v4767_v12 = vpop.permute.xlu0 %3716 }
 0x1a6   :  { %v3719_v17 = vunpack.i.h.bf16 %v4767_v12  ;;  %v3718_v21 = vunpack.i.l.bf16 %v4767_v12 }
 0x1a7   :  { %v825_v26 = vsel %vm5930_vm0, %v3724_v27, %v3728_v8  ;;  %v826_v30 = vsel %vm5930_vm0, %v3728_v8, %v3729_v7  ;;  %3507 = vmatprep.subr.msk.bf16.mxu0 %vm4761_vm4, %v3505_v20 }
 0x1a8   :  { %v756_v34 = vsel %vm5929_vm1, %v3714_v28, %v3718_v21  ;;  %v757_v38 = vsel %vm5929_vm1, %v3718_v21, %v3719_v17  ;;  %v4789_v39 = vpop.permute.xlu1 %3736 }
 0x1a9   :  { %v3529_v50 = vpack.c.bf16 %v826_v30, %v757_v38  ;;  %v3532_v51 = vpack.c.bf16 %v825_v26, %v756_v34  ;;  %v3739_v52 = vunpack.i.h.bf16 %v4789_v39  ;;  %v4799_v56 = vpop.permute.xlu0 %3731  ;;  %v4801_v62 = vpop.f32.mrb[4].mxu0  ;;  %v3738_v18 = vunpack.i.l.bf16 %v4789_v39 }
 0x1aa   :  { %6170 = vst [vmem:[#allocation8_spill] sm:$0xff] %v4801_v62  ;;  %v4810_v0 = vpop.f32.mrb[5].mxu0  ;;  %v4812_v5 = vpop.f32.mrb[4].mxu1  ;;  %v3860_v14 = vpack.i.bf16 %v4801_v62, %v4689_v32  ;;  %v3734_v44 = vunpack.i.h.bf16 %v4799_v56 }
 0x1ab   :  { %6173 = vst [vmem:[#allocation9_spill] sm:$0xff] %v4812_v5  ;;  %3531 = vmatprep.subr.msk.bf16.mxu1 %vm4794_vm7, %v3529_v50  ;;  %v3885_v23 = vpack.i.bf16 %v4812_v5, %v4810_v0  ;;  %v4821_v60 = vpop.f32.mrb[5].mxu1  ;;  %v903_v33 = vsel %vm5928_vm9, %v3738_v18, %v3739_v52  ;;  %v3870_v45 = vpack.i.bf16 %v4810_v0, %v5946_v3  ;;  %v43_v50 = vand.u32 31, %v4717_v49 }
 0x1ac   :  { %6174 = vst [vmem:[#allocation10_spill] sm:$0xff] %v4821_v60  ;;  %3534 = vmatpush1.bf16.msk.msra.mxu1 %vm4806_vm8, %v3532_v51  ;;  %v4826_v42 = vpop.permute.xlu1 %3746  ;;  %3861 = vrot.lane.b32.xlu1 %v3860_v14, %s4056_s8  ;;  %v3925_v27 = vpack.i.bf16 %v4821_v60, %v4812_v5  ;;  %v902_v59 = vsel %vm5928_vm9, %v3734_v44, %v3738_v18  ;;  %v3733_v51 = vunpack.i.l.bf16 %v4799_v56 }
 0x1ad   :  { %v3749_v35 = vunpack.i.h.bf16 %v4826_v42  ;;  %v3748_v41 = vunpack.i.l.bf16 %v4826_v42  ;;  %v4842_v48 = vpop.permute.xlu0 %3741  ;;  %3851 = vrot.lane.b32.xlu0 %v3860_v14, %s4055_s7  ;;  %v3890_v20 = vpack.i.bf16 %v5946_v3, %v4821_v60  ;;  %vm4919_vm15 = vcmp.ge.s32.totalorder %v43_v50, 1 }
 0x1ae   :  { %v3744_v19 = vunpack.i.h.bf16 %v4842_v48  ;;  %v3743_v30 = vunpack.i.l.bf16 %v4842_v48 }
 0x1af   :  { %v972_v29 = vsel %vm5934_vm10, %v3748_v41, %v3749_v35 }
 0x1b0   :  { %v3535_v28 = vpack.c.bf16 %v972_v29, %v903_v33  ;;  %v971_v54 = vsel %vm5934_vm10, %v3744_v19, %v3748_v41  ;;  %3866 = vrot.lane.b32.xlu1 %v3860_v14, %s4057_s9  ;;  %v4891_v8 = vpop.permute.xlu1 %3756  ;;  %v6180_v33 = vmov 0 }
 0x1b1   :  { %v3538_v55 = vpack.c.bf16 %v971_v54, %v902_v59  ;;  %3856 = vrot.lane.b32.xlu0 %v3860_v14, %s4054_s0  ;;  %v4908_v34 = vpop.permute.xlu0 %3751  ;;  %v970_v14 = vsel %vm5934_vm10, %v3743_v30, %v3744_v19  ;;  %v6181_v33 = vsel %vm4919_vm15, 4294967295, %v6180_v33  ;;  %v901_v59 = vsel %vm5928_vm9, %v3733_v51, %v3734_v44  ;;  %vm4961_vm9 = vmpackc.low %vm5931_vm3, %vm4919_vm15 }
 0x1b2   :  { %3537 = vmatprep.subr.msk.bf16.mxu1 %vm5927_vm13, %v3535_v28  ;;  %vm5933_vm13 = vcmask 1039360   ;;  %v3754_v28 = vunpack.i.h.bf16 %v4908_v34  ;;  %v5948_v58 = vunpack.i.l.bf16 %v4908_v34  ;;  %v3511_v31 = vpack.c.bf16 %v970_v14, %v901_v59 }
 0x1b3   :  { %3540 = vmatpush1.bf16.msk.msra.mxu1 %vm5926_vm14, %v3538_v55  ;;  %vm4925_vm14 = vcmp.lt.s32.totalorder %v50_v6, 31  ;;  %vm6188_vm3 = vcmask 252928   ;;  %v3759_v42 = vunpack.i.h.bf16 %v4891_v8 }
 0x1b4   :  { %2078 = vrot.lane.b32.xlu1 %v4812_v5, %s4053_s4  ;;  %v4897_v21 = vpop.permute.xlu1 %3761  ;;  %v1055_v14 = vsel %vm5933_vm13, %v5948_v58, %v3754_v28  ;;  %vm6189_vm13 = vmmov %vm6188_vm3 }
 0x1b5   :  { %2074 = vrot.lane.b32.xlu0 %v4801_v62, %s4053_s4  ;;  %v3763_v5 = vunpack.i.l.bf16 %v4897_v21 }
 0x1b8   :  { %3871 = vrot.lane.b32.xlu1 %v3870_v45, %s4059_s11  ;;  %v4901_v26 = vpop.permute.xlu1 %1236 }
 0x1b9   :  { %3886 = vrot.lane.b32.xlu0 %v3885_v23, %s4055_s7 }
 0x1bc   :  { %3876 = vrot.lane.b32.xlu1 %v3870_v45, %s4058_s10  ;;  %v4910_v38 = vpop.permute.xlu1 %1240 }
 0x1bd   :  { %3896 = vrot.lane.b32.xlu0 %v3885_v23, %s4054_s0 }
 0x1c0   :  { %3881 = vrot.lane.b32.xlu1 %v3870_v45, %s4060_s12 }
 0x1c1   :  { %3906 = vrot.lane.b32.xlu0 %v3885_v23, %s4056_s8 }
 0x1c4   :  { %3891 = vrot.lane.b32.xlu1 %v3890_v20, %s4055_s7 }
 0x1c5   :  { %3916 = vrot.lane.b32.xlu0 %v3885_v23, %s4057_s9 }
 0x1c8   :  { %3901 = vrot.lane.b32.xlu1 %v3890_v20, %s4054_s0 }
 0x1c9   :  { %3926 = vrot.lane.b32.xlu0 %v3925_v27, %s4059_s11 }
 0x1cc   :  { %3911 = vrot.lane.b32.xlu1 %v3890_v20, %s4056_s8 }
 0x1cd   :  { %3931 = vrot.lane.b32.xlu0 %v3925_v27, %s4058_s10 }
 0x1d0   :  { %3921 = vrot.lane.b32.xlu1 %v3890_v20, %s4057_s9 }
 0x1d1   :  { %3936 = vrot.lane.b32.xlu0 %v3925_v27, %s4060_s12 }
 0x1d5   :  { %2076 = vrot.lane.b32.xlu0 %v4810_v0, %s4053_s4 }
 0x1d9   :  { %2080 = vrot.lane.b32.xlu0 %v4821_v60, %s4053_s4 }
 0x1de   :  { %v4915_v18 = vpop.permute.xlu1 %3771  ;;  %v4917_v23 = vpop.permute.xlu0 %3766 }
 0x1df   :  { %v5944_v48 = vunpack.i.h.bf16 %v4915_v18  ;;  %v3773_v29 = vunpack.i.l.bf16 %v4915_v18  ;;  %v5942_v19 = vunpack.i.h.bf16 %v4917_v23  ;;  %v3768_v27 = vunpack.i.l.bf16 %v4917_v23 }
 0x1e1   :  { %v4943_v6 = vsel %vm5930_vm0, %v3729_v7, %v5944_v48  ;;  %v823_v54 = vsel %vm5930_vm0, %v3773_v29, %v3723_v10  ;;  %v4953_v56 = vsel %vm5929_vm1, %v3719_v17, %v5942_v19  ;;  %v754_v44 = vsel %vm5929_vm1, %v3768_v27, %v3713_v24  ;;  %vm5935_vm1 = vmpackc.low %vm4740_vm2, %vm4925_vm14 }
 0x1e2   :  { %v3508_v7 = vpack.c.bf16 %v823_v54, %v754_v44  ;;  %v4967_v12 = vpop.permute.xlu1 %3781  ;;  %v4969_v17 = vpop.permute.xlu0 %3776  ;;  %vm4975_vm0 = vcmp.lt.s32.totalorder %v43_v50, 31 }
 0x1e3   :  { %v6187_v40 = vsel %vm4975_vm0, 4294967295, %v6186_v40  ;;  %v5939_v24 = vunpack.i.h.bf16 %v4967_v12  ;;  %v3783_v55 = vunpack.i.l.bf16 %v4967_v12  ;;  %v5941_v45 = vunpack.i.h.bf16 %v4969_v17 }
 0x1e4   :  { %v3778_v20 = vunpack.i.l.bf16 %v4969_v17  ;;  %3510 = vmatpush1.bf16.msk.msra.mxu0 %vm4961_vm9, %v3508_v7 }
 0x1e5   :  { %v4993_v50 = vsel %vm5934_vm10, %v3749_v35, %v5939_v24  ;;  %v969_v29 = vsel %vm5934_vm10, %v3783_v55, %v3743_v30  ;;  %v5001_v27 = vsel %vm6188_vm3, %v3739_v52, %v5941_v45  ;;  %3513 = vmatprep.subr.msk.bf16.mxu0 %vm5935_vm1, %v3511_v31  ;;  %vm5940_vm10 = vmpackc.low %vm4919_vm15, %vm4975_vm0  ;;  %vm6190_vm3 = vmmov 1  }
 0x1e6   :  { %v900_v59 = vsel %vm6189_vm13, %v3778_v20, %v3733_v51  ;;  %v5015_v35 = vpop.permute.xlu1 %3786  ;;  %v5017_v52 = vpop.permute.xlu0 %3791  ;;  %vm5022_vm13 = vmpackc.low %vm4925_vm14, %vm6190_vm3  ;;  %v6191_v30 = vmov 0  ;;  %v3517_v51 = vpack.c.bf16 %v1055_v14, %v4652_v2  ;;  %v6196_v14 = vmov 0 }
 0x1e7   :  { %v3514_v39 = vpack.c.bf16 %v969_v29, %v900_v59  ;;  %v6192_v30 = vsel %vm5022_vm13, 4294967295, %v6191_v30  ;;  %v5938_v54 = vunpack.i.h.bf16 %v5015_v35  ;;  %v3788_v44 = vunpack.i.l.bf16 %v5015_v35  ;;  %vm5047_vm1 = vmpackc.low %vm4829_vm11, %vm6190_vm3 }
 0x1e8   :  { %v5952_v55 = vunpack.i.h.bf16 %v5017_v52  ;;  %v3793_v2 = vunpack.i.l.bf16 %v5017_v52  ;;  %v6197_v14 = vsel %vm5047_vm1, 4294967295, %v6196_v14  ;;  %vm6236_vm15 = vcmask 7168  }
 0x1e9   :  { %3516 = vmatpush1.bf16.msk.msra.mxu0 %vm5940_vm10, %v3514_v39  ;;  %v1056_v31 = vsel %vm6193_vm6, %v3754_v28, %v3788_v44  ;;  %v1057_v7 = vsel %vm6194_vm5, %v3788_v44, %v5938_v54  ;;  %v5040_v20 = vpop.f32.mrb[6].mxu0  ;;  %6198 = vst [vmem:[#allocation13_spill] sm:$0xff] %v6197_v14  ;;  %vm5062_vm5 = vmpackc.low %vm4833_vm12, %vm6190_vm3  ;;  %vm6204_vm10 = vcmask 793600  }
 0x1ea   :  { %6195 = vst [vmem:[#allocation12_spill] sm:$0xff] %v5040_v20  ;;  %3519 = vmatprep.subr.msk.bf16.mxu0 %vm5022_vm13, %v3517_v51  ;;  %v3541_v28 = vpack.c.bf16 %v1057_v7, %v4658_v1  ;;  %v3544_v29 = vpack.c.bf16 %v1056_v31, %v4648_v61  ;;  %v5053_v59 = vpop.f32.mrb[6].mxu1  ;;  %v5055_v39 = vpop.permute.xlu1 %1246  ;;  %v3940_v44 = vpack.i.bf16 %v4801_v62, %v5040_v20  ;;  %v6200_v51 = vmov 0  ;;  %vm6205_vm6 = vmmov %vm6204_vm10 }
 0x1eb   :  { %6199 = vst [vmem:[#allocation14_spill] sm:$0xff] %v5053_v59  ;;  %v6201_v51 = vsel %vm5062_vm5, 4294967295, %v6200_v51  ;;  %v3764_v1 = vunpack.i.h.bf16 %v4897_v21  ;;  %v5068_v61 = vpop.permute.xlu0 %3796  ;;  %v5070_v31 = vpop.f32.mrb[7].mxu0  ;;  %v1125_v45 = vsel %vm6204_vm10, %v3759_v42, %v3793_v2  ;;  %vm5959_vm10 = vcmask 777216  }
 0x1ec   :  { %6202 = vst [vmem:[#allocation15_spill] sm:$0xff] %v6201_v51  ;;  %6203 = vst [vmem:[#allocation16_spill] sm:$0xff] %v5070_v31  ;;  %v5953_v7 = vunpack.i.h.bf16 %v5068_v61  ;;  %v3798_v54 = vunpack.i.l.bf16 %v5068_v61  ;;  %3543 = vmatprep.subr.msk.bf16.mxu1 %vm5047_vm1, %v3541_v28  ;;  %3941 = vrot.lane.b32.xlu1 %v3940_v44, %s4059_s11  ;;  %v5079_v10 = vpack.i.bf16 %v5070_v31, %v5040_v20  ;;  %v5081_v24 = vpop.f32.mrb[7].mxu1  ;;  %vm6206_vm1 = vcmask 785408  }
 0x1ed   :  { %3546 = vmatpush1.bf16.msk.msra.mxu1 %vm5062_vm5, %v3544_v29  ;;  %v5088_v19 = vpack.i.bf16 %v5081_v24, %v5053_v59  ;;  %v1126_v28 = vsel %vm6205_vm6, %v3793_v2, %v5952_v55  ;;  %vm6207_vm13 = vmmov %vm6206_vm1  ;;  %v3758_v21 = vunpack.i.l.bf16 %v4891_v8  ;;  %v35_v55 = vadd.s32 512, %v4717_v49 }
 0x1ee   :  { %v1194_v48 = vsel %vm6206_vm1, %v3764_v1, %v3798_v54  ;;  %v1195_v3 = vsel %vm6207_vm13, %v3798_v54, %v5953_v7  ;;  %3956 = vrot.lane.b32.xlu0 %v5079_v10, %s4055_s7  ;;  %v5099_v58 = vpop.permute.xlu1 %3806  ;;  %v5109_v54 = vpack.i.bf16 %v5053_v59, %v5070_v31  ;;  %vm6209_vm13 = vcmask 1039360   ;;  %vm5146_vm6 = vmpackc.low %vm4975_vm0, %vm6190_vm3 }
 0x1ef   :  { %v3547_v29 = vpack.c.bf16 %v1195_v3, %v1126_v28  ;;  %v3550_v51 = vpack.c.bf16 %v1194_v48, %v1125_v45  ;;  %v5101_v14 = vpop.permute.xlu0 %1242  ;;  %v36_v28 = vadd.s32 640, %v4717_v49  ;;  %v3808_v8 = vunpack.i.l.bf16 %v5099_v58 }
 0x1f0   :  { %3946 = vrot.lane.b32.xlu1 %v3940_v44, %s4058_s10  ;;  %v1256_v2 = vsel %vm5959_vm10, %v4910_v38, %v5101_v14 }
 0x1f1   :  { %3549 = vmatprep.subr.msk.bf16.mxu1 %vm4794_vm7, %v3547_v29  ;;  %v1255_v29 = vsel %vm5959_vm10, %v4730_v9, %v4910_v38  ;;  %v6210_v38 = vmov 0  ;;  %v78_v62 = vand.u32 31, %v36_v28  ;;  %vm6214_vm10 = vcmask 785408  }
 0x1f2   :  { %3552 = vmatpush1.bf16.msk.msra.mxu1 %vm4806_vm8, %v3550_v51  ;;  %3966 = vrot.lane.b32.xlu0 %v5079_v10, %s4054_s0  ;;  %v5118_v3 = vpop.permute.xlu1 %3816  ;;  %v1193_v51 = vsel %vm6206_vm1, %v3763_v5, %v3764_v1  ;;  %v6211_v38 = vsel %vm5146_vm6, 4294967295, %v6210_v38  ;;  %vm5960_vm1 = vcmask 588800  }
 0x1f3   :  { %2919 = vmatprep.subr.msk.mxu1 %vm4829_vm11, %v1256_v2  ;;  %v5123_v48 = vpop.permute.xlu0 %3801  ;;  %v6208_v2 = vunpack.i.l.bf16 %v4908_v34  ;;  %v5153_v34 = vld [vmem:[%s5849_s2] sm:$0xff] }
 0x1f4   :  { %v3803_v45 = vunpack.i.l.bf16 %v5123_v48  ;;  %3951 = vrot.lane.b32.xlu1 %v3940_v44, %s4060_s12 }
 0x1f6   :  { %v1054_v7 = vsel %vm6209_vm13, %v3803_v45, %v6208_v2  ;;  %2920 = vmatpush1.msk.msra.mxu1 %vm4833_vm12, %v1255_v29  ;;  %3981 = vrot.lane.b32.xlu0 %v5088_v19, %s4056_s8  ;;  %v5141_v44 = vpop.permute.xlu1 %3821  ;;  %vm6212_vm13 = vcmask 793600   ;;  %vm6228_vm12 = vcmask 777216  }
 0x1f7   :  { %v1124_v1 = vsel %vm6212_vm13, %v3758_v21, %v3759_v42  ;;  %v3520_v45 = vpack.c.bf16 %v1054_v7, %v4646_v57  ;;  %v5157_v29 = vpop.permute.xlu0 %3811  ;;  %2882 = vmatmul.mubr.msk.f32.vlgmr.msra.gmra.mrb[8].mxu1 %vm5960_vm1, %v5153_v34  ;;  %v3823_v25 = vunpack.i.l.bf16 %v5141_v44  ;;  %v71_v57 = vand.u32 31, %v35_v55 }
 0x1f8   :  { %v3523_v2 = vpack.c.bf16 %v1193_v51, %v1124_v1  ;;  %v3813_v60 = vunpack.i.l.bf16 %v5157_v29  ;;  %2082 = vrot.lane.b32.xlu1 %v5040_v20, %s4053_s4  ;;  %2550 = vmatprep.mubr.f32.mxu1 %v6213_v15  ;;  %v1123_v42 = vsel %vm6212_vm13, %v3808_v8, %v3758_v21  ;;  %v3818_v51 = vunpack.i.l.bf16 %v5118_v3 }
 0x1f9   :  { %3522 = vmatpush1.bf16.msk.msra.mxu0 %vm5146_vm6, %v3520_v45  ;;  %vm5179_vm1 = vcmp.ge.s32.totalorder %v78_v62, 1  ;;  %v6215_v55 = vmov 0  ;;  %vm6219_vm13 = vcmask 261120   ;;  %v4000_v8 = vpack.i.bf16 %v6213_v15, %v5081_v24 }
 0x1fa   :  { %v1192_v7 = vsel %vm6214_vm10, %v3813_v60, %v3763_v5  ;;  %3525 = vmatprep.subr.msk.bf16.mxu0 %vm4761_vm4, %v3523_v2  ;;  %3991 = vrot.lane.b32.xlu0 %v5088_v19, %s4057_s9  ;;  %v6216_v55 = vsel %vm5179_vm1, 4294967295, %v6215_v55  ;;  %vm6217_vm10 = vcmask 777216   ;;  %v6218_v60 = vunpack.i.h.bf16 %v4915_v18 }
 0x1fb   :  { %v3526_v1 = vpack.c.bf16 %v1192_v7, %v1123_v42  ;;  %v5175_v28 = vpop.permute.xlu0 %3826  ;;  %v1254_v5 = vsel %vm6217_vm10, %v4901_v26, %v4730_v9  ;;  %vm5195_vm5 = vcmp.ge.s32.totalorder %v71_v57, 1  ;;  %v6220_v45 = vmov 0 }
 0x1fc   :  { %3961 = vrot.lane.b32.xlu1 %v5088_v19, %s4055_s7  ;;  %v828_v21 = vsel %vm6219_vm13, %v6218_v60, %v3823_v25  ;;  %v6221_v45 = vsel %vm5195_vm5, 4294967295, %v6220_v45  ;;  %v5983_v2 = vunpack.i.l.bf16 %v5175_v28  ;;  %v6222_v9 = vunpack.i.h.bf16 %v4917_v23  ;;  %vm5213_vm13 = vmpackc.low %vm6190_vm3, %vm5179_vm1 }
 0x1fd   :  { %3528 = vmatpush1.bf16.msk.msra.mxu0 %vm4961_vm9, %v3526_v1  ;;  %vm6223_vm10 = vcmask 269312   ;;  %v6224_v7 = vmov 0  ;;  %vm5217_vm6 = vcmp.lt.s32.totalorder %v78_v62, 31  ;;  %v6226_v1 = vmov 0 }
 0x1fe   :  { %2907 = vmatprep.subr.msk.mxu0 %vm4925_vm14, %v1254_v5  ;;  %v759_v18 = vsel %vm6223_vm10, %v6222_v9, %v3818_v51  ;;  %4001 = vrot.lane.b32.xlu0 %v4000_v8, %s4059_s11  ;;  %v6225_v7 = vsel %vm5213_vm13, 4294967295, %v6224_v7  ;;  %v6227_v1 = vsel %vm5217_vm6, 4294967295, %v6226_v1  ;;  %v1253_v23 = vsel %vm6228_vm12, %v4725_v4, %v4901_v26  ;;  %vm5230_vm10 = vmpackc.low %vm6190_vm3, %vm5195_vm5 }
 0x1ff   :  { %v5208_v42 = vpop.permute.xlu0 %3831  ;;  %v3553_v5 = vpack.c.bf16 %v828_v21, %v759_v18  ;;  %v6229_v9 = vmov 0  ;;  %vm5236_vm11 = vcmp.lt.s32.totalorder %v71_v57, 31  ;;  %v6231_v62 = vmov 0  ;;  %vm5972_vm8 = vmpackc.low %vm5179_vm1, %vm5217_vm6 }
 0x200   :  { %v5985_v60 = vunpack.i.l.bf16 %v5208_v42  ;;  %3971 = vrot.lane.b32.xlu1 %v5088_v19, %s4054_s0  ;;  %v6230_v9 = vsel %vm5230_vm10, 4294967295, %v6229_v9  ;;  %v6232_v62 = vsel %vm5236_vm11, 4294967295, %v6231_v62  ;;  %v3804_v4 = vunpack.i.h.bf16 %v5123_v48 }
 0x201   :  { %2908 = vmatpush1.msk.msra.mxu0 %vm4975_vm0, %v1253_v23  ;;  %v6233_v26 = vunpack.i.h.bf16 %v4969_v17  ;;  %vm6234_vm12 = vcmask 252928   ;;  %v6235_v21 = vunpack.i.h.bf16 %v4967_v12  ;;  %vm6237_vm0 = vcmask 588800  }
 0x202   :  { %3555 = vmatprep.subr.msk.bf16.mxu0 %vm5213_vm13, %v3553_v5  ;;  %2881 = vmatmul.mubr.msk.f32.vlgmr.msra.gmra.mrb[8].mxu0 %vm6237_vm0, %v5153_v34  ;;  %v6238_v12 = vpack.c.bf16 %v4943_v6, %v4953_v56  ;;  %v6239_v6 = vunpack.i.h.bf16 %v5015_v35  ;;  %vm5289_vm0 = vmpackc.low %vm5217_vm6, %vm6190_vm3  ;;  %v6242_v5 = vmov 0  ;;  %v6245_v35 = vpack.c.bf16 %v4993_v50, %v5001_v27 }
 0x203   :  { %v905_v19 = vsel %vm6234_vm12, %v6233_v26, %v5983_v2  ;;  %v974_v18 = vsel %vm6236_vm15, %v6235_v21, %v5985_v60  ;;  %4011 = vrot.lane.b32.xlu0 %v4000_v8, %s4058_s10  ;;  %v5260_v48 = vpop.permute.xlu0 %3836  ;;  %2479 = vmatprep.mubr.f32.mxu0 %v6213_v15  ;;  %vm6240_vm15 = vcmask 1039360   ;;  %v6243_v5 = vsel %vm5289_vm0, 4294967295, %v6242_v5 }
 0x204   :  { %v3559_v17 = vpack.c.bf16 %v974_v18, %v905_v19  ;;  %3558 = vmatpush1.bf16.msk.msra.mxu0 %vm5230_vm10, %v6238_v12  ;;  %v5982_v57 = vunpack.i.l.bf16 %v5260_v48  ;;  %3976 = vrot.lane.b32.xlu1 %v5079_v10, %s4056_s8  ;;  %v1058_v56 = vsel %vm6240_vm15, %v6239_v6, %v3804_v4  ;;  %vm6241_vm12 = vmmov %vm6240_vm15  ;;  %6244 = vst [vmem:[#allocation17_spill] sm:$0xff] %v6243_v5  ;;  %v3814_v50 = vunpack.i.h.bf16 %v5157_v29 }
 0x205   :  { %vm6246_vm15 = vmpackc.low %vm5195_vm5, %vm5236_vm11  ;;  %vm6267_vm5 = vcmask 7168  }
 0x206   :  { %3561 = vmatprep.subr.msk.bf16.mxu0 %vm5972_vm8, %v3559_v17  ;;  %v1059_v23 = vsel %vm6241_vm12, %v3804_v4, %v5982_v57  ;;  %vm5310_vm12 = vmpackc.low %vm5236_vm11, %vm6190_vm3  ;;  %v3809_v4 = vunpack.i.h.bf16 %v5099_v58  ;;  %vm6252_vm8 = vcmask 793600   ;;  %v6254_v17 = vunpack.i.h.bf16 %v5017_v52 }
 0x207   :  { %v3565_v26 = vpack.c.bf16 %v1059_v23, %v4681_v22  ;;  %4021 = vrot.lane.b32.xlu0 %v4000_v8, %s4060_s12  ;;  %v5295_v19 = vpop.permute.xlu0 %3841  ;;  %v6247_v22 = vmov 0  ;;  %v3568_v8 = vpack.c.bf16 %v1058_v56, %v4679_v46  ;;  %v6250_v46 = vunpack.i.h.bf16 %v5068_v61 }
 0x208   :  { %3564 = vmatpush1.bf16.msk.msra.mxu0 %vm6246_vm15, %v6245_v35  ;;  %3986 = vrot.lane.b32.xlu1 %v5079_v10, %s4057_s9  ;;  %v6248_v22 = vsel %vm5310_vm12, 4294967295, %v6247_v22  ;;  %v5977_v27 = vunpack.i.l.bf16 %v5295_v19  ;;  %vm6251_vm15 = vcmask 785408   ;;  %v38_v35 = vadd.s32 896, %v4717_v49 }
 0x209   :  { %6249 = vst [vmem:[#allocation18_spill] sm:$0xff] %v6248_v22  ;;  %3567 = vmatprep.subr.msk.bf16.mxu0 %vm5289_vm0, %v3565_v26  ;;  %v1196_v29 = vsel %vm6251_vm15, %v6250_v46, %v3814_v50  ;;  %vm6253_vm0 = vmmov %vm6251_vm15  ;;  %v3824_v46 = vunpack.i.h.bf16 %v5141_v44 }
 0x20a   :  { %v1128_v58 = vsel %vm6252_vm8, %v3809_v4, %v5977_v27 }
 0x20b   :  { %2086 = vrot.lane.b32.xlu0 %v5053_v59, %s4053_s4  ;;  %v5322_v10 = vpop.permute.xlu0 %3846 }
 0x20c   :  { %3570 = vmatpush1.bf16.msk.msra.mxu0 %vm5310_vm12, %v3568_v8  ;;  %v5979_v21 = vunpack.i.l.bf16 %v5322_v10  ;;  %3996 = vrot.lane.b32.xlu1 %v5109_v54, %s4059_s11  ;;  %vm6255_vm12 = vmmov %vm6252_vm8  ;;  %vm6256_vm8 = vcmask 777216  }
 0x20d   :  { %v1127_v12 = vsel %vm6255_vm12, %v6254_v17, %v3809_v4  ;;  %vm6258_vm12 = vcmask 588800  }
 0x20e   :  { %v1197_v18 = vsel %vm6253_vm0, %v3814_v50, %v5979_v21  ;;  %v3574_v61 = vpack.c.bf16 %v1196_v29, %v1127_v12  ;;  %vm6257_vm0 = vmmov %vm6256_vm8  ;;  %v92_v50 = vand.u32 31, %v38_v35  ;;  %v6264_v35 = vmov 0 }
 0x20f   :  { %v3571_v6 = vpack.c.bf16 %v1197_v18, %v1128_v58  ;;  %v1245_v56 = vpop.permute.xlu0 %1244  ;;  %2090 = vrot.lane.b32.xlu0 %v6213_v15, %s4053_s4  ;;  %v3819_v18 = vunpack.i.h.bf16 %v5118_v3  ;;  %v6275_v3 = vmov 0 }
 0x210   :  { %4006 = vrot.lane.b32.xlu1 %v5109_v54, %s4058_s10  ;;  %v1258_v23 = vsel %vm6256_vm8, %v1245_v56, %v5055_v39  ;;  %v1257_v52 = vsel %vm6257_vm0, %v5101_v14, %v1245_v56  ;;  %v37_v14 = vadd.s32 768, %v4717_v49  ;;  %vm5382_vm15 = vcmp.ge.s32.totalorder %v92_v50, 1 }
 0x211   :  { %3573 = vmatprep.subr.msk.bf16.mxu0 %vm5213_vm13, %v3571_v6  ;;  %v6259_v49 = vmov 0  ;;  %v3834_v6 = vunpack.i.h.bf16 %v5208_v42  ;;  %vm6263_vm0 = vcmask 261120   ;;  %vm5409_vm1 = vmpackc.low %vm6190_vm3, %vm5382_vm15  ;;  %vm6281_vm13 = vcmask 1039360  }
 0x212   :  { %3576 = vmatpush1.bf16.msk.msra.mxu0 %vm5230_vm10, %v3574_v61  ;;  %v85_v4 = vand.u32 31, %v37_v14  ;;  %v6260_v49 = vsel %vm5382_vm15, 4294967295, %v6259_v49  ;;  %v3829_v14 = vunpack.i.h.bf16 %v5175_v28  ;;  %vm6278_vm10 = vcmask 7168  }
 0x213   :  { %2931 = vmatprep.subr.msk.mxu0 %vm5217_vm6, %v1258_v23  ;;  %v5364_v26 = vpop.permute.xlu0 %1248  ;;  %v6261_v23 = vmov 0  ;;  %vm6268_vm6 = vmmov %vm6263_vm0 }
 0x214   :  { %4016 = vrot.lane.b32.xlu1 %v5109_v54, %s4060_s12  ;;  %vm5389_vm8 = vcmp.ge.s32.totalorder %v85_v4, 1 }
 0x215   :  { %v6262_v23 = vsel %vm5389_vm8, 4294967295, %v6261_v23 }
 0x216   :  { %2932 = vmatpush1.msk.msra.mxu0 %vm5236_vm11, %v1257_v52  ;;  %v829_v52 = vsel %vm6263_vm0, %v3823_v25, %v3824_v46  ;;  %vm6266_vm11 = vcmask 269312  }
 0x217   :  { %2883 = vmatmul.mubr.msk.f32.vlgmr.msra.gmra.mrb[10].mxu0 %vm6258_vm12, %v5153_v34  ;;  %vm5396_vm12 = vcmp.lt.s32.totalorder %v92_v50, 31  ;;  %vm6271_vm0 = vmmov %vm6266_vm11 }
 0x218   :  { %2084 = vrot.lane.b32.xlu1 %v5070_v31, %s4053_s4  ;;  %2621 = vmatprep.mubr.f32.mxu0 %v6213_v15  ;;  %v6265_v35 = vsel %vm5396_vm12, 4294967295, %v6264_v35  ;;  %v760_v25 = vsel %vm6271_vm0, %v3818_v51, %v3819_v18  ;;  %vm5431_vm0 = vcmp.lt.s32.totalorder %v85_v4, 31  ;;  %v6277_v51 = vunpack.i.l.bf16 %v5208_v42 }
 0x219   :  { %v6276_v3 = vsel %vm5431_vm0, 4294967295, %v6275_v3 }
 0x21c   :  { %2088 = vrot.lane.b32.xlu1 %v5081_v24, %s4053_s4 }
 0x21e   :  { %v5370_v54 = vpop.permute.xlu1 %3861 }
 0x21f   :  { %v5372_v8 = vpop.permute.xlu0 %3851  ;;  %v3863_v56 = vunpack.i.l.bf16 %v5370_v54 }
 0x220   :  { %v3853_v29 = vunpack.i.l.bf16 %v5372_v8 }
 0x222   :  { %v5376_v58 = vpop.permute.xlu1 %3866  ;;  %v761_v27 = vsel %vm6266_vm11, %v3819_v18, %v3853_v29  ;;  %vm5421_vm11 = vmpackc.low %vm6190_vm3, %vm5389_vm8  ;;  %v3580_v29 = vpack.c.bf16 %v829_v52, %v760_v25  ;;  %v6283_v25 = vmov 0 }
 0x223   :  { %v3868_v17 = vunpack.i.l.bf16 %v5376_v58  ;;  %v5380_v12 = vpop.permute.xlu0 %3856 }
 0x224   :  { %v3858_v61 = vunpack.i.l.bf16 %v5380_v12 }
 0x225   :  { %v976_v21 = vsel %vm6267_vm5, %v3834_v6, %v3868_v17  ;;  %v3839_v17 = vunpack.i.h.bf16 %v5260_v48  ;;  %vm6274_vm5 = vcmask 252928  }
 0x226   :  { %v830_v57 = vsel %vm6268_vm6, %v3824_v46, %v3858_v61  ;;  %v5404_v2 = vpop.permute.xlu1 %2078  ;;  %v6272_v46 = vmov 0  ;;  %v907_v61 = vsel %vm6274_vm5, %v3829_v14, %v3863_v56  ;;  %vm5990_vm6 = vmpackc.low %vm5382_vm15, %vm5396_vm12  ;;  %v6279_v56 = vunpack.i.l.bf16 %v5175_v28 }
 0x227   :  { %v3577_v50 = vpack.c.bf16 %v830_v57, %v761_v27  ;;  %v5416_v60 = vpop.permute.xlu0 %2074  ;;  %v6273_v46 = vsel %vm5421_vm11, 4294967295, %v6272_v46  ;;  %v975_v57 = vsel %vm6278_vm10, %v6277_v51, %v3834_v6  ;;  %v3583_v27 = vpack.c.bf16 %v976_v21, %v907_v61  ;;  %vm5991_vm10 = vmpackc.low %vm5389_vm8, %vm5431_vm0 }
 0x228   :  { %v906_v4 = vsel %vm6274_vm5, %v6279_v56, %v3829_v14  ;;  %v6280_v28 = vunpack.i.l.bf16 %v5260_v48  ;;  %vm6282_vm5 = vmmov %vm6281_vm13  ;;  %v6285_v51 = vmov 0 }
 0x229   :  { %3579 = vmatprep.subr.msk.bf16.mxu1 %vm5409_vm1, %v3577_v50  ;;  %v3586_v6 = vpack.c.bf16 %v975_v57, %v906_v4  ;;  %v3854_v57 = vunpack.i.h.bf16 %v5372_v8  ;;  %v3844_v4 = vunpack.i.h.bf16 %v5295_v19 }
 0x22a   :  { %3582 = vmatpush1.bf16.msk.msra.mxu1 %vm5421_vm11, %v3580_v29  ;;  %v5442_v18 = vpop.permute.xlu1 %3871  ;;  %v1060_v52 = vsel %vm6281_vm13, %v6280_v28, %v3839_v17  ;;  %vm5483_vm13 = vmpackc.low %vm5431_vm0, %vm6190_vm3 }
 0x22b   :  { %3585 = vmatprep.subr.msk.bf16.mxu1 %vm5990_vm6, %v3583_v27  ;;  %v5452_v42 = vpop.permute.xlu0 %3886  ;;  %v3873_v21 = vunpack.i.l.bf16 %v5442_v18  ;;  %vm5466_vm6 = vmpackc.low %vm5396_vm12, %vm6190_vm3  ;;  %v6286_v51 = vsel %vm5483_vm13, 4294967295, %v6285_v51  ;;  %v3859_v27 = vunpack.i.h.bf16 %v5380_v12  ;;  %vm6289_vm3 = vcmask 261120  }
 0x22c   :  { %v6284_v25 = vsel %vm5466_vm6, 4294967295, %v6283_v25  ;;  %v3888_v50 = vunpack.i.l.bf16 %v5452_v42  ;;  %6287 = vst [vmem:[#allocation19_spill] sm:$0xff] %v6286_v51 }
 0x22d   :  { %v1061_v14 = vsel %vm6282_vm5, %v3839_v17, %v3873_v21  ;;  %v3592_v17 = vpack.c.bf16 %v1060_v52, %v4683_v13  ;;  %vm6288_vm5 = vcmask 269312  }
 0x22e   :  { %v3589_v29 = vpack.c.bf16 %v1061_v14, %v4689_v32  ;;  %3588 = vmatpush1.bf16.msk.msra.mxu1 %vm5991_vm10, %v3586_v6  ;;  %v5477_v48 = vpop.permute.xlu1 %3876  ;;  %v3849_v32 = vunpack.i.h.bf16 %v5322_v10  ;;  %v1617_v21 = vsel %vm6288_vm5, %v3854_v57, %v3888_v50  ;;  %v6290_v14 = vunpack.i.l.bf16 %v5322_v10 }
 0x22f   :  { %v3897_v61 = vpop.permute.xlu0 %3896  ;;  %v3878_v13 = vunpack.i.l.bf16 %v5477_v48  ;;  %vm6291_vm10 = vcmask 785408  }
 0x230   :  { %v3898_v56 = vunpack.i.l.bf16 %v3897_v61  ;;  %3591 = vmatprep.subr.msk.bf16.mxu1 %vm5466_vm6, %v3589_v29  ;;  %v1198_v29 = vsel %vm6291_vm10, %v6290_v14, %v3849_v32  ;;  %vm6292_vm6 = vcmask 793600   ;;  %vm6293_vm8 = vmmov %vm6291_vm10  ;;  %v3899_v31 = vunpack.i.h.bf16 %v3897_v61 }
 0x231   :  { %v1130_v22 = vsel %vm6292_vm6, %v3844_v4, %v3878_v13  ;;  %vm6295_vm5 = vmmov %vm6292_vm6 }
 0x232   :  { %v1685_v6 = vsel %vm6289_vm3, %v3859_v27, %v3898_v56  ;;  %3594 = vmatpush1.bf16.msk.msra.mxu1 %vm5483_vm13, %v3592_v17  ;;  %v5498_v28 = vpop.permute.xlu1 %3881  ;;  %v6294_v17 = vunpack.i.l.bf16 %v5295_v19  ;;  %vm6298_vm10 = vmmov %vm6289_vm3  ;;  %vm6299_vm3 = vcmask 7168  }
 0x233   :  { %v3601_v8 = vpack.c.bf16 %v1685_v6, %v1617_v21  ;;  %v5500_v52 = vpop.permute.xlu0 %3906  ;;  %v3883_v12 = vunpack.i.l.bf16 %v5498_v28  ;;  %vm6302_vm13 = vmmov %vm6298_vm10 }
 0x234   :  { %v1129_v51 = vsel %vm6295_vm5, %v6294_v17, %v3844_v4  ;;  %v3908_v61 = vunpack.i.l.bf16 %v5500_v52  ;;  %vm6300_vm5 = vcmask 269312  }
 0x235   :  { %v1199_v5 = vsel %vm6293_vm8, %v3849_v32, %v3883_v12  ;;  %3603 = vmatprep.subr.msk.bf16.mxu0 %vm4761_vm4, %v3601_v8  ;;  %v3598_v59 = vpack.c.bf16 %v1198_v29, %v1129_v51  ;;  %vm6296_vm8 = vcmask 777216  }
 0x236   :  { %v3595_v21 = vpack.c.bf16 %v1199_v5, %v1130_v22  ;;  %v5513_v6 = vpop.permute.xlu1 %3891  ;;  %v1260_v32 = vsel %vm6296_vm8, %v5364_v26, %v4719_v53  ;;  %v3869_v5 = vunpack.i.h.bf16 %v5376_v58  ;;  %v3889_v22 = vunpack.i.h.bf16 %v5452_v42  ;;  %vm6297_vm6 = vmmov %vm6296_vm8 }
 0x237   :  { %v3917_v20 = vpop.permute.xlu0 %3916  ;;  %v3894_v13 = vunpack.i.h.bf16 %v5513_v6  ;;  %v3893_v19 = vunpack.i.l.bf16 %v5513_v6  ;;  %v1259_v8 = vsel %vm6297_vm6, %v5055_v39, %v5364_v26  ;;  %v1686_v58 = vsel %vm6298_vm10, %v3898_v56, %v3899_v31  ;;  %vm6301_vm8 = vmmov %vm6300_vm5 }
 0x238   :  { %v3918_v10 = vunpack.i.l.bf16 %v3917_v20  ;;  %3597 = vmatprep.subr.msk.bf16.mxu1 %vm5409_vm1, %v3595_v21  ;;  %vm6304_vm6 = vmmov %vm6300_vm5 }
 0x239   :  { %3600 = vmatpush1.bf16.msk.msra.mxu1 %vm5421_vm11, %v3598_v59  ;;  %v3864_v59 = vunpack.i.h.bf16 %v5370_v54  ;;  %v1616_v12 = vsel %vm6300_vm5, %v3894_v13, %v3854_v57  ;;  %v1619_v14 = vsel %vm6301_vm8, %v3889_v22, %v3893_v19  ;;  %v1618_v39 = vsel %vm6304_vm6, %v3888_v50, %v3889_v22 }
 0x23a   :  { %v5527_v51 = vpop.permute.xlu1 %3901  ;;  %2943 = vmatprep.subr.msk.mxu1 %vm5396_vm12, %v1260_v32  ;;  %v1813_v42 = vsel %vm6299_vm3, %v3869_v5, %v3918_v10  ;;  %vm6303_vm12 = vmmov %vm6298_vm10  ;;  %vm6305_vm10 = vcmask 252928   ;;  %vm6306_vm3 = vcmask 588800   ;;  %v3628_v32 = vpack.c.bf16 %v1686_v58, %v1618_v39 }
 0x23b   :  { %v3904_v53 = vunpack.i.h.bf16 %v5527_v51  ;;  %v3903_v4 = vunpack.i.l.bf16 %v5527_v51  ;;  %v3927_v29 = vpop.permute.xlu0 %3926  ;;  %v1745_v26 = vsel %vm6305_vm10, %v3864_v59, %v3908_v61  ;;  %v3919_v13 = vunpack.i.h.bf16 %v3917_v20  ;;  %vm6311_vm6 = vmmov %vm6305_vm10 }
 0x23c   :  { %v3874_v20 = vunpack.i.h.bf16 %v5442_v18  ;;  %vm6309_vm5 = vcmask 7168   ;;  %vm6310_vm8 = vcmask 1039360  }
 0x23d   :  { %v1684_v17 = vsel %vm6302_vm13, %v3904_v53, %v3859_v27  ;;  %v1687_v21 = vsel %vm6303_vm12, %v3899_v31, %v3903_v4  ;;  %2944 = vmatpush1.msk.msra.mxu1 %vm5431_vm0, %v1259_v8  ;;  %v3607_v27 = vpack.c.bf16 %v1813_v42, %v1745_v26  ;;  %v3928_v31 = vunpack.i.l.bf16 %v3927_v29  ;;  %vm6307_vm12 = vmpackc.low %vm4740_vm2, %vm4925_vm14 }
 0x23e   :  { %v3604_v54 = vpack.c.bf16 %v1684_v17, %v1616_v12  ;;  %v3625_v57 = vpack.c.bf16 %v1687_v21, %v1619_v14  ;;  %v5551_v56 = vpop.permute.xlu1 %3911  ;;  %2884 = vmatmul.mubr.msk.f32.vlgmr.msra.gmra.mrb[10].mxu1 %vm6306_vm3, %v5153_v34  ;;  %vm6308_vm13 = vnez %v6172_v63  ;;  %v3909_v53 = vunpack.i.h.bf16 %v5500_v52  ;;  %vm6312_vm2 = vmmov %vm6311_vm6 }
 0x23f   :  { %2692 = vmatprep.mubr.f32.mxu1 %v6213_v15  ;;  %v3914_v50 = vunpack.i.h.bf16 %v5551_v56  ;;  %v3913_v22 = vunpack.i.l.bf16 %v5551_v56  ;;  %v1814_v12 = vsel %vm6309_vm5, %v3918_v10, %v3919_v13  ;;  %v1897_v36 = vsel %vm6310_vm8, %v3874_v20, %v3928_v31  ;;  %vm6313_vm10 = vmmov %vm6309_vm5 }
 0x240   :  { %3606 = vmatpush1.bf16.msk.msra.mxu0 %vm4961_vm9, %v3604_v54  ;;  %3627 = vmatprep.subr.msk.bf16.mxu1 %vm4794_vm7, %v3625_v57  ;;  %vm6314_vm3 = vmmov %vm6309_vm5  ;;  %v3613_v10 = vpack.c.bf16 %v1897_v36, %v4810_v0  ;;  %vm6316_vm5 = vnez %v6181_v33  ;;  %vm6317_vm8 = vnez %v6187_v40  ;;  %v3932_v0 = vpop.permute.xlu0 %3931  ;;  %v3929_v57 = vunpack.i.h.bf16 %v3927_v29 }
 0x241   :  { %3609 = vmatprep.subr.msk.bf16.mxu0 %vm6307_vm12, %v3607_v27  ;;  %3630 = vmatpush1.bf16.msk.msra.mxu1 %vm6308_vm13, %v3628_v32  ;;  %v1744_v14 = vsel %vm6311_vm6, %v3914_v50, %v3864_v59  ;;  %v1747_v17 = vsel %vm6312_vm2, %v3909_v53, %v3913_v22  ;;  %vm6315_vm12 = vmmov %vm6312_vm2  ;;  %vm6319_vm2 = vnez %v6164_v16  ;;  %v3884_v16 = vunpack.i.h.bf16 %v5498_v28 }
 0x242   :  { %v5571_v8 = vpop.permute.xlu1 %3921  ;;  %v1746_v21 = vsel %vm6315_vm12, %v3908_v61, %v3909_v53  ;;  %vm6318_vm6 = vmpackc.low %vm6316_vm5, %vm6317_vm8  ;;  %v6325_v61 = vld [vmem:[#allocation11_spill] sm:$0xff] }
 0x243   :  { %v3924_v58 = vunpack.i.h.bf16 %v5571_v8  ;;  %v6008_v42 = vunpack.i.l.bf16 %v5571_v8  ;;  %v3634_v54 = vpack.c.bf16 %v1814_v12, %v1746_v21  ;;  %vm6326_vm15 = vnez %v6325_v61  ;;  %v6334_v21 = vld [vmem:[#allocation10_spill] sm:$0xff] }
 0x244   :  { %v3937_v33 = vpop.permute.xlu0 %3936 }
 0x245   :  { %v1812_v18 = vsel %vm6313_vm10, %v3924_v58, %v3869_v5  ;;  %v1815_v52 = vsel %vm6314_vm3, %v3919_v13, %v6008_v42  ;;  %vm6320_vm10 = vnez %v6176_v37  ;;  %vm6322_vm3 = vnez %v6192_v30  ;;  %v6323_v5 = vld [vmem:[#allocation7_spill] sm:$0xff] }
 0x246   :  { %v3610_v39 = vpack.c.bf16 %v1812_v18, %v1744_v14  ;;  %v3631_v26 = vpack.c.bf16 %v1815_v52, %v1747_v17  ;;  %vm6321_vm0 = vmpackc.low %vm6319_vm2, %vm6320_vm10  ;;  %vm6324_vm12 = vnez %v6323_v5  ;;  %v3938_v32 = vunpack.i.l.bf16 %v3937_v33  ;;  %v6333_v18 = vld [vmem:[#allocation8_spill] sm:$0xff] }
 0x247   :  { %vm6327_vm11 = vmpackc.low %vm6324_vm12, %vm6326_vm15  ;;  %v3933_v13 = vunpack.i.l.bf16 %v3932_v0  ;;  %v3879_v58 = vunpack.i.h.bf16 %v5477_v48  ;;  %vm6332_vm2 = vcmask 793600   ;;  %v6335_v48 = vld [vmem:[#allocation9_spill] sm:$0xff]  ;;  %v3939_v5 = vunpack.i.h.bf16 %v3937_v33 }
 0x248   :  { %3612 = vmatpush1.bf16.msk.msra.mxu0 %vm6318_vm6, %v3610_v39  ;;  %3633 = vmatprep.subr.msk.bf16.mxu1 %vm6321_vm0, %v3631_v26  ;;  %v2077_v59 = vpop.permute.xlu0 %2076  ;;  %vm6328_vm0 = vcmask 1039360  }
 0x249   :  { %3615 = vmatprep.subr.msk.bf16.mxu0 %vm6322_vm3, %v3613_v10  ;;  %3636 = vmatpush1.bf16.msk.msra.mxu1 %vm6327_vm11, %v3634_v54  ;;  %v1898_v12 = vsel %vm6328_vm0, %v3928_v31, %v3929_v57  ;;  %vm6329_vm11 = vcmask 785408   ;;  %vm6330_vm5 = vmmov %vm6328_vm0  ;;  %v1965_v17 = vsel %vm6332_vm2, %v3879_v58, %v3933_v13  ;;  %v3934_v10 = vunpack.i.h.bf16 %v3932_v0 }
 0x24a   :  { %v2033_v36 = vsel %vm6329_vm11, %v3884_v16, %v3938_v32  ;;  %vm6331_vm6 = vmmov %vm6328_vm0  ;;  %v3640_v31 = vpack.c.bf16 %v1898_v12, %v6335_v48  ;;  %vm6336_vm3 = vnez %v6211_v38 }
 0x24b   :  { %v3619_v54 = vpack.c.bf16 %v2033_v36, %v1965_v17  ;;  %vm6341_vm11 = vmmov %vm6332_vm2 }
 0x24c   :  { %v2081_v27 = vpop.permute.xlu0 %2080  ;;  %v1966_v12 = vsel %vm6341_vm11, %v3933_v13, %v3934_v10 }
 0x25e   :  { %v5605_v50 = vpop.permute.xlu1 %3941 }
 0x25f   :  { %v3944_v30 = vunpack.i.h.bf16 %v5605_v50  ;;  %v3943_v53 = vunpack.i.l.bf16 %v5605_v50  ;;  %v6390_v50 = vld [vmem:[#allocation12_spill] sm:$0xff] }
 0x260   :  { %v5612_v14 = vpop.permute.xlu0 %3956 }
 0x261   :  { %v1896_v29 = vsel %vm6330_vm5, %v3944_v30, %v3874_v20  ;;  %v1899_v28 = vsel %vm6331_vm6, %v3929_v57, %v3943_v53  ;;  %v6337_v20 = vld [vmem:[#allocation13_spill] sm:$0xff]  ;;  %vm6342_vm5 = vcmask 785408   ;;  %vm6344_vm6 = vmmov %vm6332_vm2 }
 0x262   :  { %v3616_v52 = vpack.c.bf16 %v1896_v29, %v6333_v18  ;;  %v3637_v39 = vpack.c.bf16 %v1899_v28, %v6334_v21  ;;  %v5621_v26 = vpop.permute.xlu1 %3946  ;;  %vm6338_vm12 = vnez %v6337_v20  ;;  %v6339_v29 = vld [vmem:[#allocation15_spill] sm:$0xff]  ;;  %v2034_v36 = vsel %vm6342_vm5, %v3938_v32, %v3939_v5 }
 0x263   :  { %v3949_v57 = vunpack.i.h.bf16 %v5621_v26  ;;  %v3948_v30 = vunpack.i.l.bf16 %v5621_v26  ;;  %vm6340_vm0 = vnez %v6339_v29  ;;  %v3959_v32 = vunpack.i.h.bf16 %v5612_v14 }
 0x264   :  { %v5624_v42 = vpop.permute.xlu0 %3966  ;;  %3618 = vmatpush1.bf16.msk.msra.mxu0 %vm6336_vm3, %v3616_v52  ;;  %3639 = vmatprep.subr.msk.bf16.mxu1 %vm6338_vm12, %v3637_v39  ;;  %v3958_v39 = vunpack.i.l.bf16 %v5612_v14  ;;  %vm6347_vm12 = vcmask 777216  }
 0x265   :  { %3621 = vmatprep.subr.msk.bf16.mxu0 %vm4761_vm4, %v3619_v54  ;;  %3642 = vmatpush1.bf16.msk.msra.mxu1 %vm6340_vm0, %v3640_v31  ;;  %v3969_v28 = vunpack.i.h.bf16 %v5624_v42  ;;  %v3968_v17 = vunpack.i.l.bf16 %v5624_v42  ;;  %vm6343_vm4 = vmmov %vm6332_vm2  ;;  %v1967_v52 = vsel %vm6344_vm6, %v3934_v10, %v3948_v30  ;;  %v3646_v54 = vpack.c.bf16 %v2034_v36, %v1966_v12 }
 0x266   :  { %v5636_v0 = vpop.permute.xlu1 %3951  ;;  %v1964_v11 = vsel %vm6343_vm4, %v3949_v57, %v3879_v58  ;;  %vm6345_vm2 = vmmov %vm6342_vm5  ;;  %v2093_v58 = vsel %vm6347_vm12, %v2077_v59, %v5404_v2  ;;  %vm6348_vm0 = vcmask 261120   ;;  %vm6350_vm5 = vcmask 269312  }
 0x267   :  { %v3954_v33 = vunpack.i.h.bf16 %v5636_v0  ;;  %v3953_v38 = vunpack.i.l.bf16 %v5636_v0  ;;  %vm6346_vm3 = vmmov %vm6345_vm2  ;;  %v1689_v10 = vsel %vm6348_vm0, %v3968_v17, %v3969_v28 }
 0x268   :  { %v5644_v18 = vpop.permute.xlu0 %3981  ;;  %vm6349_vm11 = vmmov %vm6347_vm12 }
 0x269   :  { %v2032_v21 = vsel %vm6345_vm2, %v3954_v33, %v3884_v16  ;;  %v2035_v13 = vsel %vm6346_vm3, %v3939_v5, %v3953_v38  ;;  %v1621_v5 = vsel %vm6350_vm5, %v3958_v39, %v3959_v32  ;;  %vm6351_vm4 = vmmov %vm6348_vm0  ;;  %v3984_v29 = vunpack.i.h.bf16 %v5644_v18 }
 0x26a   :  { %v3622_v48 = vpack.c.bf16 %v2032_v21, %v1964_v11  ;;  %v3643_v42 = vpack.c.bf16 %v2035_v13, %v1967_v52  ;;  %v5656_v31 = vpop.permute.xlu1 %2082  ;;  %v1688_v47 = vsel %vm6351_vm4, %v3903_v4, %v3968_v17  ;;  %v3649_v57 = vpack.c.bf16 %v1689_v10, %v1621_v5  ;;  %vm6361_vm3 = vmmov %vm6350_vm5 }
 0x26b   :  { %v2095_v16 = vsel %vm6349_vm11, %v2081_v27, %v5656_v31  ;;  %v3983_v51 = vunpack.i.l.bf16 %v5644_v18  ;;  %vm6359_vm2 = vcmask 252928   ;;  %vm6362_vm12 = vmmov %vm6361_vm3  ;;  %vm6365_vm4 = vnez %v6260_v49 }
 0x26c   :  { %3624 = vmatpush1.bf16.msk.msra.mxu0 %vm4961_vm9, %v3622_v48  ;;  %3645 = vmatprep.subr.msk.bf16.mxu1 %vm4794_vm7, %v3643_v42  ;;  %v5667_v14 = vpop.permute.xlu0 %3991  ;;  %vm6352_vm7 = vmmov %vm6349_vm11  ;;  %v6371_v49 = vunpack.i.l.bf16 %v5571_v8 }
 0x26d   :  { %2955 = vmatprep.subr.msk.mxu0 %vm4925_vm14, %v2093_v58  ;;  %3648 = vmatpush1.bf16.msk.msra.mxu1 %vm6308_vm13, %v3646_v54  ;;  %v2092_v43 = vsel %vm6352_vm7, %v5416_v60, %v2077_v59  ;;  %vm6353_vm9 = vmmov %vm6352_vm7  ;;  %v3994_v4 = vunpack.i.h.bf16 %v5667_v14  ;;  %v3993_v37 = vunpack.i.l.bf16 %v5667_v14  ;;  %vm6355_vm13 = vnez %v6225_v7 }
 0x26e   :  { %v3962_v20 = vpop.permute.xlu1 %3961  ;;  %2967 = vmatprep.subr.msk.mxu1 %vm6320_vm10, %v2095_v16  ;;  %v2094_v41 = vsel %vm6353_vm9, %v5404_v2, %v2081_v27  ;;  %vm6354_vm14 = vmmov %vm6350_vm5  ;;  %vm6356_vm10 = vcmask 588800   ;;  %v1751_v61 = vsel %vm6359_vm2, %v3983_v51, %v3984_v29  ;;  %vm6364_vm5 = vnez %v6273_v46 }
 0x26f   :  { %v1620_v63 = vsel %vm6354_vm14, %v3893_v19, %v3958_v39  ;;  %v3964_v59 = vunpack.i.h.bf16 %v3962_v20  ;;  %v3963_v33 = vunpack.i.l.bf16 %v3962_v20  ;;  %vm6357_vm6 = vmmov %vm6356_vm10  ;;  %vm6366_vm7 = vnez %v6265_v35 }
 0x270   :  { %2956 = vmatpush1.msk.msra.mxu0 %vm6317_vm8, %v2092_v43  ;;  %v3652_v60 = vpack.c.bf16 %v1688_v47, %v1620_v63  ;;  %v4002_v2 = vpop.permute.xlu0 %4001  ;;  %vm6358_vm8 = vnez %v6230_v9  ;;  %vm6363_vm11 = vmmov %vm6348_vm0  ;;  %vm6368_vm14 = vcmask 1039360  }
 0x271   :  { %2968 = vmatpush1.msk.msra.mxu1 %vm6326_vm15, %v2094_v41  ;;  %3651 = vmatprep.subr.msk.bf16.mxu0 %vm6355_vm13, %v3649_v57  ;;  %vm6360_vm15 = vcmask 7168   ;;  %v1622_v12 = vsel %vm6361_vm3, %v3959_v32, %v3963_v33  ;;  %v1623_v36 = vsel %vm6362_vm12, %v3963_v33, %v3964_v59  ;;  %v4004_v39 = vunpack.i.h.bf16 %v4002_v2  ;;  %vm6367_vm9 = vmpackc.low %vm6365_vm4, %vm6366_vm7 }
 0x272   :  { %v3972_v6 = vpop.permute.xlu1 %3971  ;;  %2885 = vmatmul.mubr.msk.f32.vlgmr.msra.gmra.mrb[12].mxu0 %vm6356_vm10, %v5153_v34  ;;  %2886 = vmatmul.mubr.msk.f32.vlgmr.msra.gmra.mrb[12].mxu1 %vm6357_vm6, %v5153_v34  ;;  %v1819_v27 = vsel %vm6360_vm15, %v3993_v37, %v3994_v4  ;;  %v4003_v48 = vunpack.i.l.bf16 %v4002_v2  ;;  %vm6369_vm10 = vmmov %vm6359_vm2  ;;  %vm6376_vm4 = vnez %v6227_v1  ;;  %vm6388_vm7 = vcmask 793600  }
 0x273   :  { %v3974_v19 = vunpack.i.h.bf16 %v3972_v6  ;;  %v3973_v40 = vunpack.i.l.bf16 %v3972_v6  ;;  %3654 = vmatpush1.bf16.msk.msra.mxu0 %vm6358_vm8, %v3652_v60  ;;  %2763 = vmatprep.mubr.f32.mxu0 %v6213_v15  ;;  %v3679_v42 = vpack.c.bf16 %v1819_v27, %v1751_v61  ;;  %vm6370_vm6 = vmmov %vm6359_vm2 }
 0x274   :  { %2834 = vmatprep.mubr.f32.mxu1 %v6213_v15  ;;  %vm6372_vm3 = vmmov %vm6360_vm15 }
 0x275   :  { %v1690_v17 = vsel %vm6348_vm0, %v3969_v28, %v3973_v40  ;;  %v1691_v18 = vsel %vm6363_vm11, %v3973_v40, %v3974_v19  ;;  %v4012_v11 = vpop.permute.xlu0 %4011  ;;  %v1903_v28 = vsel %vm6368_vm14, %v4003_v48, %v4004_v39  ;;  %vm6373_vm12 = vmmov %vm6372_vm3  ;;  %vm6374_vm0 = vcmask 785408  }
 0x276   :  { %v3673_v52 = vpack.c.bf16 %v1691_v18, %v1623_v36  ;;  %v3676_v21 = vpack.c.bf16 %v1690_v17, %v1622_v12  ;;  %v3977_v13 = vpop.permute.xlu1 %3976  ;;  %v4014_v10 = vunpack.i.h.bf16 %v4012_v11  ;;  %v4013_v4 = vunpack.i.l.bf16 %v4012_v11  ;;  %v6394_v18 = vld [vmem:[#allocation19_spill] sm:$0xff] }
 0x277   :  { %v3979_v54 = vunpack.i.h.bf16 %v3977_v13  ;;  %v3978_v58 = vunpack.i.l.bf16 %v3977_v13  ;;  %vm6375_vm11 = vnez %v6216_v55  ;;  %vm6378_vm14 = vnez %v6262_v23  ;;  %v6389_v23 = vld [vmem:[#allocation16_spill] sm:$0xff] }
 0x278   :  { %3675 = vmatprep.subr.msk.bf16.mxu1 %vm5409_vm1, %v3673_v52  ;;  %v1971_v55 = vsel %vm6388_vm7, %v4013_v4, %v4014_v10 }
 0x279   :  { %v4022_v15 = vpop.permute.xlu0 %4021  ;;  %3678 = vmatpush1.bf16.msk.msra.mxu1 %vm6364_vm5, %v3676_v21  ;;  %v1748_v5 = vsel %vm6369_vm10, %v3913_v22, %v3978_v58  ;;  %v1749_v47 = vsel %vm6370_vm6, %v3978_v58, %v3979_v54  ;;  %v1750_v41 = vsel %vm6359_vm2, %v3979_v54, %v3983_v51  ;;  %v3685_v22 = vpack.c.bf16 %v1903_v28, %v5081_v24 }
 0x27a   :  { %v3987_v32 = vpop.permute.xlu1 %3986  ;;  %3681 = vmatprep.subr.msk.bf16.mxu1 %vm6367_vm9, %v3679_v42  ;;  %v4024_v20 = vunpack.i.h.bf16 %v4022_v15  ;;  %v4023_v43 = vunpack.i.l.bf16 %v4022_v15  ;;  %vm6377_vm9 = vmpackc.low %vm6375_vm11, %vm6376_vm4  ;;  %vm6379_vm10 = vnez %v6276_v3  ;;  %vm6381_vm2 = vcmask 1039360  }
 0x27b   :  { %v3989_v16 = vunpack.i.h.bf16 %v3987_v32  ;;  %v3988_v14 = vunpack.i.l.bf16 %v3987_v32  ;;  %vm6380_vm6 = vmpackc.low %vm6378_vm14, %vm6379_vm10 }
 0x27c   :  { %v2039_v19 = vsel %vm6374_vm0, %v4023_v43, %v4024_v20  ;;  %vm6385_vm0 = vnez %v6232_v62 }
 0x27d   :  { %v1816_v63 = vsel %vm6360_vm15, %v6371_v49, %v3988_v14  ;;  %v1817_v57 = vsel %vm6372_vm3, %v3988_v14, %v3989_v16  ;;  %v1818_v29 = vsel %vm6373_vm12, %v3989_v16, %v3993_v37  ;;  %vm6382_vm15 = vmmov %vm6381_vm2  ;;  %vm6384_vm12 = vnez %v6221_v45  ;;  %v6392_v45 = vld [vmem:[#allocation17_spill] sm:$0xff]  ;;  %v2087_v13 = vpop.permute.xlu0 %2086 }
 0x27e   :  { %v3655_v60 = vpack.c.bf16 %v1817_v57, %v1749_v47  ;;  %v3658_v59 = vpack.c.bf16 %v1816_v63, %v1748_v5  ;;  %v3682_v56 = vpack.c.bf16 %v1818_v29, %v1750_v41  ;;  %v3997_v33 = vpop.permute.xlu1 %3996  ;;  %vm6383_vm3 = vmmov %vm6381_vm2  ;;  %v3691_v12 = vpack.c.bf16 %v2039_v19, %v1971_v55 }
 0x27f   :  { %v3999_v2 = vunpack.i.h.bf16 %v3997_v33  ;;  %v3998_v6 = vunpack.i.l.bf16 %v3997_v33  ;;  %vm6386_vm11 = vmpackc.low %vm6384_vm12, %vm6385_vm0  ;;  %vm6393_vm14 = vnez %v6392_v45  ;;  %vm6400_vm12 = vcmask 785408  }
 0x280   :  { %3657 = vmatprep.subr.msk.bf16.mxu0 %vm6377_vm9, %v3655_v60  ;;  %3684 = vmatpush1.bf16.msk.msra.mxu1 %vm6380_vm6, %v3682_v56  ;;  %vm6387_vm9 = vnez %v6284_v25  ;;  %vm6395_vm6 = vnez %v6394_v18  ;;  %v6396_v25 = vld [vmem:[#allocation18_spill] sm:$0xff] }
 0x281   :  { %v1900_v24 = vsel %vm6381_vm2, %v3943_v53, %v3998_v6  ;;  %v1901_v8 = vsel %vm6382_vm15, %v3998_v6, %v3999_v2  ;;  %v1902_v51 = vsel %vm6383_vm3, %v3999_v2, %v4003_v48  ;;  %3660 = vmatpush1.bf16.msk.msra.mxu0 %vm6386_vm11, %v3658_v59  ;;  %3687 = vmatprep.subr.msk.bf16.mxu1 %vm6387_vm9, %v3685_v22  ;;  %v6391_v53 = vld [vmem:[#allocation14_spill] sm:$0xff]  ;;  %vm6398_vm15 = vmmov %vm6388_vm7  ;;  %v2091_v26 = vpop.permute.xlu0 %2090 }
 0x282   :  { %v3661_v37 = vpack.c.bf16 %v1901_v8, %v6389_v23  ;;  %v3664_v40 = vpack.c.bf16 %v1900_v24, %v6390_v50  ;;  %v3688_v61 = vpack.c.bf16 %v1902_v51, %v6391_v53  ;;  %v4007_v27 = vpop.permute.xlu1 %4006  ;;  %vm6397_vm2 = vnez %v6396_v25  ;;  %vm6399_vm3 = vmmov %vm6388_vm7 }
 0x283   :  { %v4009_v36 = vunpack.i.h.bf16 %v4007_v27  ;;  %v4008_v17 = vunpack.i.l.bf16 %v4007_v27  ;;  %vm6401_vm11 = vmmov %vm6400_vm12 }
 0x284   :  { %3663 = vmatprep.subr.msk.bf16.mxu0 %vm6393_vm14, %v3661_v37  ;;  %3690 = vmatpush1.bf16.msk.msra.mxu1 %vm6395_vm6, %v3688_v61  ;;  %vm6402_vm9 = vmmov %vm6401_vm11 }
 0x285   :  { %3666 = vmatpush1.bf16.msk.msra.mxu0 %vm6397_vm2, %v3664_v40  ;;  %3693 = vmatprep.subr.msk.bf16.mxu1 %vm5409_vm1, %v3691_v12  ;;  %v1968_v39 = vsel %vm6388_vm7, %v3948_v30, %v4008_v17  ;;  %v1969_v48 = vsel %vm6398_vm15, %v4008_v17, %v4009_v36  ;;  %v1970_v42 = vsel %vm6399_vm3, %v4009_v36, %v4013_v4  ;;  %vm6403_vm1 = vcmask 777216  }
 0x286   :  { %v4017_v11 = vpop.permute.xlu1 %4016  ;;  %vm6404_vm14 = vmmov %vm6403_vm1 }
 0x287   :  { %v4019_v52 = vunpack.i.h.bf16 %v4017_v11  ;;  %v4018_v21 = vunpack.i.l.bf16 %v4017_v11  ;;  %vm6405_vm6 = vmmov %vm6403_vm1 }
 0x288   :  { %vm6406_vm2 = vmmov %vm6403_vm1 }
 0x289   :  { %v2036_v54 = vsel %vm6400_vm12, %v3953_v38, %v4018_v21  ;;  %v2037_v58 = vsel %vm6401_vm11, %v4018_v21, %v4019_v52  ;;  %v2038_v44 = vsel %vm6402_vm9, %v4019_v52, %v4023_v43 }
 0x28a   :  { %v3667_v15 = vpack.c.bf16 %v2037_v58, %v1969_v48  ;;  %v3670_v32 = vpack.c.bf16 %v2036_v54, %v1968_v39  ;;  %v3694_v28 = vpack.c.bf16 %v2038_v44, %v1970_v42  ;;  %v2085_v10 = vpop.permute.xlu1 %2084 }
 0x28b   :  { %v2097_v30 = vsel %vm6403_vm1, %v2085_v10, %v2087_v13  ;;  %v2096_v7 = vsel %vm6406_vm2, %v5656_v31, %v2085_v10 }
 0x28c   :  { %3669 = vmatprep.subr.msk.bf16.mxu0 %vm6355_vm13, %v3667_v15  ;;  %3696 = vmatpush1.bf16.msk.msra.mxu1 %vm6364_vm5, %v3694_v28  ;;  %vm6407_vm13 = vnez %v6265_v35 }
 0x28d   :  { %3672 = vmatpush1.bf16.msk.msra.mxu0 %vm6358_vm8, %v3670_v32  ;;  %vm6408_vm8 = vcmask 588800  }
 0x28e   :  { %v2089_v0 = vpop.permute.xlu1 %2088  ;;  %2979 = vmatprep.subr.msk.mxu0 %vm6376_vm4, %v2097_v30  ;;  %vm6409_vm5 = vmmov %vm6408_vm8 }
 0x28f   :  { %v2098_v38 = vsel %vm6404_vm14, %v2087_v13, %v2089_v0  ;;  %v2099_v16 = vsel %vm6405_vm6, %v2089_v0, %v2091_v26 }
 0x290   :  { %2991 = vmatprep.subr.msk.mxu1 %vm6407_vm13, %v2099_v16 }
 0x291   :  { %2980 = vmatpush1.msk.msra.mxu0 %vm6385_vm0, %v2096_v7  ;;  %2992 = vmatpush1.msk.msra.mxu1 %vm6379_vm10, %v2098_v38 }
 0x292   :  { %2887 = vmatmul.mubr.msk.f32.vlgmr.msra.gmra.mrb[14].mxu0 %vm6408_vm8, %v5153_v34  ;;  %2888 = vmatmul.mubr.msk.f32.vlgmr.msra.gmra.mrb[14].mxu1 %vm6409_vm5, %v5153_v34 }
 0x2ca   :  { %v2410_v1 = vpop.f32.mrb[8].mxu1 }
 0x2cb   :  { %v2843_v9 = vmax.f32 %v2410_v1, 0.0  ;;  %v2412_v46 = vpop.f32.mrb[9].mxu1 }
 0x2cc   :  { %v2844_v14 = vmax.f32 %v2412_v46, 0.0 }
 0x2cd   :  { %2859 = vst [vmem:[%s5850_s3 + $0x10] sm:$0xff] %v2843_v9 }
 0x2ce   :  { %2860 = vst [vmem:[%s5850_s3 + $0x18] sm:$0xff] %v2844_v14 }
 0x2d5   :  { %v2339_v62 = vpop.f32.mrb[8].mxu0 }
 0x2d6   :  { %v2841_v35 = vmax.f32 %v2339_v62, 0.0  ;;  %v2341_v3 = vpop.f32.mrb[9].mxu0 }
 0x2d7   :  { %v2842_v31 = vmax.f32 %v2341_v3, 0.0 }
 0x2d8   :  { %2857 = vst [vmem:[%s5850_s3] sm:$0xff] %v2841_v35 }
 0x2d9   :  { %2858 = vst [vmem:[%s5850_s3 + $0x8] sm:$0xff] %v2842_v31 }
 0x2ea   :  { %v2481_v34 = vpop.f32.mrb[10].mxu0 }
 0x2eb   :  { %v2845_v5 = vmax.f32 %v2481_v34, 0.0  ;;  %v2483_v47 = vpop.f32.mrb[11].mxu0 }
 0x2ec   :  { %v2846_v20 = vmax.f32 %v2483_v47, 0.0 }
 0x2ed   :  { %2861 = vst [vmem:[%s5850_s3 + $0x20] sm:$0xff] %v2845_v5 }
 0x2ee   :  { %2862 = vst [vmem:[%s5850_s3 + $0x28] sm:$0xff] %v2846_v20 }
 0x311   :  { %v2552_v43 = vpop.f32.mrb[10].mxu1 }
 0x312   :  { %v2847_v41 = vmax.f32 %v2552_v43, 0.0  ;;  %v2554_v49 = vpop.f32.mrb[11].mxu1 }
 0x313   :  { %v2848_v63 = vmax.f32 %v2554_v49, 0.0 }
 0x314   :  { %2863 = vst [vmem:[%s5850_s3 + $0x30] sm:$0xff] %v2847_v41 }
 0x315   :  { %2864 = vst [vmem:[%s5850_s3 + $0x38] sm:$0xff] %v2848_v63 }
 0x345   :  { %v2623_v57 = vpop.f32.mrb[12].mxu0  ;;  %v2694_v29 = vpop.f32.mrb[12].mxu1 }
 0x346   :  { %v2849_v4 = vmax.f32 %v2623_v57, 0.0  ;;  %v2851_v60 = vmax.f32 %v2694_v29, 0.0  ;;  %v2625_v59 = vpop.f32.mrb[13].mxu0  ;;  %v2696_v56 = vpop.f32.mrb[13].mxu1 }
 0x347   :  { %v2850_v33 = vmax.f32 %v2625_v59, 0.0  ;;  %v2852_v22 = vmax.f32 %v2696_v56, 0.0 }
 0x348   :  { %2889 = vst [vmem:[%s5850_s3 + $0x40] sm:$0xff] %v2849_v4  ;;  %2891 = vst [vmem:[%s5850_s3 + $0x50] sm:$0xff] %v2851_v60 }
 0x349   :  { %2890 = vst [vmem:[%s5850_s3 + $0x48] sm:$0xff] %v2850_v33  ;;  %2892 = vst [vmem:[%s5850_s3 + $0x58] sm:$0xff] %v2852_v22 }
 0x365   :  { %v2765_v2 = vpop.f32.mrb[14].mxu0  ;;  %v2836_v6 = vpop.f32.mrb[14].mxu1 }
 0x366   :  { %v2853_v19 = vmax.f32 %v2765_v2, 0.0  ;;  %v2855_v24 = vmax.f32 %v2836_v6, 0.0  ;;  %v2767_v8 = vpop.f32.mrb[15].mxu0  ;;  %v2838_v51 = vpop.f32.mrb[15].mxu1 }
 0x367   :  { %v2854_v55 = vmax.f32 %v2767_v8, 0.0  ;;  %v2856_v23 = vmax.f32 %v2838_v51, 0.0 }
 0x368   :  { %2893 = vst [vmem:[%s5850_s3 + $0x60] sm:$0xff] %v2853_v19  ;;  %2895 = vst [vmem:[%s5850_s3 + $0x70] sm:$0xff] %v2855_v24 }
 0x369   :  { %2894 = vst [vmem:[%s5850_s3 + $0x68] sm:$0xff] %v2854_v55  ;;  %2896 = vst [vmem:[%s5850_s3 + $0x78] sm:$0xff] %v2856_v23 }
 0x36a   :  { %2878 = vsyncpa [#allocation5], 1 }

</bundles_post_ra>
